<compile_context>
chip_gen: v5e
topology: v5e:2x2
jax: 0.10.0
libtpu: 0.0.40
codegen_flags: <defaults>
</compile_context>

<pallas_src>
import functools

import jax
import jax.numpy as jnp
from jax.experimental import pallas as pl
from jax.experimental.pallas import tpu as pltpu


def _softplus(x):
    # numerically stable softplus = log(1 + exp(x))
    return jnp.maximum(x, 0.0) + jnp.log1p(jnp.exp(-jnp.abs(x)))


def _gelu_exact(x):
    # nn.GELU() default in PyTorch = exact erf formulation
    return 0.5 * x * (1.0 + jax.lax.erf(x * jnp.float32(0.7071067811865476)))


def _mlp_mi_kernel(hu_ref, hv_ref, rf_ref, nrf_ref,
                   w1a_ref, w1b_ref, w2pc_ref, out_ref, *, d, c):
    """One tile of tile_e edges: MLP + predictor + contrastive MI loss.

    hu/hv/rf/nrf : (tile_e, D)   src feat | dst feat | review | permuted review
    w1a/w1b      : (D, D)        first Linear split on the concat axis (transposed)
    w2pc_ref     : (D, WN)       W2.T @ [Wc | Wp.T | 0]  (second Linear folded in)
    out_ref      : (OUT_ROWS, tile_e) lane-dense: rows 0:C = score.T, row C = mi
    """
    f32 = jnp.float32

    # Linear(2D -> D, no bias) as two K=D matmuls (h_u|h_v never concatenated),
    # f32 accumulation on the MXU, then exact-erf GELU on the VPU.
    z = (jnp.dot(hu_ref[...], w1a_ref[...], preferred_element_type=f32) +
         jnp.dot(hv_ref[...], w1b_ref[...], preferred_element_type=f32))
    h = _gelu_exact(z)                                           # (T, D) f32

    # Second Linear fused with [contrast | predictor]:
    #   cols 0:D   -> h_fea @ Wc   (lane-aligned with rf / nrf)
    #   cols D:D+C -> predictor scores
    pc = jnp.dot(h.astype(w2pc_ref.dtype), w2pc_ref[...],
                 preferred_element_type=f32)                     # (T, WN) f32

    # ContrastLoss: (h_fea @ Wc * y).sum(-1) for review and permuted review.
    # Prefix lane slice (no relayout) + VPU multiply + ones-vector matmul
    # (the MXU has plenty of slack here; keeps the XLU free for the transpose).
    xw = pc[:, :d]                                               # (T, D)
    ones_col = jnp.ones((d, 1), f32)
    s_pos = jnp.dot(xw * rf_ref[...].astype(f32), ones_col,
                    preferred_element_type=f32)                  # (T, 1)
    s_neg = jnp.dot(xw * nrf_ref[...].astype(f32), ones_col,
                    preferred_element_type=f32)                  # (T, 1)
    # BCEWithLogits vs label 1 (review) and label 0 (permuted review)
    mi = _softplus(-s_pos) + _softplus(s_neg)                    # (T, 1)

    # Pack mi into lane D+C right next to the scores, transpose ONCE, and store
    # a sublane-dense slab with edges on the 128-lane axis.
    lane = jax.lax.broadcasted_iota(jnp.int32, pc.shape, 1)
    combined = jnp.where(lane == d + c, mi, pc)                  # (T, WN)
    out_t = jnp.transpose(combined)                              # (WN, T), one XLU transpose
    out_ref[...] = out_t[d:d + out_ref.shape[0], :].astype(out_ref.dtype)


def mlp_predictor_mi(h_u, h_v, review_feat, neg_review_feat,
                     w1, w2, wp, wc, *, tile_e=4096,
                     compute_dtype=jnp.float32):
    """
    h_u, h_v          : (E, D)   gathered src / dst node features (glue gather)
    review_feat       : (E, D)
    neg_review_feat   : (E, D)   permuted review_feat (ContrastLoss y_neg branch)
    w1 : (D, 2D)  PyTorch Linear weight (out, in)  -- first layer of `linear`
    w2 : (D, D)   second layer of `linear`
    wp : (C, D)   predictor weight
    wc : (D, D)   ContrastLoss.w (used as x @ w, NOT transposed)
    tile_e        : edges per grid step (clamped to the graph, lane aligned).
                    4096 amortizes per-step overhead; on v5e/v7x keep <= ~4096.
    compute_dtype : jnp.float32 (default) or jnp.bfloat16 (valid on v5e/v6e/v7x:
                    bf16 only feeds the MXU, accumulation and all elementwise
                    math stay in f32).
    returns (score (E, C) f32, mi_score (E,) f32)
    """
    E, D = h_u.shape
    C = wp.shape[0]
    assert D % 8 == 0, "in_units must be sublane aligned"

    # rows of the lane-dense output slab: C scores + 1 mi, rounded to sublanes
    out_rows = max(8, ((C + 1 + 7) // 8) * 8)
    # fused weight width: [Wc | Wp.T | mi slot + pad], rounded to a 128-lane granule
    wn = ((D + out_rows + 127) // 128) * 128

    # clamp the edge tile so small graphs are not padded to a huge tile
    tile_e = max(128, min(tile_e, ((E + 127) // 128) * 128))
    assert tile_e % 128 == 0, "edge tile must be lane aligned"
    n_tiles = (E + tile_e - 1) // tile_e
    e_pad = n_tiles * tile_e

    # ---- weights: fold the second Linear into [contrast | predictor] (f32) ----
    w1a = jnp.transpose(w1[:, :D]).astype(compute_dtype)      # (D, D)
    w1b = jnp.transpose(w1[:, D:]).astype(compute_dtype)      # (D, D)
    pcw = jnp.zeros((D, wn), jnp.float32)
    pcw = pcw.at[:, :D].set(wc)                                # cols 0:D   -> h_fea @ Wc
    pcw = pcw.at[:, D:D + C].set(jnp.transpose(wp))            # cols D:D+C -> scores
    w2pc = (jnp.transpose(w2) @ pcw).astype(compute_dtype)     # fuse in f32, cast last

    # ---- edge streams: 4 separate, HBM-contiguous inputs (no wrapper concat) ----
    def prep(a):
        if e_pad != E:   # pad only when the edge count is not a tile multiple
            a = jnp.pad(a, ((0, e_pad - E), (0, 0)))
        return a.astype(compute_dtype)
    hu, hv, rf, nrf = (prep(a) for a in (h_u, h_v, review_feat, neg_review_feat))

    itemsize = jnp.dtype(compute_dtype).itemsize
    vmem_est = (4 * 2 * tile_e * 128 * itemsize    # 4 double-buffered edge blocks (lane padded)
                + 2 * out_rows * tile_e * 4        # double-buffered output blocks
                + 10 * tile_e * 128 * 4            # in-kernel f32 temporaries
                + (4 << 20))
    vmem_limit = int(min(max(vmem_est, 32 << 20), 100 << 20))

    edge_spec = pl.BlockSpec((tile_e, D), lambda i: (i, 0))
    const = lambda i: (0, 0)   # weights: constant block index -> stay VMEM resident

    out = pl.pallas_call(
        functools.partial(_mlp_mi_kernel, d=D, c=C),
        out_shape=jax.ShapeDtypeStruct((out_rows, e_pad), jnp.float32),
        grid_spec=pltpu.PrefetchScalarGridSpec(
            num_scalar_prefetch=0,
            grid=(n_tiles,),
            in_specs=[edge_spec, edge_spec, edge_spec, edge_spec,
                      pl.BlockSpec((D, D), const),
                      pl.BlockSpec((D, D), const),
                      pl.BlockSpec((D, wn), const)],
            out_specs=pl.BlockSpec((out_rows, tile_e), lambda i: (0, i)),
        ),
        compiler_params=pltpu.CompilerParams(
            dimension_semantics=("parallel",),      # v7x megacore shards edges
            vmem_limit_bytes=vmem_limit),
    )(hu, hv, rf, nrf, w1a, w1b, w2pc)

    score = jnp.transpose(out[:C, :E])   # (E, C)
    mi = out[C, :E]                      # (E,)
    return score, mi


# ---------------------------------------------------------------------------
# deterministic parameter init (xavier_uniform, as in reset_parameters)
# ---------------------------------------------------------------------------
def xavier_uniform(key, shape):
    fan_out, fan_in = shape
    limit = jnp.sqrt(6.0 / (fan_in + fan_out))
    return jax.random.uniform(key, shape, jnp.float32, -limit, limit)


def reference(h_u, h_v, review_feat, neg_review_feat, w1, w2, wp, wc):
    z = jnp.concatenate([h_u, h_v], axis=1) @ w1.T
    h_fea = _gelu_exact(z) @ w2.T
    score = h_fea @ wp.T
    xw = h_fea @ wc
    s_pos = jnp.sum(xw * review_feat, axis=1)
    s_neg = jnp.sum(xw * neg_review_feat, axis=1)
    mi = _softplus(-s_pos) + _softplus(s_neg)
    return score, mi


if __name__ == "__main__":
    key = jax.random.PRNGKey(0)
    D = 32          # in_units
    C = 8           # num_classes
    E = 600         # number of graph edges (not a tile multiple -> exercises padding)
    NU, NM = 6, 7   # number of user / movie nodes

    ks = jax.random.split(key, 10)
    ufeat = jax.random.normal(ks[0], (NU, D), jnp.float32)
    ifeat = jax.random.normal(ks[1], (NM, D), jnp.float32)
    src = jax.random.randint(ks[2], (E,), 0, NU)
    dst = jax.random.randint(ks[3], (E,), 0, NM)
    review_feat = jax.random.normal(ks[4], (E, D), jnp.float32)

    # parameters (xavier_uniform, deterministic)
    w1 = xavier_uniform(ks[5], (D, 2 * D))   # linear[0].weight
    w2 = xavier_uniform(ks[6], (D, D))       # linear[2].weight
    wp = xavier_uniform(ks[7], (C, D))       # predictor.weight
    wc = xavier_uniform(ks[8], (D, D))       # contrast_loss.w

    # TODO(synk): the DGL graph gather (edges.src/dst['h']) and torch.randperm
    # negative sampling stay outside the kernel as host-side glue.
    h_u = ufeat[src]
    h_v = ifeat[dst]
    perm = jax.random.permutation(ks[9], E)
    neg_review_feat = review_feat[perm]

    ref_score, ref_mi = reference(h_u, h_v, review_feat, neg_review_feat,
                                  w1, w2, wp, wc)

    # Multi-tile grid + edge-padding path (E=600 is not a multiple of 256).
    score, mi_score = mlp_predictor_mi(h_u, h_v, review_feat, neg_review_feat,
                                       w1, w2, wp, wc, tile_e=256)
    jax.block_until_ready((score, mi_score))
    assert score.shape == (E, C) and mi_score.shape == (E,)
    assert jnp.allclose(score, ref_score, rtol=1e-4, atol=1e-4)
    assert jnp.allclose(mi_score, ref_mi, rtol=1e-4, atol=1e-4)

    # Default (large tile, clamped to the graph) path.
    score2, mi2 = mlp_predictor_mi(h_u, h_v, review_feat, neg_review_feat,
                                   w1, w2, wp, wc)
    jax.block_until_ready((score2, mi2))
    assert jnp.allclose(score2, ref_score, rtol=1e-4, atol=1e-4)
    assert jnp.allclose(mi2, ref_mi, rtol=1e-4, atol=1e-4)

    print("KERNEL_OK")
</pallas_src>

<mosaic_0001>
module attributes {stable_mosaic.version = 11 : i64} {
  func.func @_mlp_mi_kernel(%arg0: i32, %arg1: memref<256x32xf32, #tpu.memory_space<vmem>>, %arg2: memref<256x32xf32, #tpu.memory_space<vmem>>, %arg3: memref<256x32xf32, #tpu.memory_space<vmem>>, %arg4: memref<256x32xf32, #tpu.memory_space<vmem>>, %arg5: memref<32x32xf32, #tpu.memory_space<vmem>>, %arg6: memref<32x32xf32, #tpu.memory_space<vmem>>, %arg7: memref<32x128xf32, #tpu.memory_space<vmem>>, %arg8: memref<16x256xf32, #tpu.memory_space<vmem>>) attributes {dimension_semantics = [#tpu.dimension_semantics<parallel>], iteration_bounds = array<i64: 3>, scalar_prefetch = 0 : i64, scratch_operands = 0 : i64, tpu.core_type = #tpu.core_type<tc>, window_params = [{transform_indices = @transform_0, window_bounds = array<i64: 256, 32>}, {transform_indices = @transform_1, window_bounds = array<i64: 256, 32>}, {transform_indices = @transform_2, window_bounds = array<i64: 256, 32>}, {transform_indices = @transform_3, window_bounds = array<i64: 256, 32>}, {pipeline_mode = #tpu.pipeline_mode<synchronous>, transform_indices = @transform_4, window_bounds = array<i64: 32, 32>}, {pipeline_mode = #tpu.pipeline_mode<synchronous>, transform_indices = @transform_5, window_bounds = array<i64: 32, 32>}, {pipeline_mode = #tpu.pipeline_mode<synchronous>, transform_indices = @transform_6, window_bounds = array<i64: 32, 128>}, {transform_indices = @transform_7, window_bounds = array<i64: 16, 256>}]} {
    %c0 = arith.constant 0 : index
    %c0_0 = arith.constant 0 : index
    %0 = vector.load %arg1[%c0, %c0_0] : memref<256x32xf32, #tpu.memory_space<vmem>>, vector<256x32xf32>
    %c0_1 = arith.constant 0 : index
    %c0_2 = arith.constant 0 : index
    %1 = vector.load %arg5[%c0_1, %c0_2] : memref<32x32xf32, #tpu.memory_space<vmem>>, vector<32x32xf32>
    %cst = arith.constant dense<0.000000e+00> : vector<256x32xf32>
    %2 = tpu.matmul %0, %1, %cst {dimension_numbers = #tpu.dot_dimension_numbers<[1], [0], [0], [1], [0, 0, 1, 1], [], []>} : vector<256x32xf32>, vector<32x32xf32>, vector<256x32xf32> -> vector<256x32xf32>
    %c0_3 = arith.constant 0 : index
    %c0_4 = arith.constant 0 : index
    %3 = vector.load %arg2[%c0_3, %c0_4] : memref<256x32xf32, #tpu.memory_space<vmem>>, vector<256x32xf32>
    %c0_5 = arith.constant 0 : index
    %c0_6 = arith.constant 0 : index
    %4 = vector.load %arg6[%c0_5, %c0_6] : memref<32x32xf32, #tpu.memory_space<vmem>>, vector<32x32xf32>
    %cst_7 = arith.constant dense<0.000000e+00> : vector<256x32xf32>
    %5 = tpu.matmul %3, %4, %cst_7 {dimension_numbers = #tpu.dot_dimension_numbers<[1], [0], [0], [1], [0, 0, 1, 1], [], []>} : vector<256x32xf32>, vector<32x32xf32>, vector<256x32xf32> -> vector<256x32xf32>
    %6 = arith.addf %2, %5 : vector<256x32xf32>
    %cst_8 = arith.constant 5.000000e-01 : f32
    %7 = vector.broadcast %cst_8 : f32 to vector<256x32xf32>
    %8 = arith.mulf %7, %6 : vector<256x32xf32>
    %cst_9 = arith.constant 0.707106769 : f32
    %9 = vector.broadcast %cst_9 : f32 to vector<256x32xf32>
    %10 = arith.mulf %6, %9 : vector<256x32xf32>
    %11 = math.erf %10 : vector<256x32xf32>
    %cst_10 = arith.constant 1.000000e+00 : f32
    %12 = vector.broadcast %cst_10 : f32 to vector<256x32xf32>
    %13 = arith.addf %12, %11 : vector<256x32xf32>
    %14 = arith.mulf %8, %13 : vector<256x32xf32>
    %c0_11 = arith.constant 0 : index
    %c0_12 = arith.constant 0 : index
    %15 = vector.load %arg7[%c0_11, %c0_12] : memref<32x128xf32, #tpu.memory_space<vmem>>, vector<32x128xf32>
    %cst_13 = arith.constant dense<0.000000e+00> : vector<256x128xf32>
    %16 = tpu.matmul %14, %15, %cst_13 {dimension_numbers = #tpu.dot_dimension_numbers<[1], [0], [0], [1], [0, 0, 1, 1], [], []>} : vector<256x32xf32>, vector<32x128xf32>, vector<256x128xf32> -> vector<256x128xf32>
    %17 = vector.extract_strided_slice %16 {offsets = [0, 0], sizes = [256, 32], strides = [1, 1]} : vector<256x128xf32> to vector<256x32xf32>
    %cst_14 = arith.constant 1.000000e+00 : f32
    %18 = vector.broadcast %cst_14 : f32 to vector<32x1xf32>
    %c0_15 = arith.constant 0 : index
    %c0_16 = arith.constant 0 : index
    %19 = vector.load %arg3[%c0_15, %c0_16] : memref<256x32xf32, #tpu.memory_space<vmem>>, vector<256x32xf32>
    %20 = arith.mulf %17, %19 : vector<256x32xf32>
    %cst_17 = arith.constant dense<0.000000e+00> : vector<256x1xf32>
    %21 = tpu.matmul %20, %18, %cst_17 {dimension_numbers = #tpu.dot_dimension_numbers<[1], [0], [0], [1], [0, 0, 1, 1], [], []>} : vector<256x32xf32>, vector<32x1xf32>, vector<256x1xf32> -> vector<256x1xf32>
    %c0_18 = arith.constant 0 : index
    %c0_19 = arith.constant 0 : index
    %22 = vector.load %arg4[%c0_18, %c0_19] : memref<256x32xf32, #tpu.memory_space<vmem>>, vector<256x32xf32>
    %23 = arith.mulf %17, %22 : vector<256x32xf32>
    %cst_20 = arith.constant dense<0.000000e+00> : vector<256x1xf32>
    %24 = tpu.matmul %23, %18, %cst_20 {dimension_numbers = #tpu.dot_dimension_numbers<[1], [0], [0], [1], [0, 0, 1, 1], [], []>} : vector<256x32xf32>, vector<32x1xf32>, vector<256x1xf32> -> vector<256x1xf32>
    %cst_21 = arith.constant 0.000000e+00 : f32
    %25 = vector.broadcast %cst_21 : f32 to vector<256x1xf32>
    %26 = arith.subf %25, %21 : vector<256x1xf32>
    %cst_22 = arith.constant 0.000000e+00 : f32
    %27 = vector.broadcast %cst_22 : f32 to vector<256x1xf32>
    %28 = arith.maximumf %26, %27 : vector<256x1xf32>
    %29 = math.absf %26 : vector<256x1xf32>
    %cst_23 = arith.constant 0.000000e+00 : f32
    %30 = vector.broadcast %cst_23 : f32 to vector<256x1xf32>
    %31 = arith.subf %30, %29 : vector<256x1xf32>
    %32 = math.exp %31 : vector<256x1xf32>
    %33 = math.log1p %32 : vector<256x1xf32>
    %34 = arith.addf %28, %33 : vector<256x1xf32>
    %cst_24 = arith.constant 0.000000e+00 : f32
    %35 = vector.broadcast %cst_24 : f32 to vector<256x1xf32>
    %36 = arith.maximumf %24, %35 : vector<256x1xf32>
    %37 = math.absf %24 : vector<256x1xf32>
    %cst_25 = arith.constant 0.000000e+00 : f32
    %38 = vector.broadcast %cst_25 : f32 to vector<256x1xf32>
    %39 = arith.subf %38, %37 : vector<256x1xf32>
    %40 = math.exp %39 : vector<256x1xf32>
    %41 = math.log1p %40 : vector<256x1xf32>
    %42 = arith.addf %36, %41 : vector<256x1xf32>
    %43 = arith.addf %34, %42 : vector<256x1xf32>
    %44 = tpu.iota {dimensions = array<i32: 1>} : vector<256x128xi32>
    %c40_i32 = arith.constant 40 : i32
    %45 = vector.broadcast %c40_i32 : i32 to vector<256x128xi32>
    %46 = arith.cmpi eq, %44, %45 : vector<256x128xi32>
    %47 = vector.shape_cast %43 : vector<256x1xf32> to vector<256x1xf32>
    %48 = vector.broadcast %47 : vector<256x1xf32> to vector<256x128xf32>
    %49 = arith.select %46, %48, %16 : vector<256x128xi1>, vector<256x128xf32>
    %50 = tpu.transpose %49, [1, 0] : vector<256x128xf32> -> vector<128x256xf32>
    %51 = vector.extract_strided_slice %50 {offsets = [32, 0], sizes = [16, 256], strides = [1, 1]} : vector<128x256xf32> to vector<16x256xf32>
    %c0_26 = arith.constant 0 : index
    %c0_27 = arith.constant 0 : index
    %52 = vector.load %arg8[%c0_26, %c0_27] : memref<16x256xf32, #tpu.memory_space<vmem>>, vector<16x256xf32>
    tpu.vector_store %arg8[%c0_26, %c0_27], %51 {strides = array<i32>} : memref<16x256xf32, #tpu.memory_space<vmem>>, vector<16x256xf32>,
    return
  }
  func.func @transform_0(%arg0: i32) -> (i32, i32) {
    %c0_i32 = arith.constant 0 : i32
    %c0_i32_0 = arith.constant 0 : i32
    return %arg0, %c0_i32 : i32, i32
  }
  func.func @transform_1(%arg0: i32) -> (i32, i32) {
    %c0_i32 = arith.constant 0 : i32
    %c0_i32_0 = arith.constant 0 : i32
    return %arg0, %c0_i32 : i32, i32
  }
  func.func @transform_2(%arg0: i32) -> (i32, i32) {
    %c0_i32 = arith.constant 0 : i32
    %c0_i32_0 = arith.constant 0 : i32
    return %arg0, %c0_i32 : i32, i32
  }
  func.func @transform_3(%arg0: i32) -> (i32, i32) {
    %c0_i32 = arith.constant 0 : i32
    %c0_i32_0 = arith.constant 0 : i32
    return %arg0, %c0_i32 : i32, i32
  }
  func.func @transform_4(%arg0: i32) -> (i32, i32) {
    %c0_i32 = arith.constant 0 : i32
    %c0_i32_0 = arith.constant 0 : i32
    %c0_i32_1 = arith.constant 0 : i32
    return %c0_i32, %c0_i32_0 : i32, i32
  }
  func.func @transform_5(%arg0: i32) -> (i32, i32) {
    %c0_i32 = arith.constant 0 : i32
    %c0_i32_0 = arith.constant 0 : i32
    %c0_i32_1 = arith.constant 0 : i32
    return %c0_i32, %c0_i32_0 : i32, i32
  }
  func.func @transform_6(%arg0: i32) -> (i32, i32) {
    %c0_i32 = arith.constant 0 : i32
    %c0_i32_0 = arith.constant 0 : i32
    %c0_i32_1 = arith.constant 0 : i32
    return %c0_i32, %c0_i32_0 : i32, i32
  }
  func.func @transform_7(%arg0: i32) -> (i32, i32) {
    %c0_i32 = arith.constant 0 : i32
    %c0_i32_0 = arith.constant 0 : i32
    return %c0_i32, %arg0 : i32, i32
  }
}

</mosaic_0001>

<bundles_post_ra>
// kernel: tpu_custom_call.1
= control target key start
LH: loop header
LB: loop body
LE: loop exit
PB: predicated region body
PF: predicated region fallthrough
CT: control target
= control target key end

     0   :  { %12 = vsyncpa [#allocation3], 0  ;;  %s7804_s0 = inlined_call_operand.vmem [shape: f32[768,32], index: 0, kind: input, shape index: {}]   ;;  %s7805_s1 = inlined_call_operand.vmem [shape: f32[768,32], index: 1, kind: input, shape index: {}]   ;;  %s7806_s2 = inlined_call_operand.vmem [shape: f32[768,32], index: 2, kind: input, shape index: {}]   ;;  %s7807_s3 = inlined_call_operand.vmem [shape: f32[768,32], index: 3, kind: input, shape index: {}]   ;;  %s7808_s4 = inlined_call_operand.vmem [shape: f32[32,32], index: 4, kind: input, shape index: {}]   ;;  %s7809_s5 = inlined_call_operand.vmem [shape: f32[32,32], index: 5, kind: input, shape index: {}]   ;;  %s7810_s6 = inlined_call_operand.vmem [shape: f32[32,128], index: 6, kind: input, shape index: {}]   ;;  %s7811_s7 = inlined_call_operand.hbm [shape: f32[16,768], index: 7, kind: output, shape index: {}]  }
   0x1   :  { %14 = vsyncpa [#allocation3 + $0x1], 0  ;;  %s5104_s24 = smov 0   ;;  %s5106_s25 = smov 0  }
   0x2   :  { %s5108_s26 = smov 0   ;;  %s5110_s27 = smov 0  }
   0x3 LB: > { %s5125_s28 = sadd.s32 4294967295, %s5057_s27   ;;  %s4405_s29 = sadd.s32 4294967294, %s5057_s27   ;;  %s5057_s27 = sphi %s5110_s27, %s8003_s27   ;;  %s5053_s26 = sphi %s5108_s26, %s8002_s26   ;;  %s5049_s25 = sphi %s5106_s25, %s8001_s25   ;;  %s5045_s24 = sphi %s5104_s24, %s8000_s24  }
   0x4   : > { %s5129_s30 = sadd.s32 1, %s5057_s27   ;;  %s194_s8 = sadd.s32 1, %s5053_s26 }
   0x5   : > { %s191_s9 = ssub.s32 %s5057_s27, %s5129_s30  ;;  %p204_p0 = scmp.ne.s32.totalorder %s5053_s26, %s5049_s25 }
   0x6   : > { %p192_p1 = scmp.eq.s32.totalorder %s191_s9, 0  ;;  %p205_p2 = scmp.eq.s32.totalorder %s5125_s28, 2 }
   0x7   : > { %p210_p3 = scmp.ne.s32.totalorder %s5049_s25, %s5045_s24  ;;  %p211_p4 = scmp.eq.s32.totalorder %s4405_s29, 2 }
   0x8   : > { %s5140_s10 = scalar_select %p192_p1, %s5053_s26, %s194_s8  }
   0x9   : > { %p5142_p5 = por %p205_p2, %p204_p0  ;;  %p5146_p6 = por %p211_p4, %p210_p3 }
   0xa   : > { %p4408_p7 = scmp.ge.s32.totalorder %s5057_s27, 1  ;;  %p274_p8 = scmp.lt.s32.totalorder %s5057_s27, 4 }
   0xc   : > { %p275_p9 = pnand %p4408_p7, %p274_p8 }
   0xe   : > { %278 = sbr.rel (%p275_p9) target bundleno = 1140 (0x474), region = 48 }
  0x13   : > { %v417_v0 = vld [vmem:[%s7809_s5 + $0x18] sm:$0xff]  ;;  %v416_v1 = vld [vmem:[%s7809_s5 + $0x10] sm:$0xff]  ;;  %s4410_s17 = sshll.u32 %s5125_s28, 5  ;;  %v415_v2 = vld [vmem:[%s7809_s5 + $0x8] sm:$0xff]  ;;  %vm418_vm0 = vcmask 261120   ;;  %s4615_s14 = sshll.u32 %s5125_s28, 4 }
  0x14   : > { %4616 = vmatpush.msra.mxu1 %v417_v0  ;;  %p322_p10 = scmp.lt.s32.totalorder %s4410_s17, 95  ;;  %527 = vmatpush.msra.mxu0 %v417_v0  ;;  %v414_v3 = vld [vmem:[%s7809_s5] sm:$0xff]  ;;  %v381_v4 = vld [vmem:[%s7808_s4 + $0x18] sm:$0xff]  ;;  %v380_v6 = vld [vmem:[%s7808_s4 + $0x10] sm:$0xff] }
  0x15   : > { %4617 = vmatpush.msra.mxu2 %v417_v0  ;;  %4618 = vmatpush.msra.mxu3 %v417_v0  ;;  %v379_v7 = vld [vmem:[%s7808_s4 + $0x8] sm:$0xff]  ;;  %v378_v10 = vld [vmem:[%s7808_s4] sm:$0xff]  ;;  %v2248_v39 = vld [vmem:[%s7810_s6 + $0x18] sm:$0xff] }
  0x16   : > { %4619 = vmatpush.msra.mxu1 %v416_v1  ;;  %s8005_s17 = smov (!%p322_p10, %s4410_s17), 95  ;;  %528 = vmatpush.msra.mxu0 %v416_v1 }
  0x17   : > { %4620 = vmatpush.msra.mxu2 %v416_v1  ;;  %4621 = vmatpush.msra.mxu3 %v416_v1  ;;  %s5165_s22 = sshll.u32 %s8005_s17, 3  ;;  %s4303_s17 = scalar_lea.hbm %s7811_s7, %s4615_s14 }
  0x18   : > { %4622 = vmatpush.msra.mxu1 %v415_v2  ;;  %529 = vmatpush.msra.mxu0 %v415_v2  ;;  %s5171_s8 = scalar_lea.vmem %s7805_s1, %s5165_s22  ;;  %s5215_s23 = scalar_lea.vmem %s7804_s0, %s5165_s22 }
  0x19   : > { %4623 = vmatpush.msra.mxu2 %v415_v2  ;;  %4624 = vmatpush.msra.mxu3 %v415_v2  ;;  %v390_v5 = vld [vmem:[%s5171_s8 + $0x40] sm:$0xff]  ;;  %v391_v8 = vld [vmem:[%s5171_s8 + $0x48] sm:$0xff]  ;;  %v392_v9 = vld [vmem:[%s5171_s8 + $0x50] sm:$0xff]  ;;  %s6262_s20 = scalar_lea.vmem %s7806_s2, %s5165_s22  ;;  %s6289_s29 = scalar_lea.vmem %s7807_s3, %s5165_s22 }
  0x1a   : > { %4625 = vmatpush.msra.mxu1 %v414_v3  ;;  %530 = vmatpush.msra.mxu0 %v414_v3  ;;  %v393_v11 = vld [vmem:[%s5171_s8 + $0x58] sm:$0xff]  ;;  %v382_v12 = vld [vmem:[%s5171_s8] sm:$0xff]  ;;  %v383_v14 = vld [vmem:[%s5171_s8 + $0x8] sm:$0xff]  ;;  %s318_s22 = sand.u32 1, %s5049_s25  }
  0x1b   : > { %4426 = vmatmul.msk.f32.vlgmr.msra.gmra.mxu1 %vm418_vm0, %v390_v5  ;;  %4626 = vmatpush.msra.mxu2 %v414_v3  ;;  %v394_v13 = vld [vmem:[%s5171_s8 + $0x60] sm:$0xff]  ;;  %v395_v15 = vld [vmem:[%s5171_s8 + $0x68] sm:$0xff]  ;;  %v384_v16 = vld [vmem:[%s5171_s8 + $0x10] sm:$0xff]  ;;  %s4409_s9 = sshll.u32 %s318_s22, 5  ;;  %s4292_s19 = scalar_lea.sflag [#allocation3], %s318_s22 }
  0x1c   : > { %736 = vmatpush.msrb.mxu1 %v381_v4  ;;  %4627 = vmatpush.msra.mxu3 %v414_v3  ;;  %v396_v17 = vld [vmem:[%s5171_s8 + $0x70] sm:$0xff]  ;;  %v385_v18 = vld [vmem:[%s5171_s8 + $0x18] sm:$0xff]  ;;  %v386_v20 = vld [vmem:[%s5171_s8 + $0x20] sm:$0xff]  ;;  %s320_s13 = scalar_lea.vmem [#allocation2], %s4409_s9 }
  0x1d   : > { %4418 = vmatmul.msk.f32.vlgmr.msra.gmra.mxu0 %vm418_vm0, %v382_v12  ;;  %v397_v19 = vld [vmem:[%s5171_s8 + $0x78] sm:$0xff]  ;;  %v346_v21 = vld [vmem:[%s5215_s23] sm:$0xff]  ;;  %v387_v22 = vld [vmem:[%s5171_s8 + $0x28] sm:$0xff]  ;;  %2357 = vmatpush.msrb.mxu2 %v2248_v39  ;;  %s4304_s18 = sshll.u32 %s320_s13, 4  ;;  %s4305_s18 = int_to_ptr.vmem [resolvable:$true] %s4304_s18 }
  0x1e   : > { %737 = vmatpush.msrb.mxu1 %v380_v6  ;;  %v347_v23 = vld [vmem:[%s5215_s23 + $0x8] sm:$0xff]  ;;  %v388_v24 = vld [vmem:[%s5171_s8 + $0x30] sm:$0xff]  ;;  %v389_v26 = vld [vmem:[%s5171_s8 + $0x38] sm:$0xff] }
  0x1f   : > { %v348_v25 = vld [vmem:[%s5215_s23 + $0x10] sm:$0xff]  ;;  %v349_v27 = vld [vmem:[%s5215_s23 + $0x18] sm:$0xff]  ;;  %v350_v28 = vld [vmem:[%s5215_s23 + $0x20] sm:$0xff] }
  0x20   : > { %738 = vmatpush.msrb.mxu1 %v379_v7  ;;  %v351_v29 = vld [vmem:[%s5215_s23 + $0x28] sm:$0xff]  ;;  %v352_v30 = vld [vmem:[%s5215_s23 + $0x30] sm:$0xff]  ;;  %v353_v31 = vld [vmem:[%s5215_s23 + $0x38] sm:$0xff] }
  0x21   : > { %v354_v33 = vld [vmem:[%s5215_s23 + $0x40] sm:$0xff]  ;;  %v355_v35 = vld [vmem:[%s5215_s23 + $0x48] sm:$0xff]  ;;  %v356_v37 = vld [vmem:[%s5215_s23 + $0x50] sm:$0xff] }
  0x22   : > { %739 = vmatpush.msrb.mxu1 %v378_v10  ;;  %v398_v38 = vld [vmem:[%s5171_s8 + $0x80] sm:$0xff]  ;;  %v357_v41 = vld [vmem:[%s5215_s23 + $0x58] sm:$0xff]  ;;  %v399_v42 = vld [vmem:[%s5171_s8 + $0x88] sm:$0xff] }
  0x23   : > { %4427 = vmatmul.msk.f32.gmra.mxu1 %vm418_vm0, %v391_v8  ;;  %4434 = vmatmul.msk.f32.vlgmr.msra.gmra.mxu2 %vm418_vm0, %v398_v38  ;;  %v358_v44 = vld [vmem:[%s5215_s23 + $0x60] sm:$0xff]  ;;  %v400_v45 = vld [vmem:[%s5171_s8 + $0x90] sm:$0xff]  ;;  %v359_v47 = vld [vmem:[%s5215_s23 + $0x68] sm:$0xff] }
  0x24   : > { %v401_v48 = vld [vmem:[%s5171_s8 + $0x98] sm:$0xff]  ;;  %v360_v50 = vld [vmem:[%s5215_s23 + $0x70] sm:$0xff]  ;;  %v402_v52 = vld [vmem:[%s5171_s8 + $0xa0] sm:$0xff] }
  0x25   : > { %4419 = vmatmul.msk.f32.gmra.mxu0 %vm418_vm0, %v383_v14  ;;  %v361_v54 = vld [vmem:[%s5215_s23 + $0x78] sm:$0xff]  ;;  %v403_v56 = vld [vmem:[%s5171_s8 + $0xa8] sm:$0xff]  ;;  %v362_v58 = vld [vmem:[%s5215_s23 + $0x80] sm:$0xff] }
  0x26   : > { %v404_v0 = vld [vmem:[%s5171_s8 + $0xb0] sm:$0xff]  ;;  %v363_v2 = vld [vmem:[%s5215_s23 + $0x88] sm:$0xff] }
  0x2b   : > { %4428 = vmatmul.msk.f32.gmra.mxu1 %vm418_vm0, %v392_v9  ;;  %4435 = vmatmul.msk.f32.gmra.mxu2 %vm418_vm0, %v399_v42 }
  0x2d   : > { %4420 = vmatmul.msk.f32.gmra.mxu0 %vm418_vm0, %v384_v16 }
  0x33   : > { %4429 = vmatmul.msk.f32.gmra.mxu1 %vm418_vm0, %v393_v11  ;;  %4436 = vmatmul.msk.f32.gmra.mxu2 %vm418_vm0, %v400_v45  ;;  %v365_v45 = vld [vmem:[%s5215_s23 + $0x98] sm:$0xff] }
  0x35   : > { %4421 = vmatmul.msk.f32.gmra.mxu0 %vm418_vm0, %v385_v18  ;;  %v364_v18 = vld [vmem:[%s5215_s23 + $0x90] sm:$0xff] }
  0x3b   : > { %4430 = vmatmul.msk.f32.gmra.mxu1 %vm418_vm0, %v394_v13  ;;  %4437 = vmatmul.msk.f32.gmra.mxu2 %vm418_vm0, %v401_v48 }
  0x3d   : > { %4422 = vmatmul.msk.f32.gmra.mxu0 %vm418_vm0, %v386_v20 }
  0x43   : > { %4431 = vmatmul.msk.f32.gmra.mxu1 %vm418_vm0, %v395_v15  ;;  %4438 = vmatmul.msk.f32.gmra.mxu2 %vm418_vm0, %v402_v52  ;;  %v405_v15 = vld [vmem:[%s5171_s8 + $0xb8] sm:$0xff] }
  0x45   : > { %4423 = vmatmul.msk.f32.gmra.mxu0 %vm418_vm0, %v387_v22 }
  0x4b   : > { %4432 = vmatmul.msk.f32.gmra.mxu1 %vm418_vm0, %v396_v17  ;;  %4439 = vmatmul.msk.f32.gmra.mxu2 %vm418_vm0, %v403_v56 }
  0x4d   : > { %4424 = vmatmul.msk.f32.gmra.mxu0 %vm418_vm0, %v388_v24 }
  0x53   : > { %4433 = vmatmul.msk.f32.gmra.mxu1 %vm418_vm0, %v397_v19  ;;  %4440 = vmatmul.msk.f32.gmra.mxu2 %vm418_vm0, %v404_v0 }
  0x55   : > { %4425 = vmatmul.msk.f32.gmra.mxu0 %vm418_vm0, %v389_v26  ;;  %v2246_v26 = vld [vmem:[%s7810_s6 + $0x8] sm:$0xff] }
  0x5b   : > { %4450 = vmatmul.msk.f32.vlgmr.msrb.gmra.mxu1 %vm418_vm0, %v346_v21  ;;  %4441 = vmatmul.msk.f32.gmra.mxu2 %vm418_vm0, %v405_v15  ;;  %v2247_v21 = vld [vmem:[%s7810_s6 + $0x10] sm:$0xff] }
  0x5c   : > { %2358 = vmatpush.msrb.mxu2 %v2247_v21 }
  0x5e   : > { %2359 = vmatpush.msrb.mxu2 %v2246_v26 }
  0x63   : > { %4451 = vmatmul.msk.f32.gmra.mxu1 %vm418_vm0, %v347_v23 }
  0x6b   : > { %4452 = vmatmul.msk.f32.gmra.mxu1 %vm418_vm0, %v348_v25 }
  0x73   : > { %4453 = vmatmul.msk.f32.gmra.mxu1 %vm418_vm0, %v349_v27 }
  0x7b   : > { %4454 = vmatmul.msk.f32.gmra.mxu1 %vm418_vm0, %v350_v28 }
  0x83   : > { %4455 = vmatmul.msk.f32.gmra.mxu1 %vm418_vm0, %v351_v29 }
  0x8b   : > { %4456 = vmatmul.msk.f32.gmra.mxu1 %vm418_vm0, %v352_v30 }
  0x93   : > { %4457 = vmatmul.msk.f32.gmra.mxu1 %vm418_vm0, %v353_v31 }
  0x98   : > { %v5239_v32 = vpop.f32.mrf.mxu1 }
  0x9a   : > { %v532_v51 = vpop.f32.mrf.mxu0 }
  0x9b   : > { %4458 = vmatmul.msk.f32.gmra.mxu1 %vm418_vm0, %v354_v33 }
  0xa0   : > { %v5243_v34 = vpop.f32.mrf.mxu1 }
  0xa2   : > { %v535_v55 = vpop.f32.mrf.mxu0 }
  0xa3   : > { %4459 = vmatmul.msk.f32.gmra.mxu1 %vm418_vm0, %v355_v35 }
  0xa8   : > { %v5247_v36 = vpop.f32.mrf.mxu1 }
  0xaa   : > { %v538_v61 = vpop.f32.mrf.mxu0 }
  0xab   : > { %4460 = vmatmul.msk.f32.gmra.mxu1 %vm418_vm0, %v356_v37  ;;  %v2245_v37 = vld [vmem:[%s7810_s6] sm:$0xff] }
  0xac   : > { %2360 = vmatpush.msrb.mxu2 %v2245_v37 }
  0xb0   : > { %v5256_v40 = vpop.f32.mrf.mxu1 }
  0xb2   : > { %v541_v12 = vpop.f32.mrf.mxu0 }
  0xb3   : > { %4461 = vmatmul.msk.f32.gmra.mxu1 %vm418_vm0, %v357_v41 }
  0xb8   : > { %v5262_v43 = vpop.f32.mrf.mxu1 }
  0xbb   : > { %4462 = vmatmul.msk.f32.gmra.mxu1 %vm418_vm0, %v358_v44 }
  0xc0   : > { %v5268_v46 = vpop.f32.mrf.mxu1 }
  0xc3   : > { %4463 = vmatmul.msk.f32.gmra.mxu1 %vm418_vm0, %v359_v47  ;;  %v544_v47 = vpop.f32.mrf.mxu0 }
  0xc8   : > { %v5274_v49 = vpop.f32.mrf.mxu1 }
  0xcb   : > { %4464 = vmatmul.msk.f32.gmra.mxu1 %vm418_vm0, %v360_v50 }
  0xd0   : > { %v5280_v53 = vpop.f32.mrf.mxu1 }
  0xd3   : > { %4465 = vmatmul.msk.f32.gmra.mxu1 %vm418_vm0, %v361_v54 }
  0xd8   : > { %v741_v57 = vpop.f32.mrf.mxu1 }
  0xd9   : > { %v5287_v59 = vadd.f32 %v741_v57, %v532_v51 }
  0xdb   : > { %v5290_v60 = vmul.f32 0.70710677, %v5287_v59  ;;  %4466 = vmatmul.msk.f32.gmra.mxu1 %vm418_vm0, %v362_v58 }
  0xdd   : > { %v901_v62 = vmul.f32 %v5290_v60, %v5290_v60 }
  0xdf   : > { %v5295_v63 = vmin.f32 %v901_v62, 16.0 }
  0xe0   : > { %v744_v1 = vpop.f32.mrf.mxu1 }
  0xe1   : > { %v903_v3 = vmul.f32 2.1237322e-06, %v5295_v63  ;;  %v914_v4 = vmul.f32 3.8918573e-05, %v5295_v63  ;;  %v5302_v5 = vadd.f32 %v744_v1, %v535_v55 }
  0xe3   : > { %v904_v6 = vadd.f32 0.00028619796, %v903_v3  ;;  %v915_v7 = vadd.f32 0.001143296, %v914_v4  ;;  %4467 = vmatmul.msk.f32.gmra.mxu1 %vm418_vm0, %v363_v2  ;;  %v5306_v8 = vmul.f32 0.70710677, %v5302_v5 }
  0xe4   : > { %v406_v2 = vld [vmem:[%s5171_s8 + $0xc0] sm:$0xff] }
  0xe5   : > { %v905_v9 = vmul.f32 %v904_v6, %v5295_v63  ;;  %v916_v10 = vmul.f32 %v915_v7, %v5295_v63  ;;  %v941_v11 = vmul.f32 %v5306_v8, %v5306_v8  ;;  %4442 = vmatmul.msk.f32.vlgmr.msra.gmra.mxu3 %vm418_vm0, %v406_v2 }
  0xe7   : > { %v906_v13 = vadd.f32 0.0036580483, %v905_v9  ;;  %v917_v14 = vadd.f32 0.014752088, %v916_v10  ;;  %v5313_v16 = vmin.f32 %v941_v11, 16.0  ;;  %v366_v11 = vld [vmem:[%s5215_s23 + $0xa0] sm:$0xff] }
  0xe8   : > { %v747_v17 = vpop.f32.mrf.mxu1 }
  0xe9   : > { %v907_v19 = vmul.f32 %v906_v13, %v5295_v63  ;;  %v918_v20 = vmul.f32 %v917_v14, %v5295_v63  ;;  %v5322_v22 = vadd.f32 %v747_v17, %v538_v61  ;;  %v943_v23 = vmul.f32 2.1237322e-06, %v5313_v16  ;;  %v547_v17 = vpop.f32.mrf.mxu0 }
  0xea   : > { %v954_v24 = vmul.f32 3.8918573e-05, %v5313_v16 }
  0xeb   : > { %v919_v25 = vadd.f32 0.112945676, %v918_v20  ;;  %4468 = vmatmul.msk.f32.gmra.mxu1 %vm418_vm0, %v364_v18  ;;  %v944_v27 = vadd.f32 0.00028619796, %v943_v23  ;;  %v5331_v28 = vmul.f32 0.70710677, %v5322_v22 }
  0xec   : > { %v908_v29 = vadd.f32 0.05243302, %v907_v19  ;;  %v955_v31 = vadd.f32 0.001143296, %v954_v24 }
  0xed   : > { %v920_v30 = vmul.f32 %v919_v25, %v5295_v63  ;;  %v945_v33 = vmul.f32 %v944_v27, %v5313_v16  ;;  %v981_v35 = vmul.f32 %v5331_v28, %v5331_v28 }
  0xee   : > { %v956_v39 = vmul.f32 %v955_v31, %v5313_v16  ;;  %v909_v48 = vmul.f32 %v908_v29, %v5295_v63 }
  0xef   : > { %v921_v38 = vadd.f32 0.4994258, %v920_v30  ;;  %v946_v41 = vadd.f32 0.0036580483, %v945_v33  ;;  %v5341_v42 = vmin.f32 %v981_v35, 16.0 }
  0xf0   : > { %v750_v44 = vpop.f32.mrf.mxu1  ;;  %v957_v52 = vadd.f32 0.014752088, %v956_v39  ;;  %v910_v0 = vadd.f32 0.18741608, %v909_v48 }
  0xf1   : > { %v922_v50 = vmul.f32 %v921_v38, %v5295_v63  ;;  %v5346_v51 = vadd.f32 %v750_v44, %v541_v12  ;;  %v983_v54 = vmul.f32 2.1237322e-06, %v5341_v42  ;;  %v994_v57 = vmul.f32 3.8918573e-05, %v5341_v42 }
  0xf2   : > { %v947_v58 = vmul.f32 %v946_v41, %v5313_v16  ;;  %v958_v62 = vmul.f32 %v957_v52, %v5313_v16  ;;  %v911_v12 = vmul.f32 %v910_v0, %v5295_v63 }
  0xf3   : > { %v5349_v55 = vadd.f32 1.0, %v922_v50  ;;  %v5352_v56 = vmul.f32 0.70710677, %v5346_v51  ;;  %4469 = vmatmul.msk.f32.gmra.mxu1 %vm418_vm0, %v365_v45  ;;  %v984_v61 = vadd.f32 0.00028619796, %v983_v54  ;;  %v367_v50 = vld [vmem:[%s5215_s23 + $0xa8] sm:$0xff] }
  0xf4   : > { %v959_v3 = vadd.f32 0.112945676, %v958_v62  ;;  %v995_v4 = vadd.f32 0.001143296, %v994_v57  ;;  %v948_v6 = vadd.f32 0.05243302, %v947_v58 }
  0xf5   : > { %4675 = vrcp.f32 %v5349_v55  ;;  %v1021_v1 = vmul.f32 %v5352_v56, %v5352_v56  ;;  %v985_v7 = vmul.f32 %v984_v61, %v5341_v42  ;;  %v912_v26 = vadd.f32 1.1283791, %v911_v12 }
  0xf6   : > { %v960_v14 = vmul.f32 %v959_v3, %v5313_v16  ;;  %v996_v18 = vmul.f32 %v995_v4, %v5341_v42  ;;  %v949_v24 = vmul.f32 %v948_v6, %v5313_v16  ;;  %v933_v33 = vand.u32 2147483647, %v5349_v55  ;;  %v407_v3 = vld [vmem:[%s5171_s8 + $0xc8] sm:$0xff] }
  0xf7   : > { %v5364_v9 = vmin.f32 %v1021_v1, 16.0  ;;  %v986_v25 = vadd.f32 0.0036580483, %v985_v7  ;;  %v935_v37 = vand.u32 2147483648, %v5349_v55  ;;  %v913_v58 = vmul.f32 %v912_v26, %v5290_v60  ;;  %4443 = vmatmul.msk.f32.gmra.mxu3 %vm418_vm0, %v407_v3 }
  0xf8   : > { %v753_v10 = vpop.f32.mrf.mxu1  ;;  %v961_v21 = vadd.f32 0.4994258, %v960_v14  ;;  %v997_v35 = vadd.f32 0.014752088, %v996_v18  ;;  %v950_v45 = vadd.f32 0.18741608, %v949_v24  ;;  %vm929_vm2 = vweird.f32 %v5349_v55 }
  0xf9   : > { %v5368_v13 = vadd.f32 %v753_v10, %v544_v47  ;;  %v1023_v15 = vmul.f32 2.1237322e-06, %v5364_v9  ;;  %v1034_v23 = vmul.f32 3.8918573e-05, %v5364_v9  ;;  %v987_v47 = vmul.f32 %v986_v25, %v5341_v42  ;;  %v368_v25 = vld [vmem:[%s5215_s23 + $0xb0] sm:$0xff] }
  0xfa   : > { %v962_v30 = vmul.f32 %v961_v21, %v5313_v16  ;;  %v998_v62 = vmul.f32 %v997_v35, %v5341_v42  ;;  %v936_v0 = vor.u32 1.1754944e-38, %v935_v37  ;;  %vm934_vm4 = vcmp.eq.f32.partialorder %v933_v33, 8.507059e+37 }
  0xfb   : > { %v4676_v19 = vpop.eup %4675  ;;  %v5374_v20 = vmul.f32 0.70710677, %v5368_v13  ;;  %4470 = vmatmul.msk.f32.gmra.mxu1 %vm418_vm0, %v366_v11  ;;  %v1024_v27 = vadd.f32 0.00028619796, %v1023_v15  ;;  %v1035_v41 = vadd.f32 0.001143296, %v1034_v23  ;;  %v951_v60 = vmul.f32 %v950_v45, %v5313_v16 }
  0xfc   : > { %v925_v63 = vmul.f32 %v4676_v19, %v5349_v55  ;;  %v5387_v39 = vadd.f32 1.0, %v962_v30  ;;  %vm930_vm1 = vweird.f32 %v4676_v19  ;;  %v988_v7 = vadd.f32 0.05243302, %v987_v47  ;;  %v550_v55 = vpop.f32.mrf.mxu0 }
  0xfd   : > { %v1061_v29 = vmul.f32 %v5374_v20, %v5374_v20  ;;  %v1025_v52 = vmul.f32 %v1024_v27, %v5364_v9  ;;  %vm931_vm3 = vmor %vm929_vm2, %vm930_vm1  ;;  %v1036_v4 = vmul.f32 %v1035_v41, %v5364_v9 }
  0xfe   : > { %v926_v31 = vsub.f32 1.0, %v925_v63  ;;  %4677 = vrcp.f32 %v5387_v39  ;;  %v952_v63 = vadd.f32 1.1283791, %v951_v60  ;;  %v973_v45 = vand.u32 2147483647, %v5387_v39 }
  0xff   : > { %v5385_v38 = vmin.f32 %v1061_v29, 16.0  ;;  %v1026_v11 = vadd.f32 0.0036580483, %v1025_v52  ;;  %v1037_v16 = vadd.f32 0.014752088, %v1036_v4  ;;  %v989_v29 = vmul.f32 %v988_v7, %v5341_v42 }
 0x100   : > { %v927_v44 = vmul.f32 %v4676_v19, %v926_v31  ;;  %v756_v48 = vpop.f32.mrf.mxu1  ;;  %v975_v47 = vand.u32 2147483648, %v5387_v39  ;;  %vm969_vm6 = vweird.f32 %v5387_v39  ;;  %vm974_vm8 = vcmp.eq.f32.partialorder %v973_v45, 8.507059e+37 }
 0x101   : > { %v1063_v54 = vmul.f32 2.1237322e-06, %v5385_v38  ;;  %v5393_v57 = vadd.f32 %v756_v48, %v547_v17  ;;  %v999_v17 = vadd.f32 0.112945676, %v998_v62  ;;  %v1027_v30 = vmul.f32 %v1026_v11, %v5364_v9  ;;  %v369_v11 = vld [vmem:[%s5215_s23 + $0xb8] sm:$0xff] }
 0x102   : > { %v928_v61 = vadd.f32 %v4676_v19, %v927_v44  ;;  %v1038_v41 = vmul.f32 %v1037_v16, %v5364_v9  ;;  %v990_v60 = vadd.f32 0.18741608, %v989_v29 }
 0x103   : > { %v1064_v1 = vadd.f32 0.00028619796, %v1063_v54  ;;  %v5400_v2 = vmul.f32 0.70710677, %v5393_v57  ;;  %4471 = vmatmul.msk.f32.gmra.mxu1 %vm418_vm0, %v367_v50  ;;  %v1000_v27 = vmul.f32 %v999_v17, %v5341_v42  ;;  %v1028_v62 = vadd.f32 0.05243302, %v1027_v30 }
 0x104   : > { %v932_v6 = vsel %vm931_vm3, %v4676_v19, %v928_v61  ;;  %v4678_v18 = vpop.eup %4677  ;;  %v837_v19 = vmul.f32 0.5, %v5287_v59  ;;  %v1039_v61 = vadd.f32 0.112945676, %v1038_v41  ;;  %v838_v30 = vmul.f32 0.5, %v5302_v5 }
 0x105   : > { %v937_v10 = vsel %vm934_vm4, %v936_v0, %v932_v6  ;;  %v1065_v12 = vmul.f32 %v1064_v1, %v5385_v38  ;;  %v1101_v14 = vmul.f32 %v5400_v2, %v5400_v2  ;;  %v965_v26 = vmul.f32 %v4678_v18, %v5387_v39  ;;  %v553_v1 = vpop.f32.mrf.mxu0 }
 0x106   : > { %v938_v15 = vmul.f32 %v937_v10, %v913_v58  ;;  %v1001_v37 = vadd.f32 0.4994258, %v1000_v27  ;;  %vm970_vm5 = vweird.f32 %v4678_v18  ;;  %v953_v6 = vmul.f32 %v952_v63, %v5306_v8  ;;  %v408_v63 = vld [vmem:[%s5171_s8 + $0xd0] sm:$0xff] }
 0x107   : > { %v5411_v21 = vmin.f32 %v1101_v14, 16.0  ;;  %v1066_v31 = vadd.f32 0.0036580483, %v1065_v12  ;;  %v966_v59 = vsub.f32 1.0, %v965_v26  ;;  %vm971_vm7 = vmor %vm969_vm6, %vm970_vm5  ;;  %v1040_v8 = vmul.f32 %v1039_v61, %v5364_v9  ;;  %4444 = vmatmul.msk.f32.gmra.mxu3 %vm418_vm0, %v408_v63  ;;  %v409_v63 = vld [vmem:[%s5171_s8 + $0xd8] sm:$0xff] }
 0x108   : > { %v4482_v23 = vclamps-f32 %v938_v15, 1.0  ;;  %v759_v24 = vpop.f32.mrf.mxu1  ;;  %v1002_v54 = vmul.f32 %v1001_v37, %v5341_v42 }
 0x109   : > { %v5418_v33 = vadd.f32 %v759_v24, %v550_v55  ;;  %v1103_v44 = vmul.f32 2.1237322e-06, %v5411_v21  ;;  %v967_v52 = vmul.f32 %v4678_v18, %v966_v59  ;;  %v1067_v58 = vmul.f32 %v1066_v31, %v5385_v38 }
 0x10a   : > { %v2181_v35 = vadd.f32 1.0, %v4482_v23  ;;  %v5434_v4 = vadd.f32 1.0, %v1002_v54  ;;  %v976_v55 = vor.u32 1.1754944e-38, %v975_v47  ;;  %v1074_v24 = vmul.f32 3.8918573e-05, %v5385_v38 }
 0x10b   : > { %4472 = vmatmul.msk.f32.gmra.mxu1 %vm418_vm0, %v368_v25  ;;  %v5426_v50 = vmul.f32 0.70710677, %v5418_v33  ;;  %v968_v3 = vadd.f32 %v4678_v18, %v967_v52  ;;  %v1104_v7 = vadd.f32 0.00028619796, %v1103_v44  ;;  %v1068_v14 = vadd.f32 0.05243302, %v1067_v58 }
 0x10c   : > { %v2213_v48 = vmul.f32 %v2181_v35, %v837_v19  ;;  %4679 = vrcp.f32 %v5434_v4  ;;  %v1029_v19 = vmul.f32 %v1028_v62, %v5364_v9  ;;  %v991_v25 = vmul.f32 %v990_v60, %v5341_v42  ;;  %v370_v62 = vld [vmem:[%s5215_s23 + $0xc0] sm:$0xff] }
 0x10d   : > { %v1141_v0 = vmul.f32 %v5426_v50, %v5426_v50  ;;  %v972_v12 = vsel %vm971_vm7, %v4678_v18, %v968_v3  ;;  %v1105_v18 = vmul.f32 %v1104_v7, %v5411_v21  ;;  %v1069_v31 = vmul.f32 %v1068_v14, %v5385_v38 }
 0x10e   : > { %4514 = vmatmul.msk.f32.vlgmr.msrb.gmra.mxu2 %vm418_vm0, %v2213_v48  ;;  %v977_v17 = vsel %vm974_vm8, %v976_v55, %v972_v12  ;;  %v1041_v35 = vadd.f32 0.4994258, %v1040_v8  ;;  %v1030_v37 = vadd.f32 0.18741608, %v1029_v19  ;;  %v1075_v44 = vadd.f32 0.001143296, %v1074_v24 }
 0x10f   : > { %v5438_v39 = vmin.f32 %v1141_v0, 16.0  ;;  %v978_v23 = vmul.f32 %v977_v17, %v953_v6  ;;  %v992_v45 = vadd.f32 1.1283791, %v991_v25  ;;  %v1106_v47 = vadd.f32 0.0036580483, %v1105_v18  ;;  %4445 = vmatmul.msk.f32.gmra.mxu3 %vm418_vm0, %v409_v63 }
 0x110   : > { %v762_v10 = vpop.f32.mrf.mxu1  ;;  %v1042_v52 = vmul.f32 %v1041_v35, %v5364_v9  ;;  %v1076_v0 = vmul.f32 %v1075_v44, %v5385_v38  ;;  %v1031_v7 = vmul.f32 %v1030_v37, %v5364_v9  ;;  %v1013_v14 = vand.u32 2147483647, %v5434_v4 }
 0x111   : > { %v5442_v15 = vadd.f32 %v762_v10, %v553_v1  ;;  %v1143_v16 = vmul.f32 2.1237322e-06, %v5438_v39  ;;  %v4483_v29 = vclamps-f32 %v978_v23, 1.0  ;;  %v1070_v1 = vadd.f32 0.18741608, %v1069_v31 }
 0x112   : > { %v4680_v59 = vpop.eup %4679  ;;  %v5470_v60 = vadd.f32 1.0, %v1042_v52  ;;  %v1015_v10 = vand.u32 2147483648, %v5434_v4  ;;  %v1107_v17 = vmul.f32 %v1106_v47, %v5411_v21  ;;  %v839_v19 = vmul.f32 0.5, %v5322_v22 }
 0x113   : > { %4473 = vmatmul.msk.f32.gmra.mxu1 %vm418_vm0, %v369_v11  ;;  %v1144_v26 = vadd.f32 0.00028619796, %v1143_v16  ;;  %v5454_v27 = vmul.f32 0.70710677, %v5442_v15  ;;  %v2182_v41 = vadd.f32 1.0, %v4483_v29  ;;  %v1005_v48 = vmul.f32 %v4680_v59, %v5434_v4 }
 0x114   : > { %v1077_v11 = vadd.f32 0.014752088, %v1076_v0  ;;  %vm1010_vm9 = vweird.f32 %v4680_v59  ;;  %4681 = vrcp.f32 %v5470_v60  ;;  %vm1009_vm10 = vweird.f32 %v5434_v4 }
 0x115   : > { %v1181_v42 = vmul.f32 %v5454_v27, %v5454_v27  ;;  %v1145_v54 = vmul.f32 %v1144_v26, %v5438_v39  ;;  %v2214_v58 = vmul.f32 %v2182_v41, %v838_v30  ;;  %v1006_v6 = vsub.f32 1.0, %v1005_v48  ;;  %vm1011_vm11 = vmor %vm1009_vm10, %vm1010_vm9 }
 0x116   : > { %v993_v24 = vmul.f32 %v992_v45, %v5331_v28  ;;  %v1071_v25 = vmul.f32 %v1070_v1, %v5385_v38  ;;  %v1016_v18 = vor.u32 1.1754944e-38, %v1015_v10  ;;  %v1078_v26 = vmul.f32 %v1077_v11, %v5385_v38 }
 0x117   : > { %v5463_v5 = vmin.f32 %v1181_v42, 16.0  ;;  %4515 = vmatmul.msk.f32.gmra.mxu2 %vm418_vm0, %v2214_v58  ;;  %v1146_v9 = vadd.f32 0.0036580483, %v1145_v54  ;;  %v1032_v29 = vadd.f32 1.1283791, %v1031_v7  ;;  %vm1014_vm12 = vcmp.eq.f32.partialorder %v1013_v14, 8.507059e+37 }
 0x118   : > { %v765_v61 = vpop.f32.mrf.mxu1  ;;  %v1108_v31 = vadd.f32 0.05243302, %v1107_v17  ;;  %v371_v42 = vld [vmem:[%s5215_s23 + $0xc8] sm:$0xff]  ;;  %v5506_v52 = vmul.f32 0.5, %v5368_v13  ;;  %v5508_v54 = vadd.f32 1.1283791, %v1071_v25  ;;  %vm1049_vm13 = vweird.f32 %v5470_v60 }
 0x119   : > { %v5468_v3 = vadd.f32 %v765_v61, %v5239_v32  ;;  %v1183_v55 = vmul.f32 2.1237322e-06, %v5463_v5  ;;  %v1007_v32 = vmul.f32 %v4680_v59, %v1006_v6  ;;  %v1147_v4 = vmul.f32 %v1146_v9, %v5438_v39 }
 0x11a   : > { %v4682_v48 = vpop.eup %4681  ;;  %v1079_v58 = vadd.f32 0.112945676, %v1078_v26  ;;  %v1033_v61 = vmul.f32 %v1032_v29, %v5352_v56  ;;  %v1114_v13 = vmul.f32 3.8918573e-05, %v5411_v21  ;;  %v1053_v17 = vand.u32 2147483647, %v5470_v60 }
 0x11b   : > { %v5477_v12 = vmul.f32 0.70710677, %v5468_v3  ;;  %4474 = vmatmul.msk.f32.gmra.mxu1 %vm418_vm0, %v370_v62  ;;  %v1184_v8 = vadd.f32 0.00028619796, %v1183_v55  ;;  %v1008_v23 = vadd.f32 %v4680_v59, %v1007_v32  ;;  %v1148_v7 = vadd.f32 0.05243302, %v1147_v4 }
 0x11c   : > { %vm1050_vm14 = vweird.f32 %v4682_v48  ;;  %vm1054_vm1 = vcmp.eq.f32.partialorder %v1053_v17, 8.507059e+37 }
 0x11d   : > { %v1221_v16 = vmul.f32 %v5477_v12, %v5477_v12  ;;  %v1012_v30 = vsel %vm1011_vm11, %v4680_v59, %v1008_v23  ;;  %v1185_v35 = vmul.f32 %v1184_v8, %v5463_v5  ;;  %v5503_v59 = vmul.f32 0.5, %v5346_v51  ;;  %vm1051_vm15 = vmor %vm1049_vm13, %vm1050_vm14 }
 0x11e   : > { %v1017_v37 = vsel %vm1014_vm12, %v1016_v18, %v1012_v30  ;;  %v1045_v51 = vmul.f32 %v4682_v48, %v5470_v60  ;;  %v1080_v23 = vmul.f32 %v1079_v58, %v5385_v38  ;;  %v372_v18 = vld [vmem:[%s5215_s23 + $0xd0] sm:$0xff] }
 0x11f   : > { %v5492_v22 = vmin.f32 %v1221_v16, 16.0  ;;  %v1018_v45 = vmul.f32 %v1017_v37, %v993_v24  ;;  %v1186_v55 = vadd.f32 0.0036580483, %v1185_v35  ;;  %v1055_v16 = vand.u32 2147483648, %v5470_v60 }
 0x120   : > { %v768_v28 = vpop.f32.mrf.mxu1  ;;  %v1046_v14 = vsub.f32 1.0, %v1045_v51  ;;  %v1081_v30 = vadd.f32 0.4994258, %v1080_v23 }
 0x121   : > { %v1223_v41 = vmul.f32 2.1237322e-06, %v5492_v22  ;;  %v1234_v44 = vmul.f32 3.8918573e-05, %v5492_v22  ;;  %v5500_v47 = vadd.f32 %v768_v28, %v5243_v34  ;;  %v4484_v1 = vclamps-f32 %v1018_v45, 1.0 }
 0x122   : > { %v1109_v34 = vmul.f32 %v1108_v31, %v5411_v21  ;;  %v1047_v24 = vmul.f32 %v4682_v48, %v1046_v14  ;;  %v1187_v26 = vmul.f32 %v1186_v55, %v5463_v5  ;;  %v1056_v28 = vor.u32 1.1754944e-38, %v1055_v16 }
 0x123   : > { %v1224_v62 = vadd.f32 0.00028619796, %v1223_v41  ;;  %v1235_v0 = vadd.f32 0.001143296, %v1234_v44  ;;  %4475 = vmatmul.msk.f32.gmra.mxu1 %vm418_vm0, %v371_v42  ;;  %v5514_v6 = vmul.f32 0.70710677, %v5500_v47  ;;  %v1082_v42 = vmul.f32 %v1081_v30, %v5385_v38 }
 0x124   : > { %v2183_v56 = vadd.f32 1.0, %v4484_v1  ;;  %v1048_v37 = vadd.f32 %v4682_v48, %v1047_v24  ;;  %v1188_v58 = vadd.f32 0.05243302, %v1187_v26 }
 0x125   : > { %v1236_v10 = vmul.f32 %v1235_v0, %v5492_v22  ;;  %v1225_v11 = vmul.f32 %v1224_v62, %v5492_v22  ;;  %v1261_v32 = vmul.f32 %v5514_v6, %v5514_v6 }
 0x126   : > { %v2215_v8 = vmul.f32 %v2183_v56, %v839_v19  ;;  %v1052_v45 = vsel %vm1051_vm15, %v4682_v48, %v1048_v37  ;;  %v5566_v37 = vmul.f32 0.5, %v5393_v57 }
 0x127   : > { %v1237_v9 = vadd.f32 0.014752088, %v1236_v10  ;;  %v5525_v63 = vmin.f32 %v1261_v32, 16.0  ;;  %v1226_v31 = vadd.f32 0.0036580483, %v1225_v11  ;;  %v1057_v0 = vsel %vm1054_vm1, %v1056_v28, %v1052_v45 }
 0x128   : > { %v771_v25 = vpop.f32.mrf.mxu1  ;;  %4516 = vmatmul.msk.f32.gmra.mxu2 %vm418_vm0, %v2215_v8  ;;  %v1058_v56 = vmul.f32 %v1057_v0, %v1033_v61  ;;  %v1110_v11 = vadd.f32 0.18741608, %v1109_v34  ;;  %v1149_v8 = vmul.f32 %v1148_v7, %v5438_v39  ;;  %v1189_v61 = vmul.f32 %v1188_v58, %v5463_v5 }
 0x129   : > { %v1238_v29 = vmul.f32 %v1237_v9, %v5492_v22  ;;  %v5533_v19 = vadd.f32 %v771_v25, %v5247_v36  ;;  %v1263_v4 = vmul.f32 2.1237322e-06, %v5525_v63  ;;  %v1274_v35 = vmul.f32 3.8918573e-05, %v5525_v63 }
 0x12a   : > { %v1115_v36 = vadd.f32 0.001143296, %v1114_v13  ;;  %v1227_v51 = vmul.f32 %v1226_v31, %v5492_v22  ;;  %v5548_v13 = vadd.f32 1.0, %v1082_v42  ;;  %v4485_v17 = vclamps-f32 %v1058_v56, 1.0  ;;  %v373_v42 = vld [vmem:[%s5215_s23 + $0xd8] sm:$0xff] }
 0x12b   : > { %v1239_v60 = vadd.f32 0.112945676, %v1238_v29  ;;  %4476 = vmatmul.msk.f32.gmra.mxu1 %vm418_vm0, %v372_v18  ;;  %v1264_v41 = vadd.f32 0.00028619796, %v1263_v4  ;;  %v1275_v44 = vadd.f32 0.001143296, %v1274_v35  ;;  %v1111_v18 = vmul.f32 %v1110_v11, %v5411_v21 }
 0x12c   : > { %v5541_v1 = vmul.f32 0.70710677, %v5533_v19  ;;  %v1116_v9 = vmul.f32 %v1115_v36, %v5411_v21  ;;  %4683 = vrcp.f32 %v5548_v13  ;;  %v1228_v34 = vadd.f32 0.05243302, %v1227_v51  ;;  %v410_v36 = vld [vmem:[%s5171_s8 + $0xe0] sm:$0xff] }
 0x12d   : > { %v1240_v62 = vmul.f32 %v1239_v60, %v5492_v22  ;;  %v1265_v55 = vmul.f32 %v1264_v41, %v5525_v63  ;;  %v1276_v10 = vmul.f32 %v1275_v44, %v5525_v63  ;;  %v2184_v25 = vadd.f32 1.0, %v4485_v17  ;;  %4446 = vmatmul.msk.f32.gmra.mxu3 %vm418_vm0, %v410_v36 }
 0x12e   : > { %v1301_v48 = vmul.f32 %v5541_v1, %v5541_v1  ;;  %v1117_v35 = vadd.f32 0.014752088, %v1116_v9  ;;  %v5569_v60 = vmul.f32 0.5, %v5418_v33  ;;  %v1150_v28 = vadd.f32 0.18741608, %v1149_v8 }
 0x12f   : > { %v1241_v38 = vadd.f32 0.4994258, %v1240_v62  ;;  %v1266_v32 = vadd.f32 0.0036580483, %v1265_v55  ;;  %v1277_v14 = vadd.f32 0.014752088, %v1276_v10  ;;  %v2216_v31 = vmul.f32 %v2184_v25, %v5503_v59 }
 0x130   : > { %v5553_v23 = vmin.f32 %v1301_v48, 16.0  ;;  %v1190_v41 = vadd.f32 0.18741608, %v1189_v61  ;;  %v1229_v44 = vmul.f32 %v1228_v34, %v5492_v22  ;;  %v1073_v33 = vmul.f32 %v5508_v54, %v5374_v20  ;;  %v774_v54 = vpop.f32.mrf.mxu1 }
 0x131   : > { %v1242_v16 = vmul.f32 %v1241_v38, %v5492_v22  ;;  %v1278_v24 = vmul.f32 %v1277_v14, %v5525_v63  ;;  %v1267_v29 = vmul.f32 %v1266_v32, %v5525_v63  ;;  %4517 = vmatmul.msk.f32.gmra.mxu2 %vm418_vm0, %v2216_v31  ;;  %v5581_v58 = vmul.f32 0.5, %v5442_v15 }
 0x132   : > { %v1303_v7 = vmul.f32 2.1237322e-06, %v5553_v23  ;;  %v1314_v4 = vmul.f32 3.8918573e-05, %v5553_v23  ;;  %v4684_v57 = vpop.eup %4683  ;;  %v1112_v51 = vadd.f32 1.1283791, %v1111_v18  ;;  %v1118_v56 = vmul.f32 %v1117_v35, %v5411_v21 }
 0x133   : > { %v5559_v26 = vadd.f32 1.0, %v1242_v16  ;;  %v1279_v30 = vadd.f32 0.112945676, %v1278_v24  ;;  %4477 = vmatmul.msk.f32.gmra.mxu1 %vm418_vm0, %v373_v42  ;;  %v1268_v62 = vadd.f32 0.05243302, %v1267_v29  ;;  %v1151_v11 = vmul.f32 %v1150_v28, %v5438_v39 }
 0x134   : > { %v1304_v59 = vadd.f32 0.00028619796, %v1303_v7  ;;  %v1315_v0 = vadd.f32 0.001143296, %v1314_v4  ;;  %v5588_v38 = vmul.f32 0.5, %v5468_v3  ;;  %v1085_v15 = vmul.f32 %v4684_v57, %v5548_v13 }
 0x135   : > { %4685 = vrcp.f32 %v5559_v26  ;;  %v1280_v45 = vmul.f32 %v1279_v30, %v5525_v63  ;;  %v1191_v48 = vmul.f32 %v1190_v41, %v5463_v5  ;;  %v1230_v32 = vadd.f32 0.18741608, %v1229_v44 }
 0x136   : > { %v1305_v10 = vmul.f32 %v1304_v59, %v5553_v23  ;;  %v1316_v20 = vmul.f32 %v1315_v0, %v5553_v23  ;;  %v1095_v17 = vand.u32 2147483648, %v5548_v13  ;;  %v1269_v8 = vmul.f32 %v1268_v62, %v5525_v63 }
 0x137   : > { %v1281_v55 = vadd.f32 0.4994258, %v1280_v45  ;;  %v1086_v3 = vsub.f32 1.0, %v1085_v15  ;;  %v5603_v25 = vadd.f32 %v774_v54, %v5256_v40  ;;  %v1119_v18 = vadd.f32 0.112945676, %v1118_v56 }
 0x138   : > { %v1306_v16 = vadd.f32 0.0036580483, %v1305_v10  ;;  %v1317_v61 = vadd.f32 0.014752088, %v1316_v20  ;;  %vm1090_vm2 = vweird.f32 %v4684_v57  ;;  %v1093_v30 = vand.u32 2147483647, %v5548_v13 }
 0x139   : > { %v1282_v14 = vmul.f32 %v1281_v55, %v5525_v63  ;;  %v1087_v7 = vmul.f32 %v4684_v57, %v1086_v3  ;;  %v5608_v31 = vmul.f32 %v1112_v51, %v5400_v2  ;;  %v1152_v4 = vadd.f32 1.1283791, %v1151_v11 }
 0x13a   : > { %v1318_v29 = vmul.f32 %v1317_v61, %v5553_v23  ;;  %v1192_v35 = vadd.f32 1.1283791, %v1191_v48  ;;  %vm1089_vm3 = vweird.f32 %v5548_v13  ;;  %v1307_v40 = vmul.f32 %v1306_v16, %v5553_v23 }
 0x13b   : > { %v5595_v9 = vpop.eup %4685  ;;  %v5600_v24 = vadd.f32 1.0, %v1282_v14  ;;  %v1088_v42 = vadd.f32 %v4684_v57, %v1087_v7  ;;  %vm1091_vm4 = vmor %vm1089_vm3, %vm1090_vm2  ;;  %v1096_v44 = vor.u32 1.1754944e-38, %v1095_v17  ;;  %v5614_v45 = vmul.f32 0.70710677, %v5603_v25 }
 0x13c   : > { %v1245_v34 = vmul.f32 %v5595_v9, %v5559_v26  ;;  %v1319_v41 = vadd.f32 0.112945676, %v1318_v29  ;;  %v1120_v59 = vmul.f32 %v1119_v18, %v5411_v21  ;;  %v1231_v2 = vmul.f32 %v1230_v32, %v5492_v22 }
 0x13d   : > { %4687 = vrcp.f32 %v5600_v24  ;;  %v1270_v36 = vadd.f32 0.18741608, %v1269_v8  ;;  %v1092_v62 = vsel %vm1091_vm4, %v4684_v57, %v1088_v42  ;;  %vm1094_vm5 = vcmp.eq.f32.partialorder %v1093_v30, 8.507059e+37 }
 0x13e   : > { %v1246_v28 = vsub.f32 1.0, %v1245_v34  ;;  %v5619_v13 = vmul.f32 0.5, %v5500_v47  ;;  %v1320_v0 = vmul.f32 %v1319_v41, %v5553_v23  ;;  %v1097_v51 = vsel %vm1094_vm5, %v1096_v44, %v1092_v62 }
 0x13f   : > { %v1341_v55 = vmul.f32 %v5614_v45, %v5614_v45  ;;  %v1308_v56 = vadd.f32 0.05243302, %v1307_v40  ;;  %v1098_v11 = vmul.f32 %v1097_v51, %v1073_v33  ;;  %v1121_v20 = vadd.f32 0.4994258, %v1120_v59  ;;  %v374_v59 = vld [vmem:[%s5215_s23 + $0xe0] sm:$0xff] }
 0x140   : > { %v1247_v10 = vmul.f32 %v5595_v9, %v1246_v28  ;;  %v5626_v15 = vmul.f32 %v1152_v4, %v5426_v50  ;;  %v5629_v22 = vmul.f32 0.5, %v5533_v19  ;;  %v1321_v57 = vadd.f32 0.4994258, %v1320_v0  ;;  %4478 = vmatmul.msk.f32.gmra.mxu1 %vm418_vm0, %v374_v59 }
 0x141   : > { %v5631_v47 = vmin.f32 %v1341_v55, 16.0  ;;  %v5636_v48 = vmul.f32 %v1192_v35, %v5454_v27  ;;  %v1232_v32 = vadd.f32 1.1283791, %v1231_v2  ;;  %vm1250_vm6 = vweird.f32 %v5595_v9 }
 0x142   : > { %v1271_v33 = vmul.f32 %v1270_v36, %v5525_v63  ;;  %v1322_v14 = vmul.f32 %v1321_v57, %v5553_v23  ;;  %v4486_v50 = vclamps-f32 %v1098_v11, 1.0  ;;  %v1154_v19 = vmul.f32 3.8918573e-05, %v5438_v39 }
 0x143   : > { %v5633_v54 = vpop.eup %4687  ;;  %v1343_v17 = vmul.f32 2.1237322e-06, %v5631_v47  ;;  %v1248_v8 = vadd.f32 %v5595_v9, %v1247_v10  ;;  %v1309_v16 = vmul.f32 %v1308_v56, %v5553_v23  ;;  %v1354_v61 = vmul.f32 3.8918573e-05, %v5631_v47 }
 0x144   : > { %v1122_v27 = vmul.f32 %v1121_v20, %v5411_v21  ;;  %v1285_v3 = vmul.f32 %v5633_v54, %v5600_v24  ;;  %v5649_v34 = vadd.f32 1.0, %v1322_v14  ;;  %v2185_v63 = vadd.f32 1.0, %v4486_v50 }
 0x145   : > { %v1344_v18 = vadd.f32 0.00028619796, %v1343_v17  ;;  %v1253_v29 = vand.u32 2147483647, %v5559_v26  ;;  %v1255_v7 = vand.u32 2147483648, %v5559_v26  ;;  %v1233_v35 = vmul.f32 %v1232_v32, %v5477_v12  ;;  %v777_v12 = vpop.f32.mrf.mxu1 }
 0x146   : > { %v1355_v30 = vadd.f32 0.001143296, %v1354_v61  ;;  %v5653_v4 = vadd.f32 1.0, %v1122_v27  ;;  %vm1249_vm7 = vweird.f32 %v5559_v26  ;;  %4689 = vrcp.f32 %v5649_v34 }
 0x147   : > { %v1155_v21 = vadd.f32 0.001143296, %v1154_v19  ;;  %vm5660_vm8 = vmor %vm1249_vm7, %vm1250_vm6  ;;  %v1272_v40 = vadd.f32 1.1283791, %v1271_v33  ;;  %v2217_v42 = vmul.f32 %v2185_v63, %v5506_v52  ;;  %v1345_v41 = vmul.f32 %v1344_v18, %v5631_v47 }
 0x148   : > { %v1356_v44 = vmul.f32 %v1355_v30, %v5631_v47  ;;  %v1252_v26 = vsel %vm5660_vm8, %v5595_v9, %v1248_v8  ;;  %v1286_v2 = vsub.f32 1.0, %v1285_v3  ;;  %v1310_v36 = vadd.f32 0.18741608, %v1309_v16  ;;  %v411_v9 = vld [vmem:[%s5171_s8 + $0xe8] sm:$0xff] }
 0x149   : > { %4691 = vrcp.f32 %v5653_v4  ;;  %vm1254_vm9 = vcmp.eq.f32.partialorder %v1253_v29, 8.507059e+37  ;;  %v1256_v62 = vor.u32 1.1754944e-38, %v1255_v7  ;;  %v1295_v52 = vand.u32 2147483648, %v5600_v24  ;;  %4518 = vmatmul.msk.f32.gmra.mxu2 %vm418_vm0, %v2217_v42  ;;  %4447 = vmatmul.msk.f32.gmra.mxu3 %vm418_vm0, %v411_v9 }
 0x14a   : > { %v1357_v0 = vadd.f32 0.014752088, %v1356_v44  ;;  %v5676_v51 = vmul.f32 0.5, %v5603_v25  ;;  %v1346_v55 = vadd.f32 0.0036580483, %v1345_v41  ;;  %v5679_v10 = vadd.f32 %v777_v12, %v5262_v43 }
 0x14b   : > { %v1156_v56 = vmul.f32 %v1155_v21, %v5438_v39  ;;  %v1257_v11 = vsel %vm1254_vm9, %v1256_v62, %v1252_v26  ;;  %v5684_v20 = vmul.f32 %v1272_v40, %v5514_v6  ;;  %v1194_v32 = vmul.f32 3.8918573e-05, %v5463_v5 }
 0x14c   : > { %v1358_v57 = vmul.f32 %v1357_v0, %v5631_v47  ;;  %v5689_v33 = vpop.eup %4689  ;;  %v1287_v25 = vmul.f32 %v5633_v54, %v1286_v2  ;;  %v1311_v43 = vmul.f32 %v1310_v36, %v5553_v23  ;;  %v5694_v14 = vmul.f32 0.70710677, %v5679_v10 }
 0x14d   : > { %v1157_v50 = vadd.f32 0.014752088, %v1156_v56  ;;  %vm1289_vm10 = vweird.f32 %v5600_v24  ;;  %vm1290_vm11 = vweird.f32 %v5633_v54  ;;  %v1293_v6 = vand.u32 2147483647, %v5600_v24 }
 0x14e   : > { %v5699_v17 = vor.u32 1.1754944e-38, %v1295_v52  ;;  %v1359_v19 = vadd.f32 0.112945676, %v1358_v57  ;;  %v5701_v16 = vmul.f32 %v1257_v11, %v1233_v35  ;;  %v1347_v61 = vmul.f32 %v1346_v55, %v5631_v47  ;;  %vm5735_vm15 = vmor %vm1289_vm10, %vm1290_vm11 }
 0x14f   : > { %v4692_v8 = vpop.eup %4691  ;;  %v1381_v23 = vmul.f32 %v5694_v14, %v5694_v14  ;;  %v1158_v27 = vmul.f32 %v1157_v50, %v5438_v39  ;;  %v1325_v3 = vmul.f32 %v5689_v33, %v5649_v34  ;;  %v1195_v29 = vadd.f32 0.001143296, %v1194_v32 }
 0x150   : > { %v1360_v63 = vmul.f32 %v1359_v19, %v5631_v47  ;;  %v1125_v18 = vmul.f32 %v4692_v8, %v5653_v4  ;;  %v1288_v7 = vadd.f32 %v5633_v54, %v1287_v25  ;;  %v1312_v30 = vadd.f32 1.1283791, %v1311_v43 }
 0x151   : > { %v5712_v35 = vmin.f32 %v1381_v23, 16.0  ;;  %v1159_v21 = vadd.f32 0.112945676, %v1158_v27  ;;  %v1133_v42 = vand.u32 2147483647, %v5653_v4  ;;  %v1135_v41 = vand.u32 2147483648, %v5653_v4 }
 0x152   : > { %v1361_v28 = vadd.f32 0.4994258, %v1360_v63  ;;  %v1126_v40 = vsub.f32 1.0, %v1125_v18  ;;  %v1348_v44 = vadd.f32 0.05243302, %v1347_v61  ;;  %vm5719_vm12 = vcmp.eq.f32.partialorder %v1293_v6, 8.507059e+37 }
 0x153   : > { %v1383_v12 = vmul.f32 2.1237322e-06, %v5712_v35  ;;  %v1394_v59 = vmul.f32 3.8918573e-05, %v5712_v35  ;;  %v1160_v26 = vmul.f32 %v1159_v21, %v5438_v39  ;;  %v1326_v36 = vsub.f32 1.0, %v1325_v3  ;;  %v780_v3 = vpop.f32.mrf.mxu1  ;;  %v375_v21 = vld [vmem:[%s5215_s23 + $0xe8] sm:$0xff] }
 0x154   : > { %v1362_v62 = vmul.f32 %v1361_v28, %v5631_v47  ;;  %v1127_v52 = vmul.f32 %v4692_v8, %v1126_v40  ;;  %v1196_v0 = vmul.f32 %v1195_v29, %v5463_v5  ;;  %vm1130_vm13 = vweird.f32 %v4692_v8  ;;  %4479 = vmatmul.msk.f32.gmra.mxu1 %vm418_vm0, %v375_v21 }
 0x155   : > { %v1384_v55 = vadd.f32 0.00028619796, %v1383_v12  ;;  %v1395_v9 = vadd.f32 0.001143296, %v1394_v59  ;;  %v1161_v56 = vadd.f32 0.4994258, %v1160_v26  ;;  %v5726_v11 = vmul.f32 %v1312_v30, %v5541_v1 }
 0x156   : > { %v5728_v57 = vadd.f32 1.0, %v1362_v62  ;;  %v1128_v32 = vadd.f32 %v4692_v8, %v1127_v52  ;;  %vm1129_vm14 = vweird.f32 %v5653_v4  ;;  %v1349_v43 = vmul.f32 %v1348_v44, %v5631_v47  ;;  %v412_v44 = vld [vmem:[%s5171_s8 + $0xf0] sm:$0xff] }
 0x157   : > { %v1385_v50 = vmul.f32 %v1384_v55, %v5712_v35  ;;  %v1396_v1 = vmul.f32 %v1395_v9, %v5712_v35  ;;  %v1162_v6 = vmul.f32 %v1161_v56, %v5438_v39  ;;  %v1292_v4 = vsel %vm5735_vm15, %v5633_v54, %v1288_v7  ;;  %vm1131_vm1 = vmor %vm1129_vm14, %vm1130_vm13  ;;  %4448 = vmatmul.msk.f32.gmra.mxu3 %vm418_vm0, %v412_v44 }
 0x158   : > { %4693 = vrcp.f32 %v5728_v57  ;;  %v1136_v24 = vor.u32 1.1754944e-38, %v1135_v41  ;;  %v1197_v19 = vadd.f32 0.014752088, %v1196_v0  ;;  %v1327_v61 = vmul.f32 %v5689_v33, %v1326_v36 }
 0x159   : > { %v1132_v23 = vsel %vm1131_vm1, %v4692_v8, %v1128_v32  ;;  %vm1134_vm2 = vcmp.eq.f32.partialorder %v1133_v42, 8.507059e+37  ;;  %v1386_v27 = vadd.f32 0.0036580483, %v1385_v50  ;;  %v1397_v18 = vadd.f32 0.014752088, %v1396_v1 }
 0x15a   : > { %v1137_v63 = vsel %vm1134_vm2, %v1136_v24, %v1132_v23  ;;  %v5749_v39 = vadd.f32 1.0, %v1162_v6  ;;  %v5752_v54 = vadd.f32 %v780_v3, %v5268_v46  ;;  %vm1329_vm3 = vweird.f32 %v5649_v34 }
 0x15b   : > { %v1350_v29 = vadd.f32 0.18741608, %v1349_v43  ;;  %v1138_v7 = vmul.f32 %v1137_v63, %v5608_v31  ;;  %v1387_v30 = vmul.f32 %v1386_v27, %v5712_v35  ;;  %v1333_v8 = vand.u32 2147483647, %v5649_v34  ;;  %v783_v44 = vpop.f32.mrf.mxu1 }
 0x15c   : > { %v1398_v28 = vmul.f32 %v1397_v18, %v5712_v35  ;;  %4695 = vrcp.f32 %v5749_v39  ;;  %v1198_v40 = vmul.f32 %v1197_v19, %v5463_v5  ;;  %v1297_v46 = vsel %vm5719_vm12, %v5699_v17, %v1292_v4 }
 0x15d   : > { %v1335_v42 = vand.u32 2147483648, %v5649_v34  ;;  %v4487_v31 = vclamps-f32 %v1138_v7, 1.0  ;;  %v1388_v41 = vadd.f32 0.05243302, %v1387_v30  ;;  %v1328_v59 = vadd.f32 %v5689_v33, %v1327_v61 }
 0x15e   : > { %v5768_v12 = vpop.eup %4693  ;;  %vm1330_vm4 = vweird.f32 %v5689_v33  ;;  %v1399_v26 = vadd.f32 0.112945676, %v1398_v28  ;;  %v5773_v36 = vmul.f32 0.70710677, %v5752_v54  ;;  %v1351_v2 = vmul.f32 %v1350_v29, %v5631_v47 }
 0x15f   : > { %v1365_v17 = vmul.f32 %v5768_v12, %v5728_v57  ;;  %v2186_v62 = vadd.f32 1.0, %v4487_v31  ;;  %v1389_v52 = vmul.f32 %v1388_v41, %v5712_v35  ;;  %vm5780_vm5 = vcmp.eq.f32.partialorder %v1333_v8, 8.507059e+37  ;;  %vm5792_vm6 = vmor %vm1329_vm3, %vm1330_vm4 }
 0x160   : > { %v1400_v55 = vmul.f32 %v1399_v26, %v5712_v35  ;;  %v1421_v9 = vmul.f32 %v5773_v36, %v5773_v36  ;;  %v1199_v56 = vadd.f32 0.112945676, %v1198_v40  ;;  %v5788_v32 = vmul.f32 %v1297_v46, %v5684_v20 }
 0x161   : > { %v1336_v25 = vor.u32 1.1754944e-38, %v1335_v42  ;;  %v1366_v43 = vsub.f32 1.0, %v1365_v17  ;;  %v2218_v50 = vmul.f32 %v2186_v62, %v5566_v37  ;;  %v1332_v6 = vsel %vm5792_vm6, %v5689_v33, %v1328_v59 }
 0x162   : > { %v4696_v1 = vpop.eup %4695  ;;  %v1401_v4 = vadd.f32 0.4994258, %v1400_v55  ;;  %v5800_v24 = vmin.f32 %v1421_v9, 16.0  ;;  %v1200_v20 = vmul.f32 %v1199_v56, %v5463_v5  ;;  %v1352_v19 = vadd.f32 1.1283791, %v1351_v2 }
 0x163   : > { %4519 = vmatmul.msk.f32.gmra.mxu2 %vm418_vm0, %v2218_v50  ;;  %v5805_v34 = vmul.f32 0.5, %v5679_v10  ;;  %v1390_v61 = vadd.f32 0.18741608, %v1389_v52  ;;  %v1165_v23 = vmul.f32 %v4696_v1, %v5749_v39  ;;  %v1337_v63 = vsel %vm5780_vm5, %v1336_v25, %v1332_v6  ;;  %v376_v52 = vld [vmem:[%s5215_s23 + $0xf0] sm:$0xff]  ;;  %v413_v50 = vld [vmem:[%s5171_s8 + $0xf8] sm:$0xff]  ;;  %s4306_s8 = sshll.u32 %s4303_s17, 4  ;;  %s4307_s8 = int_to_ptr.hbm [resolvable:$true] %s4306_s8 }
 0x164   : > { %v1402_v37 = vmul.f32 %v1401_v4, %v5712_v35  ;;  %v1423_v27 = vmul.f32 2.1237322e-06, %v5800_v24  ;;  %v1434_v33 = vmul.f32 3.8918573e-05, %v5800_v24  ;;  %v1201_v3 = vadd.f32 0.4994258, %v1200_v20  ;;  %4480 = vmatmul.msk.f32.gmra.mxu1 %vm418_vm0, %v376_v52  ;;  %4449 = vmatmul.msk.f32.gmra.mxu3 %vm418_vm0, %v413_v50 }
 0x165   : > { %v1367_v18 = vmul.f32 %v5768_v12, %v1366_v43  ;;  %v1166_v29 = vsub.f32 1.0, %v1165_v23  ;;  %v1175_v7 = vand.u32 2147483648, %v5749_v39  ;;  %vm1369_vm7 = vweird.f32 %v5728_v57 }
 0x166   : > { %v5815_v10 = vadd.f32 1.0, %v1402_v37  ;;  %v1424_v30 = vadd.f32 0.00028619796, %v1423_v27  ;;  %v1435_v21 = vadd.f32 0.001143296, %v1434_v33  ;;  %v1202_v8 = vmul.f32 %v1201_v3, %v5463_v5 }
 0x167   : > { %v1167_v28 = vmul.f32 %v4696_v1, %v1166_v29  ;;  %vm1170_vm8 = vweird.f32 %v4696_v1  ;;  %v1173_v40 = vand.u32 2147483647, %v5749_v39  ;;  %v1373_v46 = vand.u32 2147483647, %v5728_v57 }
 0x168   : > { %v1391_v42 = vmul.f32 %v1390_v61, %v5712_v35  ;;  %4697 = vrcp.f32 %v5815_v10  ;;  %vm1169_vm9 = vweird.f32 %v5749_v39  ;;  %vm1370_vm10 = vweird.f32 %v5768_v12 }
 0x169   : > { %v1168_v31 = vadd.f32 %v4696_v1, %v1167_v28  ;;  %v1176_v41 = vor.u32 1.1754944e-38, %v1175_v7  ;;  %v1425_v5 = vmul.f32 %v1424_v30, %v5800_v24  ;;  %v1368_v59 = vadd.f32 %v5768_v12, %v1367_v18  ;;  %vm1171_vm11 = vmor %vm1169_vm9, %vm1170_vm8  ;;  %v580_v30 = vpop.f32.mrf.mxu2 }
 0x16a   : > { %v1436_v26 = vmul.f32 %v1435_v21, %v5800_v24  ;;  %v5828_v2 = vadd.f32 1.0, %v1202_v8  ;;  %v5831_v35 = vadd.f32 %v783_v44, %v5274_v49  ;;  %v1375_v39 = vand.u32 2147483648, %v5728_v57  ;;  %vm5845_vm13 = vmor %vm1369_vm7, %vm1370_vm10 }
 0x16b   : > { %v1172_v17 = vsel %vm1171_vm11, %v4696_v1, %v1168_v31  ;;  %vm1174_vm12 = vcmp.eq.f32.partialorder %v1173_v40, 8.507059e+37  ;;  %v1426_v62 = vadd.f32 0.0036580483, %v1425_v5  ;;  %v1392_v0 = vadd.f32 1.1283791, %v1391_v42 }
 0x16c   : > { %v1177_v55 = vsel %vm1174_vm12, %v1176_v41, %v1172_v17  ;;  %v1437_v9 = vadd.f32 0.014752088, %v1436_v26  ;;  %4699 = vrcp.f32 %v5828_v2  ;;  %v5838_v56 = vmul.f32 %v1337_v63, %v5726_v11  ;;  %v786_v63 = vpop.f32.mrf.mxu1 }
 0x16d   : > { %v1353_v49 = vmul.f32 %v1352_v19, %v5614_v45  ;;  %v1178_v25 = vmul.f32 %v1177_v55, %v5626_v15  ;;  %v1427_v43 = vmul.f32 %v1426_v62, %v5800_v24  ;;  %v1372_v11 = vsel %vm5845_vm13, %v5768_v12, %v1368_v59 }
 0x16e   : > { %v5852_v1 = vpop.eup %4697  ;;  %vm1374_vm14 = vcmp.eq.f32.partialorder %v1373_v46, 8.507059e+37  ;;  %v1438_v45 = vmul.f32 %v1437_v9, %v5800_v24  ;;  %v5859_v57 = vmul.f32 0.70710677, %v5831_v35  ;;  %v1376_v6 = vor.u32 1.1754944e-38, %v1375_v39  ;;  %v377_v46 = vld [vmem:[%s5215_s23 + $0xf8] sm:$0xff] }
 0x16f   : > { %v1405_v15 = vmul.f32 %v5852_v1, %v5815_v10  ;;  %v4488_v4 = vclamps-f32 %v1178_v25, 1.0  ;;  %v1428_v20 = vadd.f32 0.05243302, %v1427_v43  ;;  %v5865_v19 = vmul.f32 %v1392_v0, %v5694_v14  ;;  %4481 = vmatmul.msk.f32.gmra.mxu1 %vm418_vm0, %v377_v46 }
 0x170   : > { %v5868_v61 = vmul.f32 0.5, %v5752_v54  ;;  %v1439_v12 = vadd.f32 0.112945676, %v1438_v45  ;;  %v1461_v23 = vmul.f32 %v5859_v57, %v5859_v57  ;;  %v1377_v37 = vsel %vm1374_vm14, %v1376_v6, %v1372_v11 }
 0x171   : > { %v1406_v27 = vsub.f32 1.0, %v1405_v15  ;;  %v2187_v33 = vadd.f32 1.0, %v4488_v4  ;;  %v1429_v3 = vmul.f32 %v1428_v20, %v5800_v24  ;;  %v1413_v29 = vand.u32 2147483647, %v5815_v10 }
 0x172   : > { %v4700_v18 = vpop.eup %4699  ;;  %v1440_v14 = vmul.f32 %v1439_v12, %v5800_v24  ;;  %v5875_v7 = vmin.f32 %v1461_v23, 16.0  ;;  %v5878_v54 = vadd.f32 %v786_v63, %v5280_v53  ;;  %v1213_v28 = vand.u32 2147483647, %v5828_v2 }
 0x173   : > { %v2219_v21 = vmul.f32 %v2187_v33, %v5569_v60  ;;  %v1205_v8 = vmul.f32 %v4700_v18, %v5828_v2  ;;  %v4490_v40 = vclamps-f32 %v5701_v16, 1.0  ;;  %v5885_v42 = vmul.f32 %v1377_v37, %v1353_v49 }
 0x174   : > { %vm1409_vm15 = vweird.f32 %v5815_v10  ;;  %v1441_v31 = vadd.f32 0.4994258, %v1440_v14  ;;  %v1463_v41 = vmul.f32 2.1237322e-06, %v5875_v7  ;;  %v1474_v53 = vmul.f32 3.8918573e-05, %v5875_v7  ;;  %v789_v50 = vpop.f32.mrf.mxu1 }
 0x175   : > { %v1407_v60 = vmul.f32 %v5852_v1, %v1406_v27  ;;  %4520 = vmatmul.msk.f32.gmra.mxu2 %vm418_vm0, %v2219_v21  ;;  %v1430_v5 = vadd.f32 0.18741608, %v1429_v3  ;;  %v1206_v44 = vsub.f32 1.0, %v1205_v8  ;;  %v1215_v16 = vand.u32 2147483648, %v5828_v2  ;;  %v583_v3 = vpop.f32.mrf.mxu2 }
 0x176   : > { %v1442_v59 = vmul.f32 %v1441_v31, %v5800_v24  ;;  %v1464_v26 = vadd.f32 0.00028619796, %v1463_v41  ;;  %v1475_v39 = vadd.f32 0.001143296, %v1474_v53  ;;  %v5896_v17 = vmul.f32 0.70710677, %v5878_v54 }
 0x177   : > { %v1415_v62 = vand.u32 2147483648, %v5815_v10  ;;  %v1207_v52 = vmul.f32 %v4700_v18, %v1206_v44  ;;  %vm1209_vm1 = vweird.f32 %v5828_v2  ;;  %vm1210_vm2 = vweird.f32 %v4700_v18 }
 0x178   : > { %vm5900_vm3 = vcmp.eq.f32.partialorder %v1413_v29, 8.507059e+37  ;;  %v5904_v55 = vadd.f32 1.0, %v1442_v59  ;;  %v1465_v9 = vmul.f32 %v1464_v26, %v5875_v7  ;;  %v1476_v49 = vmul.f32 %v1475_v39, %v5875_v7  ;;  %vm1211_vm6 = vmor %vm1209_vm1, %vm1210_vm2 }
 0x179   : > { %v2189_v47 = vadd.f32 1.0, %v4490_v40  ;;  %vm1410_vm4 = vweird.f32 %v5852_v1  ;;  %v1208_v25 = vadd.f32 %v4700_v18, %v1207_v52  ;;  %vm1214_vm5 = vcmp.eq.f32.partialorder %v1213_v28, 8.507059e+37 }
 0x17a   : > { %v1501_v43 = vmul.f32 %v5896_v17, %v5896_v17  ;;  %v1408_v11 = vadd.f32 %v5852_v1, %v1407_v60  ;;  %v1431_v45 = vmul.f32 %v1430_v5, %v5800_v24  ;;  %4701 = vrcp.f32 %v5904_v55  ;;  %vm5926_vm7 = vmor %vm1409_vm15, %vm1410_vm4 }
 0x17b   : > { %v1216_v6 = vor.u32 1.1754944e-38, %v1215_v16  ;;  %v1212_v15 = vsel %vm1211_vm6, %v4700_v18, %v1208_v25  ;;  %v1466_v4 = vadd.f32 0.0036580483, %v1465_v9  ;;  %v1477_v20 = vadd.f32 0.014752088, %v1476_v49 }
 0x17c   : > { %v5916_v12 = vmin.f32 %v1501_v43, 16.0  ;;  %v1416_v23 = vor.u32 1.1754944e-38, %v1415_v62  ;;  %v5919_v27 = vmul.f32 0.5, %v5831_v35  ;;  %v4491_v33 = vclamps-f32 %v5788_v32, 1.0  ;;  %v792_v59 = vpop.f32.mrf.mxu1 }
 0x17d   : > { %v1217_v37 = vsel %vm1214_vm5, %v1216_v6, %v1212_v15  ;;  %v1467_v63 = vmul.f32 %v1466_v4, %v5875_v7  ;;  %v1478_v18 = vmul.f32 %v1477_v20, %v5875_v7  ;;  %v1412_v32 = vsel %vm5926_vm7, %v5852_v1, %v1408_v11  ;;  %v5971_v15 = vpop.f32.mrf.mxu2 }
 0x17e   : > { %v1218_v2 = vmul.f32 %v1217_v37, %v5636_v48  ;;  %v1503_v35 = vmul.f32 2.1237322e-06, %v5916_v12  ;;  %v1432_v29 = vadd.f32 1.1283791, %v1431_v45  ;;  %v1514_v14 = vmul.f32 3.8918573e-05, %v5916_v12 }
 0x17f   : > { %v5938_v10 = vadd.f32 %v789_v50, %v580_v30  ;;  %v1468_v8 = vadd.f32 0.05243302, %v1467_v63  ;;  %v1479_v28 = vadd.f32 0.112945676, %v1478_v18  ;;  %v5941_v48 = vmul.f32 %v2189_v47, %v5588_v38 }
 0x180   : > { %v4489_v21 = vclamps-f32 %v1218_v2, 1.0  ;;  %v5943_v40 = vpop.eup %4701  ;;  %v5946_v46 = vmul.f32 0.5, %v5878_v54  ;;  %v1504_v31 = vadd.f32 0.00028619796, %v1503_v35  ;;  %v1515_v41 = vadd.f32 0.001143296, %v1514_v14 }
 0x181   : > { %v2190_v53 = vadd.f32 1.0, %v4491_v33  ;;  %v1417_v1 = vsel %vm5900_vm3, %v1416_v23, %v1412_v32  ;;  %v1445_v30 = vmul.f32 %v5943_v40, %v5904_v55  ;;  %v1469_v5 = vmul.f32 %v1468_v8, %v5875_v7 }
 0x182   : > { %v2188_v60 = vadd.f32 1.0, %v4489_v21  ;;  %v1480_v38 = vmul.f32 %v1479_v28, %v5875_v7  ;;  %v1505_v44 = vmul.f32 %v1504_v31, %v5916_v12  ;;  %v1516_v16 = vmul.f32 %v1515_v41, %v5916_v12 }
 0x183   : > { %v5957_v54 = vmul.f32 0.70710677, %v5938_v10  ;;  %v1446_v26 = vsub.f32 1.0, %v1445_v30  ;;  %v1453_v39 = vand.u32 2147483647, %v5904_v55  ;;  %v4492_v52 = vclamps-f32 %v5838_v56, 1.0 }
 0x184   : > { %v2220_v62 = vmul.f32 %v2188_v60, %v5581_v58  ;;  %v1481_v0 = vadd.f32 0.4994258, %v1480_v38  ;;  %v1506_v9 = vadd.f32 0.0036580483, %v1505_v44  ;;  %v1517_v49 = vadd.f32 0.014752088, %v1516_v16 }
 0x185   : > { %v1541_v47 = vmul.f32 %v5957_v54, %v5957_v54  ;;  %v1447_v25 = vmul.f32 %v5943_v40, %v1446_v26  ;;  %v1470_v43 = vadd.f32 0.18741608, %v1469_v5  ;;  %v793_v50 = vadd.f32 %v792_v59, %v583_v3 }
 0x186   : > { %4521 = vmatmul.msk.f32.gmra.mxu2 %vm418_vm0, %v2220_v62  ;;  %v1482_v11 = vmul.f32 %v1481_v0, %v5875_v7  ;;  %v1507_v45 = vmul.f32 %v1506_v9, %v5916_v12  ;;  %v1518_v58 = vmul.f32 %v1517_v49, %v5916_v12  ;;  %v5059_v6 = vmov 1.0   ;;  %v795_v62 = vpop.f32.mrf.mxu1 }
 0x187   : > { %2630 = vmatpush.msrb.mxu3 %v5059_v6  ;;  %v5969_v56 = vmin.f32 %v1541_v47, 16.0  ;;  %2903 = vmatpush.msrb.mxu0 %v5059_v6  ;;  %v5974_v4 = vmul.f32 %v1417_v1, %v5865_v19  ;;  %v5977_v20 = vmul.f32 %v1432_v29, %v5773_v36  ;;  %v1455_v23 = vand.u32 2147483648, %v5904_v55 }
 0x188   : > { %v5980_v37 = vmul.f32 0.70710677, %v793_v50  ;;  %v5982_v33 = vadd.f32 1.0, %v1482_v11  ;;  %v1508_v3 = vadd.f32 0.05243302, %v1507_v45  ;;  %v2191_v2 = vadd.f32 1.0, %v4492_v52  ;;  %v589_v52 = vpop.f32.mrf.mxu2 }
 0x189   : > { %v1519_v24 = vadd.f32 0.112945676, %v1518_v58  ;;  %2631 = vmatpush.msrb.mxu3 %v5059_v6  ;;  %2904 = vmatpush.msrb.mxu0 %v5059_v6  ;;  %v1448_v63 = vadd.f32 %v5943_v40, %v1447_v25  ;;  %vm1450_vm8 = vweird.f32 %v5943_v40  ;;  %v1543_v19 = vmul.f32 2.1237322e-06, %v5969_v56 }
 0x18a   : > { %v1554_v36 = vmul.f32 3.8918573e-05, %v5969_v56  ;;  %vm1449_vm9 = vweird.f32 %v5904_v55  ;;  %vm5989_vm10 = vcmp.eq.f32.partialorder %v1453_v39, 8.507059e+37  ;;  %v1471_v35 = vmul.f32 %v1470_v43, %v5875_v7 }
 0x18b   : > { %4703 = vrcp.f32 %v5982_v33  ;;  %2632 = vmatpush.msrb.mxu3 %v5059_v6  ;;  %2905 = vmatpush.msrb.mxu0 %v5059_v6  ;;  %v1456_v32 = vor.u32 1.1754944e-38, %v1455_v23  ;;  %v1509_v29 = vmul.f32 %v1508_v3, %v5916_v12  ;;  %v1520_v14 = vmul.f32 %v1519_v24, %v5916_v12  ;;  %vm5998_vm11 = vmor %vm1449_vm9, %vm1450_vm8 }
 0x18c   : > { %v2222_v21 = vmul.f32 %v2190_v53, %v5619_v13  ;;  %v6003_v55 = vmul.f32 0.5, %v5938_v10  ;;  %v1544_v28 = vadd.f32 0.00028619796, %v1543_v19  ;;  %v1555_v7 = vadd.f32 0.001143296, %v1554_v36 }
 0x18d   : > { %v1581_v31 = vmul.f32 %v5980_v37, %v5980_v37  ;;  %2633 = vmatpush.msrb.mxu3 %v5059_v6  ;;  %2906 = vmatpush.msrb.mxu0 %v5059_v6  ;;  %v1452_v41 = vsel %vm5998_vm11, %v5943_v40, %v1448_v63  ;;  %v1510_v13 = vadd.f32 0.18741608, %v1509_v29  ;;  %v1521_v53 = vadd.f32 0.4994258, %v1520_v14 }
 0x18e   : > { %4522 = vmatmul.msk.f32.gmra.mxu2 %vm418_vm0, %v5941_v48  ;;  %v6013_v1 = vmul.f32 %v2191_v2, %v5629_v22  ;;  %v1472_v10 = vadd.f32 1.1283791, %v1471_v35  ;;  %v1545_v30 = vmul.f32 %v1544_v28, %v5969_v56  ;;  %v1556_v60 = vmul.f32 %v1555_v7, %v5969_v56 }
 0x18f   : > { %v6017_v5 = vmin.f32 %v1581_v31, 16.0  ;;  %v1493_v38 = vand.u32 2147483647, %v5982_v33  ;;  %v1522_v44 = vmul.f32 %v1521_v53, %v5916_v12  ;;  %v6021_v40 = vmul.f32 0.5, %v793_v50 }
 0x190   : > { %v4493_v48 = vclamps-f32 %v5885_v42, 1.0  ;;  %v1457_v22 = vsel %vm5989_vm10, %v1456_v32, %v1452_v41  ;;  %v1546_v59 = vadd.f32 0.0036580483, %v1545_v30  ;;  %v1557_v26 = vadd.f32 0.014752088, %v1556_v60  ;;  %v798_v60 = vpop.f32.mrf.mxu1 }
 0x191   : > { %v6024_v16 = vpop.eup %4703  ;;  %v1583_v39 = vmul.f32 2.1237322e-06, %v6017_v5  ;;  %v1495_v9 = vand.u32 2147483648, %v5982_v33  ;;  %v1511_v49 = vmul.f32 %v1510_v13, %v5916_v12  ;;  %v6033_v47 = vadd.f32 1.0, %v1522_v44 }
 0x192   : > { %v1485_v0 = vmul.f32 %v6024_v16, %v5982_v33  ;;  %v1547_v42 = vmul.f32 %v1546_v59, %v5969_v56  ;;  %v1558_v25 = vmul.f32 %v1557_v26, %v5969_v56  ;;  %v1594_v50 = vmul.f32 3.8918573e-05, %v6017_v5 }
 0x193   : > { %v1584_v43 = vadd.f32 0.00028619796, %v1583_v39  ;;  %4705 = vrcp.f32 %v6033_v47  ;;  %v2192_v45 = vadd.f32 1.0, %v4493_v48  ;;  %v796_v58 = vadd.f32 %v795_v62, %v5971_v15 }
 0x194   : > { %v1486_v11 = vsub.f32 1.0, %v1485_v0  ;;  %v6041_v6 = vmul.f32 %v1472_v10, %v5859_v57  ;;  %vm1489_vm12 = vweird.f32 %v5982_v33  ;;  %v1548_v12 = vadd.f32 0.05243302, %v1547_v42 }
 0x195   : > { %v1585_v23 = vmul.f32 %v1584_v43, %v6017_v5  ;;  %v6046_v3 = vmul.f32 %v1457_v22, %v5977_v20  ;;  %v1559_v2 = vadd.f32 0.112945676, %v1558_v25  ;;  %v1595_v63 = vadd.f32 0.001143296, %v1594_v50 }
 0x196   : > { %v1487_v24 = vmul.f32 %v6024_v16, %v1486_v11  ;;  %4523 = vmatmul.msk.f32.gmra.mxu2 %vm418_vm0, %v2222_v21  ;;  %vm6050_vm13 = vcmp.eq.f32.partialorder %v1493_v38, 8.507059e+37  ;;  %v1496_v57 = vor.u32 1.1754944e-38, %v1495_v9  ;;  %v1512_v15 = vadd.f32 1.1283791, %v1511_v49  ;;  %v6077_v38 = vpop.f32.mrf.mxu2 }
 0x197   : > { %v1549_v36 = vmul.f32 %v1548_v12, %v5969_v56  ;;  %v1586_v18 = vadd.f32 0.0036580483, %v1585_v23  ;;  %v1560_v35 = vmul.f32 %v1559_v2, %v5969_v56  ;;  %v1596_v20 = vmul.f32 %v1595_v63, %v6017_v5 }
 0x198   : > { %v6058_v32 = vmul.f32 %v2192_v45, %v5676_v51  ;;  %v6060_v29 = vmul.f32 0.70710677, %v796_v58  ;;  %v1488_v14 = vadd.f32 %v6024_v16, %v1487_v24  ;;  %vm1490_vm14 = vweird.f32 %v6024_v16 }
 0x199   : > { %v1550_v21 = vadd.f32 0.18741608, %v1549_v36  ;;  %v1587_v8 = vmul.f32 %v1586_v18, %v6017_v5  ;;  %v6065_v28 = vpop.eup %4705  ;;  %v1533_v7 = vand.u32 2147483647, %v6033_v47  ;;  %v1561_v31 = vadd.f32 0.4994258, %v1560_v35  ;;  %vm6081_vm15 = vmor %vm1489_vm12, %vm1490_vm14 }
 0x19a   : > { %v1597_v41 = vadd.f32 0.014752088, %v1596_v20  ;;  %v1621_v13 = vmul.f32 %v6060_v29, %v6060_v29  ;;  %v6071_v51 = vmul.f32 %v1512_v15, %v5896_v17  ;;  %v1525_v53 = vmul.f32 %v6065_v28, %v6033_v47 }
 0x19b   : > { %v1535_v10 = vand.u32 2147483648, %v6033_v47  ;;  %v4494_v30 = vclamps-f32 %v5974_v4, 1.0  ;;  %v1562_v48 = vmul.f32 %v1561_v31, %v5969_v56  ;;  %v1588_v17 = vadd.f32 0.05243302, %v1587_v8 }
 0x19c   : > { %v1598_v22 = vmul.f32 %v1597_v41, %v6017_v5  ;;  %v6087_v59 = vmul.f32 0.5, %v796_v58  ;;  %v1492_v4 = vsel %vm6081_vm15, %v6024_v16, %v1488_v14  ;;  %v1526_v26 = vsub.f32 1.0, %v1525_v53 }
 0x19d   : > { %v1551_v39 = vmul.f32 %v1550_v21, %v5969_v56  ;;  %v6093_v62 = vmin.f32 %v1621_v13, 16.0  ;;  %vm6095_vm1 = vcmp.eq.f32.partialorder %v1533_v7, 8.507059e+37  ;;  %v6099_v0 = vadd.f32 1.0, %v1562_v48  ;;  %v801_v13 = vpop.f32.mrf.mxu1 }
 0x19e   : > { %4524 = vmatmul.msk.f32.gmra.mxu2 %vm418_vm0, %v6013_v1  ;;  %v1589_v9 = vmul.f32 %v1588_v17, %v6017_v5  ;;  %v1599_v49 = vadd.f32 0.112945676, %v1598_v22  ;;  %v799_v42 = vadd.f32 %v798_v60, %v589_v52  ;;  %v1527_v16 = vmul.f32 %v6065_v28, %v1526_v26  ;;  %v6136_v8 = vpop.f32.mrf.mxu2 }
 0x19f   : > { %v1536_v25 = vor.u32 1.1754944e-38, %v1535_v10  ;;  %v1623_v56 = vmul.f32 2.1237322e-06, %v6093_v62  ;;  %v1634_v43 = vmul.f32 3.8918573e-05, %v6093_v62  ;;  %v1497_v50 = vsel %vm6050_vm13, %v1496_v57, %v1492_v4 }
 0x1a0   : > { %vm1530_vm2 = vweird.f32 %v6065_v28  ;;  %4707 = vrcp.f32 %v6099_v0  ;;  %v2193_v11 = vadd.f32 1.0, %v4494_v30  ;;  %v1528_v1 = vadd.f32 %v6065_v28, %v1527_v16 }
 0x1a1   : > { %v1552_v45 = vadd.f32 1.1283791, %v1551_v39  ;;  %v1600_v52 = vmul.f32 %v1599_v49, %v6017_v5  ;;  %v1624_v58 = vadd.f32 0.00028619796, %v1623_v56  ;;  %vm1529_vm3 = vweird.f32 %v6033_v47 }
 0x1a2   : > { %v1590_v12 = vadd.f32 0.18741608, %v1589_v9  ;;  %v1635_v23 = vadd.f32 0.001143296, %v1634_v43  ;;  %v6114_v24 = vmul.f32 0.70710677, %v799_v42  ;;  %v6117_v2 = vmul.f32 %v1497_v50, %v6041_v6  ;;  %vm6119_vm4 = vmor %vm1529_vm3, %vm1530_vm2 }
 0x1a3   : > { %v1573_v19 = vand.u32 2147483647, %v6099_v0  ;;  %v1601_v57 = vadd.f32 0.4994258, %v1600_v52  ;;  %v1625_v15 = vmul.f32 %v1624_v58, %v6093_v62  ;;  %v1532_v47 = vsel %vm6119_vm4, %v6065_v28, %v1528_v1 }
 0x1a4   : > { %v1636_v36 = vmul.f32 %v1635_v23, %v6093_v62  ;;  %v2225_v18 = vmul.f32 %v2193_v11, %v5805_v34  ;;  %v1661_v6 = vmul.f32 %v6114_v24, %v6114_v24  ;;  %v1553_v35 = vmul.f32 %v1552_v45, %v5957_v54 }
 0x1a5   : > { %v1602_v20 = vmul.f32 %v1601_v57, %v6017_v5  ;;  %v1626_v14 = vadd.f32 0.0036580483, %v1625_v15  ;;  %v6134_v21 = vmul.f32 0.5, %v799_v42  ;;  %v1575_v31 = vand.u32 2147483648, %v6099_v0 }
 0x1a6   : > { %v4708_v7 = vpop.eup %4707  ;;  %v1591_v28 = vmul.f32 %v1590_v12, %v6017_v5  ;;  %4525 = vmatmul.msk.f32.gmra.mxu2 %vm418_vm0, %v6058_v32  ;;  %v1637_v34 = vadd.f32 0.014752088, %v1636_v36  ;;  %v6142_v41 = vmin.f32 %v1661_v6, 16.0  ;;  %v1537_v54 = vsel %vm6095_vm1, %v1536_v25, %v1532_v47 }
 0x1a7   : > { %v1565_v53 = vmul.f32 %v4708_v7, %v6099_v0  ;;  %vm6147_vm5 = vcmp.eq.f32.partialorder %v1573_v19, 8.507059e+37  ;;  %v6151_v30 = vadd.f32 1.0, %v1602_v20  ;;  %v1627_v5 = vmul.f32 %v1626_v14, %v6093_v62  ;;  %v6180_v19 = vpop.f32.mrf.mxu2 }
 0x1a8   : > { %v1638_v60 = vmul.f32 %v1637_v34, %v6093_v62  ;;  %v1663_v32 = vmul.f32 2.1237322e-06, %v6142_v41  ;;  %v1674_v44 = vmul.f32 3.8918573e-05, %v6142_v41  ;;  %v4495_v17 = vclamps-f32 %v6046_v3, 1.0 }
 0x1a9   : > { %v1566_v48 = vsub.f32 1.0, %v1565_v53  ;;  %4709 = vrcp.f32 %v6151_v30  ;;  %v6160_v22 = vadd.f32 %v801_v13, %v6077_v38  ;;  %vm1569_vm6 = vweird.f32 %v6099_v0 }
 0x1aa   : > { %v1592_v4 = vadd.f32 1.1283791, %v1591_v28  ;;  %v1628_v26 = vadd.f32 0.05243302, %v1627_v5  ;;  %v1639_v39 = vadd.f32 0.112945676, %v1638_v60  ;;  %vm1570_vm7 = vweird.f32 %v4708_v7  ;;  %v804_v28 = vpop.f32.mrf.mxu1 }
 0x1ab   : > { %v1567_v33 = vmul.f32 %v4708_v7, %v1566_v48  ;;  %v1664_v9 = vadd.f32 0.00028619796, %v1663_v32  ;;  %v1675_v49 = vadd.f32 0.001143296, %v1674_v44  ;;  %v6164_v42 = vmul.f32 %v1537_v54, %v6071_v51  ;;  %vm1571_vm8 = vmor %vm1569_vm6, %vm1570_vm7 }
 0x1ac   : > { %v1576_v16 = vor.u32 1.1754944e-38, %v1575_v31  ;;  %v1629_v25 = vmul.f32 %v1628_v26, %v6093_v62  ;;  %v1640_v3 = vmul.f32 %v1639_v39, %v6093_v62  ;;  %v6171_v50 = vmul.f32 0.70710677, %v6160_v22 }
 0x1ad   : > { %v1568_v56 = vadd.f32 %v4708_v7, %v1567_v33  ;;  %v1665_v38 = vmul.f32 %v1664_v9, %v6142_v41  ;;  %v1676_v43 = vmul.f32 %v1675_v49, %v6142_v41  ;;  %v1593_v11 = vmul.f32 %v1592_v4, %v5980_v37 }
 0x1ae   : > { %v1613_v51 = vand.u32 2147483647, %v6151_v30  ;;  %v1641_v1 = vadd.f32 0.4994258, %v1640_v3  ;;  %4526 = vmatmul.msk.f32.gmra.mxu2 %vm418_vm0, %v2225_v18  ;;  %v2194_v45 = vadd.f32 1.0, %v4495_v17  ;;  %v1701_v63 = vmul.f32 %v6171_v50, %v6171_v50 }
 0x1af   : > { %v4710_v52 = vpop.eup %4709  ;;  %v1572_v58 = vsel %vm1571_vm8, %v4708_v7, %v1568_v56  ;;  %v1666_v12 = vadd.f32 0.0036580483, %v1665_v38  ;;  %v1677_v23 = vadd.f32 0.014752088, %v1676_v43  ;;  %v1615_v57 = vand.u32 2147483648, %v6151_v30  ;;  %v6216_v56 = vpop.f32.mrf.mxu2 }
 0x1b0   : > { %v1577_v0 = vsel %vm6147_vm5, %v1576_v16, %v1572_v58  ;;  %v1605_v37 = vmul.f32 %v4710_v52, %v6151_v30  ;;  %v1630_v15 = vadd.f32 0.18741608, %v1629_v25  ;;  %v1642_v36 = vmul.f32 %v1641_v1, %v6093_v62 }
 0x1b1   : > { %v1578_v47 = vmul.f32 %v1577_v0, %v1553_v35  ;;  %v1667_v18 = vmul.f32 %v1666_v12, %v6142_v41  ;;  %v1678_v6 = vmul.f32 %v1677_v23, %v6142_v41  ;;  %v2226_v14 = vmul.f32 %v2194_v45, %v5868_v61 }
 0x1b2   : > { %v1606_v20 = vsub.f32 1.0, %v1605_v37  ;;  %v6190_v7 = vmin.f32 %v1701_v63, 16.0  ;;  %v4496_v31 = vclamps-f32 %v6117_v2, 1.0  ;;  %vm1610_vm9 = vweird.f32 %v4710_v52  ;;  %v807_v0 = vpop.f32.mrf.mxu1 }
 0x1b3   : > { %v6193_v34 = vadd.f32 1.0, %v1642_v36  ;;  %v1668_v13 = vadd.f32 0.05243302, %v1667_v18  ;;  %v1679_v54 = vadd.f32 0.112945676, %v1678_v6  ;;  %v1631_v53 = vmul.f32 %v1630_v15, %v6093_v62  ;;  %v2459_v6 = vld [vmem:[%s6262_s20 + $0x8] sm:$0xff] }
 0x1b4   : > { %v1607_v35 = vmul.f32 %v4710_v52, %v1606_v20  ;;  %v1703_v10 = vmul.f32 2.1237322e-06, %v6190_v7  ;;  %v1714_v5 = vmul.f32 3.8918573e-05, %v6190_v7  ;;  %v4498_v60 = vclamps-f32 %v1578_v47, 1.0 }
 0x1b5   : > { %vm1609_vm10 = vweird.f32 %v6151_v30  ;;  %vm6199_vm11 = vcmp.eq.f32.partialorder %v1613_v51, 8.507059e+37  ;;  %4711 = vrcp.f32 %v6193_v34  ;;  %v1669_v32 = vmul.f32 %v1668_v13, %v6142_v41 }
 0x1b6   : > { %v1608_v2 = vadd.f32 %v4710_v52, %v1607_v35  ;;  %v1680_v44 = vmul.f32 %v1679_v54, %v6142_v41  ;;  %4527 = vmatmul.msk.f32.gmra.mxu2 %vm418_vm0, %v2226_v14  ;;  %v2195_v62 = vadd.f32 1.0, %v4496_v31  ;;  %vm1611_vm12 = vmor %vm1609_vm10, %vm1610_vm9  ;;  %v1616_v48 = vor.u32 1.1754944e-38, %v1615_v57 }
 0x1b7   : > { %v1704_v17 = vadd.f32 0.00028619796, %v1703_v10  ;;  %v1715_v4 = vadd.f32 0.001143296, %v1714_v5  ;;  %v805_v30 = vadd.f32 %v804_v28, %v6136_v8  ;;  %v1632_v39 = vadd.f32 1.1283791, %v1631_v53 }
 0x1b8   : > { %v1612_v26 = vsel %vm1611_vm12, %v4710_v52, %v1608_v2  ;;  %v1681_v33 = vadd.f32 0.4994258, %v1680_v44  ;;  %v6210_v9 = vmul.f32 0.5, %v6160_v22  ;;  %v2197_v49 = vadd.f32 1.0, %v4498_v60  ;;  %v6264_v2 = vpop.f32.mrf.mxu2 }
 0x1b9   : > { %v1617_v16 = vsel %vm6199_vm11, %v1616_v48, %v1612_v26  ;;  %v1705_v25 = vmul.f32 %v1704_v17, %v6190_v7  ;;  %v1716_v3 = vmul.f32 %v1715_v4, %v6190_v7  ;;  %v1653_v38 = vand.u32 2147483647, %v6193_v34 }
 0x1ba   : > { %v1670_v43 = vadd.f32 0.18741608, %v1669_v32  ;;  %v1682_v8 = vmul.f32 %v1681_v33, %v6142_v41  ;;  %v2227_v51 = vmul.f32 %v2195_v62, %v5919_v27  ;;  %v1618_v22 = vmul.f32 %v1617_v16, %v1593_v11  ;;  %v810_v16 = vpop.f32.mrf.mxu1 }
 0x1bb   : > { %v4712_v1 = vpop.eup %4711  ;;  %v1706_v45 = vadd.f32 0.0036580483, %v1705_v25  ;;  %v1717_v52 = vadd.f32 0.014752088, %v1716_v3  ;;  %v6221_v58 = vmul.f32 0.70710677, %v805_v30  ;;  %v1633_v12 = vmul.f32 %v1632_v39, %v6060_v29 }
 0x1bc   : > { %v1645_v23 = vmul.f32 %v4712_v1, %v6193_v34  ;;  %vm1649_vm13 = vweird.f32 %v6193_v34  ;;  %v1655_v63 = vand.u32 2147483648, %v6193_v34  ;;  %v6227_v37 = vadd.f32 1.0, %v1682_v8  ;;  %v2458_v25 = vld [vmem:[%s6262_s20] sm:$0xff] }
 0x1bd   : > { %v1707_v57 = vmul.f32 %v1706_v45, %v6190_v7  ;;  %v1718_v27 = vmul.f32 %v1717_v52, %v6190_v7  ;;  %v1741_v11 = vmul.f32 %v6221_v58, %v6221_v58  ;;  %v6234_v15 = vmul.f32 %v2197_v49, %v6003_v55 }
 0x1be   : > { %v1646_v29 = vsub.f32 1.0, %v1645_v23  ;;  %v1671_v47 = vmul.f32 %v1670_v43, %v6142_v41  ;;  %4528 = vmatmul.msk.f32.gmra.mxu2 %vm418_vm0, %v2227_v51  ;;  %v4497_v36 = vclamps-f32 %v6164_v42, 1.0  ;;  %v4499_v18 = vclamps-f32 %v1618_v22, 1.0 }
 0x1bf   : > { %vm6239_vm14 = vcmp.eq.f32.partialorder %v1653_v38, 8.507059e+37  ;;  %4713 = vrcp.f32 %v6227_v37  ;;  %v808_v20 = vadd.f32 %v807_v0, %v6180_v19  ;;  %vm1650_vm15 = vweird.f32 %v4712_v1 }
 0x1c0   : > { %v1647_v14 = vmul.f32 %v4712_v1, %v1646_v29  ;;  %v1708_v55 = vadd.f32 0.05243302, %v1707_v57  ;;  %v1719_v31 = vadd.f32 0.112945676, %v1718_v27  ;;  %v1656_v28 = vor.u32 1.1754944e-38, %v1655_v63  ;;  %vm1651_vm1 = vmor %vm1649_vm13, %vm1650_vm15 }
 0x1c1   : > { %v6245_v41 = vmul.f32 0.5, %v805_v30  ;;  %v6247_v13 = vmin.f32 %v1741_v11, 16.0  ;;  %v2196_v42 = vadd.f32 1.0, %v4497_v36  ;;  %v1672_v35 = vadd.f32 1.1283791, %v1671_v47 }
 0x1c2   : > { %v1648_v54 = vadd.f32 %v4712_v1, %v1647_v14  ;;  %v1709_v53 = vmul.f32 %v1708_v55, %v6190_v7  ;;  %v1720_v10 = vmul.f32 %v1719_v31, %v6190_v7  ;;  %v6256_v61 = vmul.f32 0.70710677, %v808_v20  ;;  %v6311_v31 = vpop.f32.mrf.mxu2 }
 0x1c3   : > { %v1743_v19 = vmul.f32 2.1237322e-06, %v6247_v13  ;;  %v1754_v5 = vmul.f32 3.8918573e-05, %v6247_v13  ;;  %v2228_v60 = vmul.f32 %v2196_v42, %v5946_v46  ;;  %v2198_v32 = vadd.f32 1.0, %v4499_v18  ;;  %v2731_v18 = vld [vmem:[%s6289_s29] sm:$0xff] }
 0x1c4   : > { %v1652_v44 = vsel %vm1651_vm1, %v4712_v1, %v1648_v54  ;;  %v1710_v34 = vadd.f32 0.18741608, %v1709_v53  ;;  %v1721_v62 = vadd.f32 0.4994258, %v1720_v10  ;;  %v1781_v30 = vmul.f32 %v6256_v61, %v6256_v61 }
 0x1c5   : > { %v4714_v48 = vpop.eup %4713  ;;  %v1657_v17 = vsel %vm6239_vm14, %v1656_v28, %v1652_v44  ;;  %v1744_v4 = vadd.f32 0.00028619796, %v1743_v19  ;;  %v1755_v46 = vadd.f32 0.001143296, %v1754_v5  ;;  %v1673_v26 = vmul.f32 %v1672_v35, %v6114_v24  ;;  %v813_v44 = vpop.f32.mrf.mxu1 }
 0x1c6   : > { %v1685_v39 = vmul.f32 %v4714_v48, %v6227_v37  ;;  %v1693_v33 = vand.u32 2147483647, %v6227_v37  ;;  %v1695_v49 = vand.u32 2147483648, %v6227_v37  ;;  %4529 = vmatmul.msk.f32.gmra.mxu2 %vm418_vm0, %v2228_v60  ;;  %v1722_v3 = vmul.f32 %v1721_v62, %v6190_v7 }
 0x1c7   : > { %v1745_v38 = vmul.f32 %v1744_v4, %v6247_v13  ;;  %v1756_v43 = vmul.f32 %v1755_v46, %v6247_v13  ;;  %v6279_v8 = vmin.f32 %v1781_v30, 16.0  ;;  %v1658_v24 = vmul.f32 %v1657_v17, %v1633_v12 }
 0x1c8   : > { %v1686_v51 = vsub.f32 1.0, %v1685_v39  ;;  %vm1689_vm2 = vweird.f32 %v6227_v37  ;;  %v1711_v1 = vmul.f32 %v1710_v34, %v6190_v7  ;;  %v6283_v22 = vadd.f32 1.0, %v1722_v3 }
 0x1c9   : > { %v1746_v45 = vadd.f32 0.0036580483, %v1745_v38  ;;  %v1757_v52 = vadd.f32 0.014752088, %v1756_v43  ;;  %v2490_v23 = vmul.f32 %v2458_v25, %v6264_v2  ;;  %vm1690_vm3 = vweird.f32 %v4714_v48 }
 0x1ca   : > { %v1687_v63 = vmul.f32 %v4714_v48, %v1686_v51  ;;  %v1783_v12 = vmul.f32 2.1237322e-06, %v6279_v8  ;;  %v811_v0 = vadd.f32 %v810_v16, %v6216_v56  ;;  %vm6294_vm4 = vcmp.eq.f32.partialorder %v1693_v33, 8.507059e+37  ;;  %vm1691_vm5 = vmor %vm1689_vm2, %vm1690_vm3 }
 0x1cb   : > { %v1696_v57 = vor.u32 1.1754944e-38, %v1695_v49  ;;  %4715 = vrcp.f32 %v6283_v22  ;;  %v6299_v27 = vmul.f32 0.5, %v808_v20  ;;  %4546 = vmatmul.msk.f32.vlgmr.msrb.gmra.mxu3 %vm418_vm0, %v2490_v23  ;;  %v4500_v11 = vclamps-f32 %v1658_v24, 1.0 }
 0x1cc   : > { %v1688_v29 = vadd.f32 %v4714_v48, %v1687_v63  ;;  %v1747_v47 = vmul.f32 %v1746_v45, %v6247_v13  ;;  %v1758_v36 = vmul.f32 %v1757_v52, %v6247_v13  ;;  %v2230_v56 = vmul.f32 %v2198_v32, %v6021_v40 }
 0x1cd   : > { %v1712_v14 = vadd.f32 1.1283791, %v1711_v1  ;;  %v1784_v55 = vadd.f32 0.00028619796, %v1783_v12  ;;  %v1794_v20 = vmul.f32 3.8918573e-05, %v6279_v8  ;;  %v2763_v10 = vmul.f32 %v2731_v18, %v6264_v2 }
 0x1ce   : > { %v1692_v28 = vsel %vm1691_vm5, %v4714_v48, %v1688_v29  ;;  %v1748_v42 = vadd.f32 0.05243302, %v1747_v47  ;;  %v1759_v54 = vadd.f32 0.112945676, %v1758_v36  ;;  %4530 = vmatmul.msk.f32.gmra.mxu2 %vm418_vm0, %v6234_v15  ;;  %v6315_v35 = vmul.f32 0.70710677, %v811_v0  ;;  %v604_v15 = vpop.f32.mrf.mxu3 }
 0x1cf   : > { %v1697_v40 = vsel %vm6294_vm4, %v1696_v57, %v1692_v28  ;;  %v1785_v37 = vmul.f32 %v1784_v55, %v6279_v8  ;;  %v1795_v53 = vadd.f32 0.001143296, %v1794_v20  ;;  %v6323_v60 = vmul.f32 0.5, %v811_v0  ;;  %4578 = vmatmul.msk.f32.vlgmr.msrb.gmra.mxu0 %vm418_vm0, %v2763_v10  ;;  %v2732_v20 = vld [vmem:[%s6289_s29 + $0x8] sm:$0xff]  ;;  %v816_v28 = vpop.f32.mrf.mxu1 }
 0x1d0   : > { %v1749_v19 = vmul.f32 %v1748_v42, %v6247_v13  ;;  %v1760_v5 = vmul.f32 %v1759_v54, %v6247_v13  ;;  %v1821_v32 = vmul.f32 %v6315_v35, %v6315_v35  ;;  %v2199_v62 = vadd.f32 1.0, %v4500_v11  ;;  %v6348_v11 = vpop.f32.mrf.mxu2 }
 0x1d1   : > { %v4716_v34 = vpop.eup %4715  ;;  %v1786_v48 = vadd.f32 0.0036580483, %v1785_v37  ;;  %v1796_v17 = vmul.f32 %v1795_v53, %v6279_v8  ;;  %v2491_v4 = vmul.f32 %v2459_v6, %v6311_v31  ;;  %v1698_v46 = vmul.f32 %v1697_v40, %v1673_v26 }
 0x1d2   : > { %v1713_v30 = vmul.f32 %v1712_v14, %v6171_v50  ;;  %v1725_v39 = vmul.f32 %v4716_v34, %v6283_v22  ;;  %v1750_v33 = vadd.f32 0.18741608, %v1749_v19  ;;  %v1761_v49 = vadd.f32 0.4994258, %v1760_v5 }
 0x1d3   : > { %v1787_v16 = vmul.f32 %v1786_v48, %v6279_v8  ;;  %v1797_v25 = vadd.f32 0.014752088, %v1796_v17  ;;  %v6333_v3 = vmin.f32 %v1821_v32, 16.0  ;;  %4547 = vmatmul.msk.f32.gmra.mxu3 %vm418_vm0, %v2491_v4  ;;  %v1733_v43 = vand.u32 2147483647, %v6283_v22 }
 0x1d4   : > { %v1726_v38 = vsub.f32 1.0, %v1725_v39  ;;  %v1735_v24 = vand.u32 2147483648, %v6283_v22  ;;  %v6338_v51 = vadd.f32 %v813_v44, %v604_v15  ;;  %v1762_v50 = vmul.f32 %v1761_v49, %v6247_v13 }
 0x1d5   : > { %v1788_v26 = vadd.f32 0.05243302, %v1787_v16  ;;  %v1798_v1 = vmul.f32 %v1797_v25, %v6279_v8  ;;  %v1823_v45 = vmul.f32 2.1237322e-06, %v6333_v3  ;;  %v4501_v52 = vclamps-f32 %v1698_v46, 1.0 }
 0x1d6   : > { %v1727_v23 = vmul.f32 %v4716_v34, %v1726_v38  ;;  %vm1730_vm6 = vweird.f32 %v4716_v34  ;;  %v1834_v63 = vmul.f32 3.8918573e-05, %v6333_v3  ;;  %4531 = vmatmul.msk.f32.gmra.mxu2 %vm418_vm0, %v2230_v56  ;;  %v1751_v12 = vmul.f32 %v1750_v33, %v6247_v13 }
 0x1d7   : > { %v6346_v0 = vadd.f32 1.0, %v1762_v50  ;;  %v1799_v7 = vadd.f32 0.112945676, %v1798_v1  ;;  %v1824_v57 = vadd.f32 0.00028619796, %v1823_v45  ;;  %vm1729_vm7 = vweird.f32 %v6283_v22  ;;  %v607_v22 = vpop.f32.mrf.mxu3 }
 0x1d8   : > { %v1728_v29 = vadd.f32 %v4716_v34, %v1727_v23  ;;  %v1789_v47 = vmul.f32 %v1788_v26, %v6279_v8  ;;  %v1835_v36 = vadd.f32 0.001143296, %v1834_v63  ;;  %v2231_v18 = vmul.f32 %v2199_v62, %v6087_v59  ;;  %vm1731_vm8 = vmor %vm1729_vm7, %vm1730_vm6  ;;  %v6385_v1 = vpop.f32.mrf.mxu2 }
 0x1d9   : > { %v1736_v6 = vor.u32 1.1754944e-38, %v1735_v24  ;;  %4717 = vrcp.f32 %v6346_v0  ;;  %v6355_v13 = vmul.f32 0.70710677, %v6338_v51  ;;  %vm1734_vm9 = vcmp.eq.f32.partialorder %v1733_v43, 8.507059e+37 }
 0x1da   : > { %v1732_v56 = vsel %vm1731_vm8, %v4716_v34, %v1728_v29  ;;  %v1800_v14 = vmul.f32 %v1799_v7, %v6279_v8  ;;  %v1825_v55 = vmul.f32 %v1824_v57, %v6333_v3  ;;  %v2200_v42 = vadd.f32 1.0, %v4501_v52 }
 0x1db   : > { %v1737_v54 = vsel %vm1734_vm9, %v1736_v6, %v1732_v56  ;;  %v1752_v40 = vadd.f32 1.1283791, %v1751_v12  ;;  %v1836_v59 = vmul.f32 %v1835_v36, %v6333_v3  ;;  %v1790_v53 = vadd.f32 0.18741608, %v1789_v47 }
 0x1dc   : > { %v1738_v37 = vmul.f32 %v1737_v54, %v1713_v30  ;;  %v1801_v10 = vadd.f32 0.4994258, %v1800_v14  ;;  %v1826_v19 = vadd.f32 0.0036580483, %v1825_v55  ;;  %v1861_v32 = vmul.f32 %v6355_v13, %v6355_v13 }
 0x1dd   : > { %v1837_v5 = vadd.f32 0.014752088, %v1836_v59  ;;  %v2764_v15 = vmul.f32 %v2732_v20, %v6311_v31  ;;  %v6364_v44 = vadd.f32 %v816_v28, %v607_v22  ;;  %v1773_v62 = vand.u32 2147483647, %v6346_v0 }
 0x1de   : > { %v4502_v34 = vclamps-f32 %v1738_v37, 1.0  ;;  %v1802_v48 = vmul.f32 %v1801_v10, %v6279_v8  ;;  %v1827_v17 = vmul.f32 %v1826_v19, %v6333_v3  ;;  %4532 = vmatmul.msk.f32.gmra.mxu2 %vm418_vm0, %v2231_v18  ;;  %v1775_v46 = vand.u32 2147483648, %v6346_v0 }
 0x1df   : > { %v4718_v4 = vpop.eup %4717  ;;  %v1838_v30 = vmul.f32 %v1837_v5, %v6333_v3  ;;  %v6372_v39 = vmin.f32 %v1861_v32, 16.0  ;;  %4579 = vmatmul.msk.f32.gmra.mxu0 %vm418_vm0, %v2764_v15  ;;  %v6376_v33 = vmul.f32 0.70710677, %v6364_v44  ;;  %v2232_v49 = vmul.f32 %v2200_v42, %v6134_v21 }
 0x1e0   : > { %v2201_v16 = vadd.f32 1.0, %v4502_v34  ;;  %v1765_v25 = vmul.f32 %v4718_v4, %v6346_v0  ;;  %v1791_v38 = vmul.f32 %v1790_v53, %v6279_v8  ;;  %v6381_v43 = vadd.f32 1.0, %v1802_v48 }
 0x1e1   : > { %v1828_v24 = vadd.f32 0.05243302, %v1827_v17  ;;  %v1839_v50 = vadd.f32 0.112945676, %v1838_v30  ;;  %v1901_v26 = vmul.f32 %v6376_v33, %v6376_v33  ;;  %v1753_v45 = vmul.f32 %v1752_v40, %v6221_v58  ;;  %v2460_v58 = vld [vmem:[%s6262_s20 + $0x10] sm:$0xff]  ;;  %v819_v30 = vpop.f32.mrf.mxu1 }
 0x1e2   : > { %v1766_v52 = vsub.f32 1.0, %v1765_v25  ;;  %v1863_v21 = vmul.f32 2.1237322e-06, %v6372_v39  ;;  %v1874_v23 = vmul.f32 3.8918573e-05, %v6372_v39  ;;  %vm1769_vm10 = vweird.f32 %v6346_v0 }
 0x1e3   : > { %vm6391_vm11 = vcmp.eq.f32.partialorder %v1773_v62, 8.507059e+37  ;;  %v1776_v63 = vor.u32 1.1754944e-38, %v1775_v46  ;;  %4719 = vrcp.f32 %v6381_v43  ;;  %vm1770_vm12 = vweird.f32 %v4718_v4  ;;  %v610_v62 = vpop.f32.mrf.mxu3 }
 0x1e4   : > { %v1767_v12 = vmul.f32 %v4718_v4, %v1766_v52  ;;  %v1840_v7 = vmul.f32 %v1839_v50, %v6333_v3  ;;  %v1864_v57 = vadd.f32 0.00028619796, %v1863_v21  ;;  %v2233_v29 = vmul.f32 %v2201_v16, %v6210_v9  ;;  %vm1771_vm13 = vmor %vm1769_vm10, %vm1770_vm12 }
 0x1e5   : > { %v1792_v47 = vadd.f32 1.1283791, %v1791_v38  ;;  %v1875_v36 = vadd.f32 0.001143296, %v1874_v23  ;;  %v6399_v18 = vmin.f32 %v1901_v26, 16.0  ;;  %v1829_v56 = vmul.f32 %v1828_v24, %v6333_v3  ;;  %v2733_v23 = vld [vmem:[%s6289_s29 + $0x10] sm:$0xff] }
 0x1e6   : > { %v1768_v6 = vadd.f32 %v4718_v4, %v1767_v12  ;;  %v1841_v14 = vadd.f32 0.4994258, %v1840_v7  ;;  %v1865_v55 = vmul.f32 %v1864_v57, %v6372_v39  ;;  %4533 = vmatmul.msk.f32.gmra.mxu2 %vm418_vm0, %v2232_v49  ;;  %v2492_v28 = vmul.f32 %v2460_v58, %v6348_v11  ;;  %v6422_v49 = vpop.f32.mrf.mxu2  ;;  %v2461_v7 = vld [vmem:[%s6262_s20 + $0x18] sm:$0xff] }
 0x1e7   : > { %v1876_v20 = vmul.f32 %v1875_v36, %v6372_v39  ;;  %v1903_v22 = vmul.f32 2.1237322e-06, %v6399_v18  ;;  %v1914_v9 = vmul.f32 3.8918573e-05, %v6399_v18  ;;  %v1813_v54 = vand.u32 2147483647, %v6381_v43 }
 0x1e8   : > { %v1772_v42 = vsel %vm1771_vm13, %v4718_v4, %v1768_v6  ;;  %v1842_v40 = vmul.f32 %v1841_v14, %v6333_v3  ;;  %v1866_v59 = vadd.f32 0.0036580483, %v1865_v55  ;;  %4548 = vmatmul.msk.f32.gmra.mxu3 %vm418_vm0, %v2492_v28  ;;  %v1815_v15 = vand.u32 2147483648, %v6381_v43 }
 0x1e9   : > { %v4720_v37 = vpop.eup %4719  ;;  %v1777_v53 = vsel %vm6391_vm11, %v1776_v63, %v1772_v42  ;;  %v1877_v0 = vadd.f32 0.014752088, %v1876_v20  ;;  %v1904_v10 = vadd.f32 0.00028619796, %v1903_v22  ;;  %v1915_v19 = vadd.f32 0.001143296, %v1914_v9 }
 0x1ea   : > { %v1778_v5 = vmul.f32 %v1777_v53, %v1753_v45  ;;  %v1805_v32 = vmul.f32 %v4720_v37, %v6381_v43  ;;  %v1830_v34 = vadd.f32 0.18741608, %v1829_v56  ;;  %v6417_v48 = vadd.f32 1.0, %v1842_v40  ;;  %v2734_v53 = vld [vmem:[%s6289_s29 + $0x18] sm:$0xff] }
 0x1eb   : > { %v1867_v17 = vmul.f32 %v1866_v59, %v6372_v39  ;;  %v1878_v4 = vmul.f32 %v1877_v0, %v6372_v39  ;;  %v1905_v46 = vmul.f32 %v1904_v10, %v6399_v18  ;;  %v1793_v25 = vmul.f32 %v1792_v47, %v6256_v61  ;;  %v613_v0 = vpop.f32.mrf.mxu3 }
 0x1ec   : > { %v4503_v16 = vclamps-f32 %v1778_v5, 1.0  ;;  %v1806_v38 = vsub.f32 1.0, %v1805_v32  ;;  %v1916_v24 = vmul.f32 %v1915_v19, %v6399_v18  ;;  %vm1809_vm14 = vweird.f32 %v6381_v43 }
 0x1ed   : > { %vm1810_vm15 = vweird.f32 %v4720_v37  ;;  %vm6427_vm1 = vcmp.eq.f32.partialorder %v1813_v54, 8.507059e+37  ;;  %4721 = vrcp.f32 %v6417_v48  ;;  %v1868_v52 = vadd.f32 0.05243302, %v1867_v17 }
 0x1ee   : > { %v2202_v26 = vadd.f32 1.0, %v4503_v16  ;;  %v1807_v45 = vmul.f32 %v4720_v37, %v1806_v38  ;;  %v1879_v21 = vadd.f32 0.112945676, %v1878_v4  ;;  %4534 = vmatmul.msk.f32.gmra.mxu2 %vm418_vm0, %v2233_v29  ;;  %v1816_v61 = vor.u32 1.1754944e-38, %v1815_v15  ;;  %vm1811_vm2 = vmor %vm1809_vm14, %vm1810_vm15  ;;  %v822_v15 = vpop.f32.mrf.mxu1 }
 0x1ef   : > { %v1831_v8 = vmul.f32 %v1830_v34, %v6333_v3  ;;  %v1906_v63 = vadd.f32 0.0036580483, %v1905_v46  ;;  %v1917_v12 = vadd.f32 0.014752088, %v1916_v24  ;;  %v1869_v47 = vmul.f32 %v1868_v52, %v6372_v39  ;;  %v6462_v34 = vpop.f32.mrf.mxu2 }
 0x1f0   : > { %v2234_v57 = vmul.f32 %v2202_v26, %v6245_v41  ;;  %v1808_v58 = vadd.f32 %v4720_v37, %v1807_v45  ;;  %v1880_v36 = vmul.f32 %v1879_v21, %v6372_v39  ;;  %v2765_v3 = vmul.f32 %v2733_v23, %v6348_v11 }
 0x1f1   : > { %v1907_v6 = vmul.f32 %v1906_v63, %v6399_v18  ;;  %v1918_v29 = vmul.f32 %v1917_v12, %v6399_v18  ;;  %v6445_v56 = vadd.f32 %v819_v30, %v610_v62  ;;  %v1870_v41 = vadd.f32 0.18741608, %v1869_v47 }
 0x1f2   : > { %v1812_v14 = vsel %vm1811_vm2, %v4720_v37, %v1808_v58  ;;  %v1881_v55 = vadd.f32 0.4994258, %v1880_v36  ;;  %v2493_v20 = vmul.f32 %v2461_v7, %v6385_v1  ;;  %v1832_v43 = vadd.f32 1.1283791, %v1831_v8  ;;  %4580 = vmatmul.msk.f32.gmra.mxu0 %vm418_vm0, %v2765_v3  ;;  %v2462_v8 = vld [vmem:[%s6262_s20 + $0x20] sm:$0xff] }
 0x1f3   : > { %v4722_v22 = vpop.eup %4721  ;;  %v1817_v9 = vsel %vm6427_vm1, %v1816_v61, %v1812_v14  ;;  %v1908_v28 = vadd.f32 0.05243302, %v1907_v6  ;;  %v1919_v42 = vadd.f32 0.112945676, %v1918_v29  ;;  %v1853_v59 = vand.u32 2147483647, %v6417_v48 }
 0x1f4   : > { %v1818_v54 = vmul.f32 %v1817_v9, %v1793_v25  ;;  %v1845_v40 = vmul.f32 %v4722_v22, %v6417_v48  ;;  %v1855_v37 = vand.u32 2147483648, %v6417_v48  ;;  %4549 = vmatmul.msk.f32.gmra.mxu3 %vm418_vm0, %v2493_v20  ;;  %v1882_v10 = vmul.f32 %v1881_v55, %v6372_v39 }
 0x1f5   : > { %v1909_v19 = vmul.f32 %v1908_v28, %v6399_v18  ;;  %v1920_v5 = vmul.f32 %v1919_v42, %v6399_v18  ;;  %v6460_v32 = vmul.f32 0.70710677, %v6445_v56  ;;  %vm1850_vm3 = vweird.f32 %v4722_v22 }
 0x1f6   : > { %v4504_v62 = vclamps-f32 %v1818_v54, 1.0  ;;  %v1846_v17 = vsub.f32 1.0, %v1845_v40  ;;  %v1871_v4 = vmul.f32 %v1870_v41, %v6372_v39  ;;  %4535 = vmatmul.msk.f32.gmra.mxu2 %vm418_vm0, %v2234_v57  ;;  %v6466_v46 = vadd.f32 1.0, %v1882_v10  ;;  %v616_v40 = vpop.f32.mrf.mxu3  ;;  %v2463_v10 = vld [vmem:[%s6262_s20 + $0x28] sm:$0xff] }
 0x1f7   : > { %v1921_v30 = vadd.f32 0.4994258, %v1920_v5  ;;  %v1941_v16 = vmul.f32 %v6460_v32, %v6460_v32  ;;  %v2766_v25 = vmul.f32 %v2734_v53, %v6385_v1  ;;  %v1910_v50 = vadd.f32 0.18741608, %v1909_v19 }
 0x1f8   : > { %v2203_v38 = vadd.f32 1.0, %v4504_v62  ;;  %v1847_v24 = vmul.f32 %v4722_v22, %v1846_v17  ;;  %v6471_v26 = vadd.f32 %v822_v15, %v613_v0  ;;  %v1833_v45 = vmul.f32 %v1832_v43, %v6315_v35  ;;  %v6513_v9 = vpop.f32.mrf.mxu2 }
 0x1f9   : > { %vm1849_vm4 = vweird.f32 %v6417_v48  ;;  %vm6475_vm5 = vcmp.eq.f32.partialorder %v1853_v59, 8.507059e+37  ;;  %4723 = vrcp.f32 %v6466_v46  ;;  %v1872_v23 = vadd.f32 1.1283791, %v1871_v4  ;;  %v825_v59 = vpop.f32.mrf.mxu1 }
 0x1fa   : > { %v2235_v52 = vmul.f32 %v2203_v38, %v6299_v27  ;;  %v1848_v21 = vadd.f32 %v4722_v22, %v1847_v24  ;;  %v1922_v61 = vmul.f32 %v1921_v30, %v6399_v18  ;;  %vm1851_vm6 = vmor %vm1849_vm4, %vm1850_vm3  ;;  %v1856_v63 = vor.u32 1.1754944e-38, %v1855_v37  ;;  %4581 = vmatmul.msk.f32.gmra.mxu0 %vm418_vm0, %v2766_v25 }
 0x1fb   : > { %v1893_v35 = vand.u32 2147483647, %v6466_v46  ;;  %v1895_v48 = vand.u32 2147483648, %v6466_v46  ;;  %v6486_v12 = vmin.f32 %v1941_v16, 16.0  ;;  %v1911_v57 = vmul.f32 %v1910_v50, %v6399_v18 }
 0x1fc   : > { %v1852_v7 = vsel %vm1851_vm6, %v4722_v22, %v1848_v21  ;;  %v6490_v27 = vadd.f32 1.0, %v1922_v61  ;;  %v6493_v58 = vmul.f32 0.70710677, %v6471_v26  ;;  %v2494_v29 = vmul.f32 %v2462_v8, %v6422_v49  ;;  %v2736_v61 = vld [vmem:[%s6289_s29 + $0x28] sm:$0xff] }
 0x1fd   : > { %v1857_v47 = vsel %vm6475_vm5, %v1856_v63, %v1852_v7  ;;  %v1943_v36 = vmul.f32 2.1237322e-06, %v6486_v12  ;;  %v1954_v6 = vmul.f32 3.8918573e-05, %v6486_v12  ;;  %v6501_v14 = vmul.f32 0.5, %v6338_v51  ;;  %v2735_v51 = vld [vmem:[%s6289_s29 + $0x20] sm:$0xff] }
 0x1fe   : > { %v1858_v3 = vmul.f32 %v1857_v47, %v1833_v45  ;;  %v6504_v18 = vmul.f32 %v1872_v23, %v6355_v13  ;;  %4725 = vrcp.f32 %v6490_v27  ;;  %4536 = vmatmul.msk.f32.gmra.mxu2 %vm418_vm0, %v2235_v52  ;;  %vm1889_vm7 = vweird.f32 %v6466_v46  ;;  %4550 = vmatmul.msk.f32.gmra.mxu3 %vm418_vm0, %v2494_v29 }
 0x1ff   : > { %v4724_v41 = vpop.eup %4723  ;;  %v1896_v55 = vor.u32 1.1754944e-38, %v1895_v48  ;;  %v1944_v20 = vadd.f32 0.00028619796, %v1943_v36  ;;  %v1981_v22 = vmul.f32 %v6493_v58, %v6493_v58  ;;  %vm6516_vm8 = vcmp.eq.f32.partialorder %v1893_v35, 8.507059e+37 }
 0x200   : > { %v4505_v13 = vclamps-f32 %v1858_v3, 1.0  ;;  %v1885_v43 = vmul.f32 %v4724_v41, %v6466_v46  ;;  %v6520_v42 = vadd.f32 1.1283791, %v1911_v57  ;;  %v1955_v54 = vadd.f32 0.001143296, %v1954_v6 }
 0x201   : > { %vm1890_vm9 = vweird.f32 %v4724_v41  ;;  %v1933_v37 = vand.u32 2147483647, %v6490_v27  ;;  %v1945_v53 = vmul.f32 %v1944_v20, %v6486_v12  ;;  %v6524_v0 = vmin.f32 %v1981_v22, 16.0 }
 0x202   : > { %v2204_v19 = vadd.f32 1.0, %v4505_v13  ;;  %v1886_v5 = vsub.f32 1.0, %v1885_v43  ;;  %v1956_v15 = vmul.f32 %v1955_v54, %v6486_v12  ;;  %v2767_v62 = vmul.f32 %v2735_v51, %v6422_v49  ;;  %vm1891_vm12 = vmor %vm1889_vm7, %vm1890_vm9 }
 0x203   : > { %vm1929_vm10 = vweird.f32 %v6490_v27  ;;  %v1946_v17 = vadd.f32 0.0036580483, %v1945_v53  ;;  %v1983_v4 = vmul.f32 2.1237322e-06, %v6524_v0  ;;  %v1994_v30 = vmul.f32 3.8918573e-05, %v6524_v0 }
 0x204   : > { %v6532_v16 = vadd.f32 %v825_v59, %v616_v40  ;;  %v4726_v25 = vpop.eup %4725  ;;  %v2236_v38 = vmul.f32 %v2204_v19, %v6323_v60  ;;  %v1887_v24 = vmul.f32 %v4724_v41, %v1886_v5  ;;  %v1957_v50 = vadd.f32 0.014752088, %v1956_v15  ;;  %4582 = vmatmul.msk.f32.gmra.mxu0 %vm418_vm0, %v2767_v62  ;;  %v619_v5 = vpop.f32.mrf.mxu3 }
 0x205   : > { %v2495_v45 = vmul.f32 %v2463_v10, %v6462_v34  ;;  %v1925_v39 = vmul.f32 %v4726_v25, %v6490_v27  ;;  %v1935_v52 = vand.u32 2147483648, %v6490_v27  ;;  %v1947_v21 = vmul.f32 %v1946_v17, %v6486_v12  ;;  %v828_v15 = vpop.f32.mrf.mxu1 }
 0x206   : > { %v1984_v23 = vadd.f32 0.00028619796, %v1983_v4  ;;  %v1888_v8 = vadd.f32 %v4724_v41, %v1887_v24  ;;  %vm1930_vm11 = vweird.f32 %v4726_v25  ;;  %v1958_v63 = vmul.f32 %v1957_v50, %v6486_v12  ;;  %4537 = vmatmul.msk.f32.gmra.mxu2 %vm418_vm0, %v2236_v38 }
 0x207   : > { %v1995_v35 = vadd.f32 0.001143296, %v1994_v30  ;;  %v1926_v60 = vsub.f32 1.0, %v1925_v39  ;;  %v1948_v48 = vadd.f32 0.05243302, %v1947_v21  ;;  %4551 = vmatmul.msk.f32.gmra.mxu3 %vm418_vm0, %v2495_v45  ;;  %v2768_v29 = vmul.f32 %v2736_v61, %v6462_v34  ;;  %vm1931_vm13 = vmor %vm1929_vm10, %vm1930_vm11 }
 0x208   : > { %v1985_v7 = vmul.f32 %v1984_v23, %v6524_v0  ;;  %v6548_v57 = vmul.f32 0.70710677, %v6532_v16  ;;  %v1892_v47 = vsel %vm1891_vm12, %v4724_v41, %v1888_v8  ;;  %v1959_v36 = vadd.f32 0.112945676, %v1958_v63 }
 0x209   : > { %v1996_v6 = vmul.f32 %v1995_v35, %v6524_v0  ;;  %v1897_v3 = vsel %vm6516_vm8, %v1896_v55, %v1892_v47  ;;  %v1927_v46 = vmul.f32 %v4726_v25, %v1926_v60  ;;  %v1949_v20 = vmul.f32 %v1948_v48, %v6486_v12  ;;  %v6556_v51 = vpop.f32.mrf.mxu2  ;;  %v2464_v60 = vld [vmem:[%s6262_s20 + $0x30] sm:$0xff] }
 0x20a   : > { %v1986_v22 = vadd.f32 0.0036580483, %v1985_v7  ;;  %v1898_v13 = vmul.f32 %v1897_v3, %v6504_v18  ;;  %v1960_v43 = vmul.f32 %v1959_v36, %v6486_v12  ;;  %v2021_v41 = vmul.f32 %v6548_v57, %v6548_v57  ;;  %v2737_v48 = vld [vmem:[%s6289_s29 + $0x30] sm:$0xff] }
 0x20b   : > { %v1997_v54 = vadd.f32 0.014752088, %v1996_v6  ;;  %v1928_v40 = vadd.f32 %v4726_v25, %v1927_v46  ;;  %v1936_v59 = vor.u32 1.1754944e-38, %v1935_v52  ;;  %v1950_v53 = vadd.f32 0.18741608, %v1949_v20 }
 0x20c   : > { %v1987_v28 = vmul.f32 %v1986_v22, %v6524_v0  ;;  %v4506_v55 = vclamps-f32 %v1898_v13, 1.0  ;;  %v1961_v10 = vadd.f32 0.4994258, %v1960_v43  ;;  %v6567_v18 = vmin.f32 %v2021_v41, 16.0  ;;  %4583 = vmatmul.msk.f32.gmra.mxu0 %vm418_vm0, %v2768_v29  ;;  %v622_v43 = vpop.f32.mrf.mxu3 }
 0x20d   : > { %v1998_v19 = vmul.f32 %v1997_v54, %v6524_v0  ;;  %v1913_v62 = vmul.f32 %v6520_v42, %v6376_v33  ;;  %v1932_v17 = vsel %vm1931_vm13, %v4726_v25, %v1928_v40  ;;  %vm1934_vm14 = vcmp.eq.f32.partialorder %v1933_v37, 8.507059e+37  ;;  %v831_v54 = vpop.f32.mrf.mxu1 }
 0x20e   : > { %v1988_v4 = vadd.f32 0.05243302, %v1987_v28  ;;  %v2205_v30 = vadd.f32 1.0, %v4506_v55  ;;  %v1937_v38 = vsel %vm1934_vm14, %v1936_v59, %v1932_v17  ;;  %v1962_v24 = vmul.f32 %v1961_v10, %v6486_v12 }
 0x20f   : > { %v1999_v50 = vadd.f32 0.112945676, %v1998_v19  ;;  %v1938_v45 = vmul.f32 %v1937_v38, %v1913_v62  ;;  %v1951_v39 = vmul.f32 %v1950_v53, %v6486_v12  ;;  %v2023_v52 = vmul.f32 2.1237322e-06, %v6567_v18  ;;  %v2465_v62 = vld [vmem:[%s6262_s20 + $0x38] sm:$0xff] }
 0x210   : > { %v6577_v21 = vadd.f32 %v828_v15, %v619_v5  ;;  %v2237_v33 = vmul.f32 %v2205_v30, %v6501_v14  ;;  %v6580_v42 = vadd.f32 1.0, %v1962_v24  ;;  %v2034_v37 = vmul.f32 3.8918573e-05, %v6567_v18 }
 0x211   : > { %v2000_v27 = vmul.f32 %v1999_v50, %v6524_v0  ;;  %v4507_v25 = vclamps-f32 %v1938_v45, 1.0  ;;  %v1989_v23 = vmul.f32 %v1988_v4, %v6524_v0  ;;  %v2024_v61 = vadd.f32 0.00028619796, %v2023_v52  ;;  %v6585_v8 = vpop.f32.mrf.mxu2 }
 0x212   : > { %4727 = vrcp.f32 %v6580_v42  ;;  %4538 = vmatmul.msk.f32.gmra.mxu2 %vm418_vm0, %v2237_v33  ;;  %v862_v12 = vmul.f32 0.5, %v6364_v44  ;;  %v1952_v7 = vadd.f32 1.1283791, %v1951_v39  ;;  %v2035_v47 = vadd.f32 0.001143296, %v2034_v37 }
 0x213   : > { %v2206_v63 = vadd.f32 1.0, %v4507_v25  ;;  %v2001_v14 = vadd.f32 0.4994258, %v2000_v27  ;;  %v2025_v35 = vmul.f32 %v2024_v61, %v6567_v18  ;;  %v6594_v36 = vmul.f32 0.70710677, %v6577_v21 }
 0x214   : > { %v1990_v29 = vadd.f32 0.18741608, %v1989_v23  ;;  %v2036_v20 = vmul.f32 %v2035_v47, %v6567_v18  ;;  %v2496_v22 = vmul.f32 %v2464_v60, %v6513_v9  ;;  %v2769_v13 = vmul.f32 %v2737_v48, %v6513_v9 }
 0x215   : > { %v2238_v6 = vmul.f32 %v2206_v63, %v862_v12  ;;  %v2002_v3 = vmul.f32 %v2001_v14, %v6524_v0  ;;  %v2026_v46 = vadd.f32 0.0036580483, %v2025_v35  ;;  %v2061_v44 = vmul.f32 %v6594_v36, %v6594_v36  ;;  %v834_v50 = vpop.f32.mrf.mxu1 }
 0x216   : > { %v1973_v41 = vand.u32 2147483647, %v6580_v42  ;;  %v6607_v28 = vmul.f32 0.5, %v6445_v56  ;;  %v1953_v55 = vmul.f32 %v1952_v7, %v6460_v32  ;;  %v2037_v10 = vadd.f32 0.014752088, %v2036_v20  ;;  %4552 = vmatmul.msk.f32.gmra.mxu3 %vm418_vm0, %v2496_v22  ;;  %4584 = vmatmul.msk.f32.gmra.mxu0 %vm418_vm0, %v2769_v13  ;;  %v2738_v56 = vld [vmem:[%s6289_s29 + $0x38] sm:$0xff] }
 0x217   : > { %v6603_v40 = vadd.f32 1.0, %v2002_v3  ;;  %v2027_v59 = vmul.f32 %v2026_v46, %v6567_v18  ;;  %v6610_v19 = vmin.f32 %v2061_v44, 16.0  ;;  %vm1969_vm15 = vweird.f32 %v6580_v42  ;;  %v2466_v20 = vld [vmem:[%s6262_s20 + $0x40] sm:$0xff] }
 0x218   : > { %v4728_v53 = vpop.eup %4727  ;;  %v6617_v15 = vadd.f32 %v831_v54, %v622_v43  ;;  %v1975_v32 = vand.u32 2147483648, %v6580_v42  ;;  %v1991_v4 = vmul.f32 %v1990_v29, %v6524_v0  ;;  %v2038_v38 = vmul.f32 %v2037_v10, %v6567_v18 }
 0x219   : > { %v1965_v5 = vmul.f32 %v4728_v53, %v6580_v42  ;;  %4729 = vrcp.f32 %v6603_v40  ;;  %v6621_v17 = vpop.f32.mrf.mxu2  ;;  %v2028_v30 = vadd.f32 0.05243302, %v2027_v59  ;;  %vm6627_vm1 = vcmp.eq.f32.partialorder %v1973_v41, 8.507059e+37 }
 0x21a   : > { %4539 = vmatmul.msk.f32.gmra.mxu2 %vm418_vm0, %v2238_v6  ;;  %v2063_v45 = vmul.f32 2.1237322e-06, %v6610_v19  ;;  %v2074_v39 = vmul.f32 3.8918573e-05, %v6610_v19  ;;  %vm1970_vm2 = vweird.f32 %v4728_v53  ;;  %v2039_v52 = vadd.f32 0.112945676, %v2038_v38 }
 0x21b   : > { %v1966_v24 = vsub.f32 1.0, %v1965_v5  ;;  %v2497_v33 = vmul.f32 %v2465_v62, %v6556_v51  ;;  %v2770_v0 = vmul.f32 %v2738_v56, %v6556_v51  ;;  %v6636_v23 = vmul.f32 0.70710677, %v6617_v15  ;;  %vm1971_vm3 = vmor %vm1969_vm15, %vm1970_vm2  ;;  %v2739_v5 = vld [vmem:[%s6289_s29 + $0x40] sm:$0xff] }
 0x21c   : > { %v2064_v37 = vadd.f32 0.00028619796, %v2063_v45  ;;  %v2075_v25 = vadd.f32 0.001143296, %v2074_v39  ;;  %v1976_v61 = vor.u32 1.1754944e-38, %v1975_v32  ;;  %v2029_v63 = vmul.f32 %v2028_v30, %v6567_v18 }
 0x21d   : > { %v1967_v27 = vmul.f32 %v4728_v53, %v1966_v24  ;;  %v1992_v12 = vadd.f32 1.1283791, %v1991_v4  ;;  %v2040_v14 = vmul.f32 %v2039_v52, %v6567_v18  ;;  %v2101_v47 = vmul.f32 %v6636_v23, %v6636_v23  ;;  %v625_v24 = vpop.f32.mrf.mxu3 }
 0x21e   : > { %v2065_v48 = vmul.f32 %v2064_v37, %v6610_v19  ;;  %v2076_v7 = vmul.f32 %v2075_v25, %v6610_v19  ;;  %v2013_v29 = vand.u32 2147483647, %v6603_v40  ;;  %v2015_v3 = vand.u32 2147483648, %v6603_v40  ;;  %4553 = vmatmul.msk.f32.gmra.mxu3 %vm418_vm0, %v2497_v33  ;;  %4585 = vmatmul.msk.f32.gmra.mxu0 %vm418_vm0, %v2770_v0 }
 0x21f   : > { %v4730_v35 = vpop.eup %4729  ;;  %v1968_v60 = vadd.f32 %v4728_v53, %v1967_v27  ;;  %v2041_v46 = vadd.f32 0.4994258, %v2040_v14  ;;  %v6653_v43 = vmin.f32 %v2101_v47, 16.0  ;;  %v2030_v59 = vadd.f32 0.18741608, %v2029_v63 }
 0x220   : > { %v2005_v6 = vmul.f32 %v4730_v35, %v6603_v40  ;;  %v2066_v22 = vadd.f32 0.0036580483, %v2065_v48  ;;  %v2077_v13 = vadd.f32 0.014752088, %v2076_v7  ;;  %vm2010_vm4 = vweird.f32 %v4730_v35  ;;  %v2467_v7 = vld [vmem:[%s6262_s20 + $0x48] sm:$0xff] }
 0x221   : > { %v1972_v44 = vsel %vm1971_vm3, %v4728_v53, %v1968_v60  ;;  %v6655_v42 = vpop.f32.mrf.mxu2  ;;  %v2042_v10 = vmul.f32 %v2041_v46, %v6567_v18  ;;  %v2498_v53 = vmul.f32 %v2466_v20, %v6585_v8  ;;  %v2103_v30 = vmul.f32 2.1237322e-06, %v6653_v43 }
 0x222   : > { %v1977_v54 = vsel %vm6627_vm1, %v1976_v61, %v1972_v44  ;;  %v2006_v41 = vsub.f32 1.0, %v2005_v6  ;;  %v2078_v56 = vmul.f32 %v2077_v13, %v6610_v19  ;;  %v2114_v38 = vmul.f32 3.8918573e-05, %v6653_v43 }
 0x223   : > { %v1978_v62 = vmul.f32 %v1977_v54, %v1953_v55  ;;  %v6663_v4 = vadd.f32 1.0, %v2042_v10  ;;  %v2067_v39 = vmul.f32 %v2066_v22, %v6610_v19  ;;  %v2771_v55 = vmul.f32 %v2739_v5, %v6585_v8  ;;  %v2740_v54 = vld [vmem:[%s6289_s29 + $0x48] sm:$0xff] }
 0x224   : > { %v2007_v32 = vmul.f32 %v4730_v35, %v2006_v41  ;;  %v2079_v52 = vadd.f32 0.112945676, %v2078_v56  ;;  %v1993_v33 = vmul.f32 %v1992_v12, %v6493_v58  ;;  %vm2009_vm5 = vweird.f32 %v6603_v40 }
 0x225   : > { %v4508_v45 = vclamps-f32 %v1978_v62, 1.0  ;;  %4731 = vrcp.f32 %v6663_v4  ;;  %vm2011_vm6 = vmor %vm2009_vm5, %vm2010_vm4  ;;  %v2016_v37 = vor.u32 1.1754944e-38, %v2015_v3  ;;  %v6674_v61 = vadd.f32 %v834_v50, %v625_v24 }
 0x226   : > { %v2008_v0 = vadd.f32 %v4730_v35, %v2007_v32  ;;  %v2080_v25 = vmul.f32 %v2079_v52, %v6610_v19  ;;  %vm2014_vm7 = vcmp.eq.f32.partialorder %v2013_v29, 8.507059e+37  ;;  %v2104_v14 = vadd.f32 0.00028619796, %v2103_v30  ;;  %4554 = vmatmul.msk.f32.gmra.mxu3 %vm418_vm0, %v2498_v53  ;;  %4586 = vmatmul.msk.f32.gmra.mxu0 %vm418_vm0, %v2771_v55 }
 0x227   : > { %v2207_v27 = vadd.f32 1.0, %v4508_v45  ;;  %v2115_v60 = vadd.f32 0.001143296, %v2114_v38  ;;  %v2031_v12 = vmul.f32 %v2030_v59, %v6567_v18  ;;  %v2068_v48 = vadd.f32 0.05243302, %v2067_v39 }
 0x228   : > { %v2012_v63 = vsel %vm2011_vm6, %v4730_v35, %v2008_v0  ;;  %v2081_v3 = vadd.f32 0.4994258, %v2080_v25  ;;  %v2105_v35 = vmul.f32 %v2104_v14, %v6653_v43  ;;  %v864_v46 = vmul.f32 0.5, %v6471_v26  ;;  %v2741_v14 = vld [vmem:[%s6289_s29 + $0x50] sm:$0xff] }
 0x229   : > { %v2239_v58 = vmul.f32 %v2207_v27, %v6607_v28  ;;  %v2017_v40 = vsel %vm2014_vm7, %v2016_v37, %v2012_v63  ;;  %v6681_v47 = vpop.f32.mrf.mxu2  ;;  %v2116_v29 = vmul.f32 %v2115_v60, %v6653_v43  ;;  %v6687_v20 = vmul.f32 0.70710677, %v6674_v61 }
 0x22a   : > { %v2018_v6 = vmul.f32 %v2017_v40, %v1993_v33  ;;  %v2082_v44 = vmul.f32 %v2081_v3, %v6610_v19  ;;  %v2499_v13 = vmul.f32 %v2467_v7, %v6621_v17  ;;  %v2032_v41 = vadd.f32 1.1283791, %v2031_v12  ;;  %v2468_v33 = vld [vmem:[%s6262_s20 + $0x50] sm:$0xff] }
 0x22b   : > { %4540 = vmatmul.msk.f32.gmra.mxu2 %vm418_vm0, %v2239_v58  ;;  %v4732_v28 = vpop.eup %4731  ;;  %v2117_v22 = vadd.f32 0.014752088, %v2116_v29  ;;  %v2069_v10 = vmul.f32 %v2068_v48, %v6610_v19  ;;  %v2141_v26 = vmul.f32 %v6687_v20, %v6687_v20  ;;  %v2106_v56 = vadd.f32 0.0036580483, %v2105_v35 }
 0x22c   : > { %v4509_v18 = vclamps-f32 %v2018_v6, 1.0  ;;  %v2045_v59 = vmul.f32 %v4732_v28, %v6663_v4  ;;  %v6697_v62 = vadd.f32 1.0, %v2082_v44  ;;  %v2053_v30 = vand.u32 2147483647, %v6663_v4 }
 0x22d   : > { %v2118_v53 = vmul.f32 %v2117_v22, %v6653_v43  ;;  %v6701_v38 = vmin.f32 %v2141_v26, 16.0  ;;  %v2772_v24 = vmul.f32 %v2740_v54, %v6621_v17  ;;  %v2055_v45 = vand.u32 2147483648, %v6663_v4 }
 0x22e   : > { %v2208_v5 = vadd.f32 1.0, %v4509_v18  ;;  %v2046_v32 = vsub.f32 1.0, %v2045_v59  ;;  %4733 = vrcp.f32 %v6697_v62  ;;  %4555 = vmatmul.msk.f32.gmra.mxu3 %vm418_vm0, %v2499_v13  ;;  %vm2050_vm8 = vweird.f32 %v4732_v28 }
 0x22f   : > { %v2070_v52 = vadd.f32 0.18741608, %v2069_v10  ;;  %v2119_v55 = vadd.f32 0.112945676, %v2118_v53  ;;  %4587 = vmatmul.msk.f32.gmra.mxu0 %vm418_vm0, %v2772_v24  ;;  %v2033_v27 = vmul.f32 %v2032_v41, %v6548_v57  ;;  %v2107_v37 = vmul.f32 %v2106_v56, %v6653_v43  ;;  %v2742_v24 = vld [vmem:[%s6289_s29 + $0x58] sm:$0xff] }
 0x230   : > { %v2240_v50 = vmul.f32 %v2208_v5, %v864_v46  ;;  %v2047_v39 = vmul.f32 %v4732_v28, %v2046_v32  ;;  %v2143_v25 = vmul.f32 2.1237322e-06, %v6701_v38  ;;  %v2154_v63 = vmul.f32 3.8918573e-05, %v6701_v38 }
 0x231   : > { %v6709_v0 = vpop.f32.mrf.mxu2  ;;  %vm2049_vm9 = vweird.f32 %v6663_v4  ;;  %vm2054_vm10 = vcmp.eq.f32.partialorder %v2053_v30, 8.507059e+37  ;;  %v2120_v58 = vmul.f32 %v2119_v55, %v6653_v43  ;;  %v2056_v40 = vor.u32 1.1754944e-38, %v2055_v45 }
 0x232   : > { %7882 = vst [vmem:[#allocation5_spill] sm:$0xff] %v6709_v0  ;;  %v2048_v60 = vadd.f32 %v4732_v28, %v2047_v39  ;;  %vm2051_vm11 = vmor %vm2049_vm9, %vm2050_vm8  ;;  %v2144_v12 = vadd.f32 0.00028619796, %v2143_v25  ;;  %v2155_v57 = vadd.f32 0.001143296, %v2154_v63  ;;  %v2500_v48 = vmul.f32 %v2468_v33, %v6655_v42 }
 0x233   : > { %4541 = vmatmul.msk.f32.gmra.mxu2 %vm418_vm0, %v2240_v50  ;;  %v2071_v6 = vmul.f32 %v2070_v52, %v6610_v19  ;;  %v2121_v3 = vadd.f32 0.4994258, %v2120_v58  ;;  %v2773_v35 = vmul.f32 %v2741_v14, %v6655_v42  ;;  %v2108_v46 = vadd.f32 0.05243302, %v2107_v37  ;;  %v2469_v19 = vld [vmem:[%s6262_s20 + $0x58] sm:$0xff] }
 0x234   : > { %v2052_v7 = vsel %vm2051_vm11, %v4732_v28, %v2048_v60  ;;  %v4734_v4 = vpop.eup %4733  ;;  %v2156_v18 = vmul.f32 %v2155_v57, %v6701_v38  ;;  %v2145_v13 = vmul.f32 %v2144_v12, %v6701_v38  ;;  %v865_v54 = vmul.f32 0.5, %v6532_v16 }
 0x235   : > { %v2057_v29 = vsel %vm2054_vm10, %v2056_v40, %v2052_v7  ;;  %v2085_v22 = vmul.f32 %v4734_v4, %v6697_v62  ;;  %v2122_v28 = vmul.f32 %v2121_v3, %v6653_v43  ;;  %v2072_v10 = vadd.f32 1.1283791, %v2071_v6  ;;  %v2743_v3 = vld [vmem:[%s6289_s29 + $0x60] sm:$0xff] }
 0x236   : > { %v2058_v44 = vmul.f32 %v2057_v29, %v2033_v27  ;;  %v2157_v41 = vadd.f32 0.014752088, %v2156_v18  ;;  %4556 = vmatmul.msk.f32.gmra.mxu3 %vm418_vm0, %v2500_v48  ;;  %v2093_v5 = vand.u32 2147483647, %v6697_v62  ;;  %v2095_v53 = vand.u32 2147483648, %v6697_v62 }
 0x237   : > { %v2086_v26 = vsub.f32 1.0, %v2085_v22  ;;  %4588 = vmatmul.msk.f32.gmra.mxu0 %vm418_vm0, %v2773_v35  ;;  %v2109_v32 = vmul.f32 %v2108_v46, %v6653_v43  ;;  %v6736_v16 = vadd.f32 1.0, %v2122_v28  ;;  %vm2090_vm12 = vweird.f32 %v4734_v4 }
 0x238   : > { %v4510_v59 = vclamps-f32 %v2058_v44, 1.0  ;;  %v2158_v30 = vmul.f32 %v2157_v41, %v6701_v38  ;;  %v2146_v39 = vadd.f32 0.0036580483, %v2145_v13  ;;  %vm2089_vm13 = vweird.f32 %v6697_v62 }
 0x239   : > { %v6732_v56 = vpop.f32.mrf.mxu2  ;;  %v2087_v45 = vmul.f32 %v4734_v4, %v2086_v26  ;;  %4735 = vrcp.f32 %v6736_v16  ;;  %v2501_v52 = vmul.f32 %v2469_v19, %v6681_v47  ;;  %v2774_v37 = vmul.f32 %v2742_v24, %v6681_v47  ;;  %vm2091_vm14 = vmor %vm2089_vm13, %vm2090_vm12 }
 0x23a   : > { %7883 = vst [vmem:[#allocation6_spill] sm:$0xff] %v6732_v56  ;;  %v2209_v50 = vadd.f32 1.0, %v4510_v59  ;;  %v2159_v27 = vadd.f32 0.112945676, %v2158_v30  ;;  %v2073_v25 = vmul.f32 %v2072_v10, %v6594_v36  ;;  %v2096_v63 = vor.u32 1.1754944e-38, %v2095_v53  ;;  %v2470_v36 = vld [vmem:[%s6262_s20 + $0x60] sm:$0xff] }
 0x23b   : > { %v2088_v33 = vadd.f32 %v4734_v4, %v2087_v45  ;;  %v2110_v14 = vadd.f32 0.18741608, %v2109_v32  ;;  %vm2094_vm15 = vcmp.eq.f32.partialorder %v2093_v5, 8.507059e+37  ;;  %v2147_v62 = vmul.f32 %v2146_v39, %v6701_v38  ;;  %v2471_v5 = vld [vmem:[%s6262_s20 + $0x68] sm:$0xff] }
 0x23c   : > { %v2241_v55 = vmul.f32 %v2209_v50, %v865_v54  ;;  %v2160_v58 = vmul.f32 %v2159_v27, %v6701_v38  ;;  %v2502_v18 = vmul.f32 %v2470_v36, %v6709_v0  ;;  %v866_v44 = vmul.f32 0.5, %v6577_v21  ;;  %v2744_v30 = vld [vmem:[%s6289_s29 + $0x68] sm:$0xff] }
 0x23d   : > { %v2092_v60 = vsel %vm2091_vm14, %v4734_v4, %v2088_v33  ;;  %v2111_v6 = vmul.f32 %v2110_v14, %v6653_v43  ;;  %v2148_v29 = vadd.f32 0.05243302, %v2147_v62  ;;  %v2775_v54 = vmul.f32 %v2743_v3, %v6709_v0 }
 0x23e   : > { %4542 = vmatmul.msk.f32.gmra.mxu2 %vm418_vm0, %v2241_v55  ;;  %v2097_v40 = vsel %vm2094_vm15, %v2096_v63, %v2092_v60  ;;  %4557 = vmatmul.msk.f32.gmra.mxu3 %vm418_vm0, %v2501_v52  ;;  %v2161_v57 = vadd.f32 0.4994258, %v2160_v58  ;;  %v2133_v41 = vand.u32 2147483647, %v6736_v16  ;;  %v2135_v43 = vand.u32 2147483648, %v6736_v16 }
 0x23f   : > { %v2098_v12 = vmul.f32 %v2097_v40, %v2073_v25  ;;  %4589 = vmatmul.msk.f32.gmra.mxu0 %vm418_vm0, %v2774_v37  ;;  %v4736_v7 = vpop.eup %4735  ;;  %v2112_v28 = vadd.f32 1.1283791, %v2111_v6  ;;  %v2149_v26 = vmul.f32 %v2148_v29, %v6701_v38  ;;  %vm2129_vm2 = vweird.f32 %v6736_v16 }
 0x240   : > { %v2125_v4 = vmul.f32 %v4736_v7, %v6736_v16  ;;  %v2162_v46 = vmul.f32 %v2161_v57, %v6701_v38  ;;  %vm2130_vm1 = vweird.f32 %v4736_v7  ;;  %v2136_v32 = vor.u32 1.1754944e-38, %v2135_v43 }
 0x241   : > { %v6751_v48 = vpop.f32.mrf.mxu2  ;;  %v4511_v35 = vclamps-f32 %v2098_v12, 1.0  ;;  %vm2131_vm3 = vmor %vm2129_vm2, %vm2130_vm1  ;;  %v2113_v24 = vmul.f32 %v2112_v28, %v6636_v23  ;;  %vm2134_vm4 = vcmp.eq.f32.partialorder %v2133_v41, 8.507059e+37  ;;  %v2150_v45 = vadd.f32 0.18741608, %v2149_v26 }
 0x242   : > { %7884 = vst [vmem:[#allocation7_spill] sm:$0xff] %v6751_v48  ;;  %v2126_v13 = vsub.f32 1.0, %v2125_v4  ;;  %v2163_v19 = vadd.f32 1.0, %v2162_v46  ;;  %v2503_v52 = vmul.f32 %v2471_v5, %v6732_v56  ;;  %v2776_v16 = vmul.f32 %v2744_v30, %v6732_v56  ;;  %v2760_v56 = vld [vmem:[%s6289_s29 + $0xe8] sm:$0xff] }
 0x243   : > { %v2210_v22 = vadd.f32 1.0, %v4511_v35  ;;  %v867_v25 = vmul.f32 0.5, %v6617_v15  ;;  %v2151_v23 = vmul.f32 %v2150_v45, %v6701_v38  ;;  %v2472_v15 = vld [vmem:[%s6262_s20 + $0x70] sm:$0xff]  ;;  %v868_v45 = vmul.f32 0.5, %v6674_v61  ;;  %v2474_v61 = vld [vmem:[%s6262_s20 + $0x80] sm:$0xff] }
 0x244   : > { %v2127_v10 = vmul.f32 %v4736_v7, %v2126_v13  ;;  %4737 = vrcp.f32 %v2163_v19  ;;  %vm2169_vm5 = vweird.f32 %v2163_v19  ;;  %v2175_v60 = vand.u32 2147483648, %v2163_v19 }
 0x245   : > { %v2242_v59 = vmul.f32 %v2210_v22, %v866_v44  ;;  %v2173_v57 = vand.u32 2147483647, %v2163_v19  ;;  %v2152_v3 = vadd.f32 1.1283791, %v2151_v23 }
 0x246   : > { %4558 = vmatmul.msk.f32.gmra.mxu3 %vm418_vm0, %v2502_v18  ;;  %v2128_v21 = vadd.f32 %v4736_v7, %v2127_v10  ;;  %v2176_v46 = vor.u32 1.1754944e-38, %v2175_v60  ;;  %v2504_v18 = vmul.f32 %v2472_v15, %v6751_v48 }
 0x247   : > { %4590 = vmatmul.msk.f32.gmra.mxu0 %vm418_vm0, %v2775_v54  ;;  %4543 = vmatmul.msk.f32.gmra.mxu2 %vm418_vm0, %v2242_v59  ;;  %vm2174_vm8 = vcmp.eq.f32.partialorder %v2173_v57, 8.507059e+37  ;;  %v2153_v41 = vmul.f32 %v2152_v3, %v6687_v20  ;;  %v2746_v20 = vld [vmem:[%s6289_s29 + $0x78] sm:$0xff]  ;;  %v2747_v57 = vld [vmem:[%s6289_s29 + $0x80] sm:$0xff] }
 0x248   : > { %v2132_v50 = vsel %vm2131_vm3, %v4736_v7, %v2128_v21  ;;  %v2745_v7 = vld [vmem:[%s6289_s29 + $0x70] sm:$0xff]  ;;  %v2473_v21 = vld [vmem:[%s6262_s20 + $0x78] sm:$0xff] }
 0x249   : > { %v6768_v53 = vpop.f32.mrf.mxu2  ;;  %v2137_v39 = vsel %vm2134_vm4, %v2136_v32, %v2132_v50  ;;  %v2777_v13 = vmul.f32 %v2745_v7, %v6751_v48 }
 0x24a   : > { %7885 = vst [vmem:[#allocation8_spill] sm:$0xff] %v6768_v53  ;;  %v2138_v55 = vmul.f32 %v2137_v39, %v2113_v24  ;;  %v4738_v33 = vpop.eup %4737  ;;  %v2505_v39 = vmul.f32 %v2473_v21, %v6768_v53 }
 0x24b   : > { %v2165_v14 = vmul.f32 %v4738_v33, %v2163_v19  ;;  %vm2170_vm6 = vweird.f32 %v4738_v33 }
 0x24c   : > { %v6774_v27 = vpop.f32.mrf.mxu0  ;;  %v4512_v63 = vclamps-f32 %v2138_v55, 1.0  ;;  %vm6791_vm7 = vmor %vm2169_vm5, %vm2170_vm6 }
 0x24d   : > { %v3548_v62 = vand.u32 2147483647, %v6774_v27  ;;  %v2166_v12 = vsub.f32 1.0, %v2165_v14 }
 0x24e   : > { %v6776_v37 = vpop.f32.mrf.mxu3  ;;  %4559 = vmatmul.msk.f32.gmra.mxu3 %vm418_vm0, %v2503_v52  ;;  %v2211_v40 = vadd.f32 1.0, %v4512_v63 }
 0x24f   : > { %v3004_v58 = vsub.f32 0.0, %v6776_v37  ;;  %4591 = vmatmul.msk.f32.gmra.mxu0 %vm418_vm0, %v2776_v16  ;;  %v3580_v38 = vsub.f32 0.0, %v3548_v62  ;;  %v2167_v35 = vmul.f32 %v4738_v33, %v2166_v12  ;;  %v2778_v16 = vmul.f32 %v2746_v20, %v6768_v53 }
 0x250   : > { %v2243_v6 = vmul.f32 %v2211_v40, %v867_v25 }
 0x251   : > { %v6785_v36 = vpop.f32.mrf.mxu2  ;;  %v3068_v4 = vand.u32 2147483647, %v3004_v58  ;;  %v3612_v44 = vmul.f32 1.442695, %v3580_v38  ;;  %v2168_v22 = vadd.f32 %v4738_v33, %v2167_v35  ;;  %v3036_v21 = vmax.f32 %v3004_v58, 0.0 }
 0x252   : > { %4544 = vmatmul.msk.f32.gmra.mxu2 %vm418_vm0, %v2243_v6  ;;  %v2506_v38 = vmul.f32 %v2474_v61, %v6785_v36  ;;  %v2779_v3 = vmul.f32 %v2747_v57, %v6785_v36 }
 0x253   : > { %v3100_v54 = vsub.f32 0.0, %v3068_v4  ;;  %4739 = vpow2.f32 %v3612_v44  ;;  %v2172_v43 = vsel %vm6791_vm7, %v4738_v33, %v2168_v22 }
 0x254   : > { %v2177_v10 = vsel %vm2174_vm8, %v2176_v46, %v2172_v43  ;;  %v2475_v43 = vld [vmem:[%s6262_s20 + $0x88] sm:$0xff] }
 0x255   : > { %v3132_v19 = vmul.f32 1.442695, %v3100_v54  ;;  %v2178_v26 = vmul.f32 %v2177_v10, %v2153_v41  ;;  %v3516_v41 = vmax.f32 %v6774_v27, 0.0 }
 0x256   : > { %v6798_v28 = vpop.f32.mrf.mxu3  ;;  %4560 = vmatmul.msk.f32.gmra.mxu3 %vm418_vm0, %v2504_v18 }
 0x257   : > { %v3005_v59 = vsub.f32 0.0, %v6798_v28  ;;  %4592 = vmatmul.msk.f32.gmra.mxu0 %vm418_vm0, %v2777_v13  ;;  %4741 = vpow2.f32 %v3132_v19  ;;  %v4513_v30 = vclamps-f32 %v2178_v26, 1.0 }
 0x259   : > { %v6807_v5 = vpop.f32.mrf.mxu2  ;;  %v3069_v32 = vand.u32 2147483647, %v3005_v59  ;;  %v4740_v50 = vpop.eup %4739  ;;  %v2212_v55 = vadd.f32 1.0, %v4513_v30 }
 0x25a   : > { %v3676_v63 = vadd.f32 1.0, %v4740_v50  ;;  %v3679_v12 = vmul.f32 -0.5, %v4740_v50  ;;  %v3682_v18 = vand.u32 2147483647, %v4740_v50  ;;  %v2507_v27 = vmul.f32 %v2475_v43, %v6807_v5 }
 0x25b   : > { %v3101_v24 = vsub.f32 0.0, %v3069_v32  ;;  %v2244_v14 = vmul.f32 %v2212_v55, %v868_v45  ;;  %v2748_v32 = vld [vmem:[%s6289_s29 + $0x88] sm:$0xff] }
 0x25c   : > { %v6814_v52 = vpop.f32.mrf.mxu0  ;;  %v3680_v35 = vadd.f32 1.0, %v3679_v12  ;;  %vm3683_vm9 = vcmp.lt.f32.partialorder %v3682_v18, 0.0004427343  ;;  %v2749_v18 = vld [vmem:[%s6289_s29 + $0x90] sm:$0xff] }
 0x25d   : > { %v3549_v33 = vand.u32 2147483647, %v6814_v52  ;;  %v3134_v25 = vmul.f32 1.442695, %v3101_v24  ;;  %v4742_v23 = vpop.eup %4741  ;;  %4545 = vmatmul.msk.f32.gmra.mxu2 %vm418_vm0, %v2244_v14 }
 0x25e   : > { %4561 = vmatmul.msk.f32.gmra.mxu3 %vm418_vm0, %v2505_v39  ;;  %v3196_v15 = vadd.f32 1.0, %v4742_v23  ;;  %v3199_v7 = vmul.f32 -0.5, %v4742_v23  ;;  %v3202_v13 = vand.u32 2147483647, %v4742_v23  ;;  %v3681_v10 = vmul.f32 %v4740_v50, %v3680_v35 }
 0x25f   : > { %v3581_v60 = vsub.f32 0.0, %v3549_v33  ;;  %4743 = vpow2.f32 %v3134_v25  ;;  %4593 = vmatmul.msk.f32.gmra.mxu0 %vm418_vm0, %v2778_v16  ;;  %v2780_v50 = vmul.f32 %v2748_v32, %v6807_v5 }
 0x260   : > { %4745 = vlog2.f32 %v3676_v63  ;;  %v3200_v46 = vadd.f32 1.0, %v3199_v7  ;;  %vm3203_vm10 = vcmp.lt.f32.partialorder %v3202_v13, 0.0004427343 }
 0x261   : > { %v3614_v62 = vmul.f32 1.442695, %v3581_v60  ;;  %v6822_v40 = vpop.f32.mrf.mxu2 }
 0x262   : > { %v3201_v30 = vmul.f32 %v4742_v23, %v3200_v46  ;;  %v3037_v46 = vmax.f32 %v3005_v59, 0.0  ;;  %v2781_v59 = vmul.f32 %v2749_v18, %v6822_v40 }
 0x263   : > { %4747 = vpow2.f32 %v3614_v62 }
 0x264   : > { %4749 = vlog2.f32 %v3196_v15 }
 0x265   : > { %v4744_v6 = vpop.eup %4743 }
 0x266   : > { %v4746_v4 = vpop.eup %4745  ;;  %v3205_v29 = vadd.f32 1.0, %v4744_v6  ;;  %v3208_v44 = vmul.f32 -0.5, %v4744_v6  ;;  %4562 = vmatmul.msk.f32.gmra.mxu3 %vm418_vm0, %v2506_v38  ;;  %v3211_v16 = vand.u32 2147483647, %v4744_v6 }
 0x267   : > { %v3678_v22 = vmul.f32 0.6931472, %v4746_v4  ;;  %4594 = vmatmul.msk.f32.gmra.mxu0 %vm418_vm0, %v2779_v3  ;;  %v5060_v4 = vmov 0  }
 0x268   : > { %4751 = vlog2.f32 %v3205_v29  ;;  %v3209_v45 = vadd.f32 1.0, %v3208_v44  ;;  %vm6844_vm11 = vcmp.lt.f32.partialorder %v3211_v16, 0.0004427343  ;;  %4672 = vset.pattern.permute.xlu0 %v5060_v4  ;;  %4673 = vset.pattern.permute.xlu1 %v5060_v4 }
 0x269   : > { %v4748_v54 = vpop.eup %4747  ;;  %v6831_v19 = vpop.f32.mrf.mxu2  ;;  %v3684_v55 = vsel %vm3683_vm9, %v3681_v10, %v3678_v22  ;;  %4674 = vset.pattern.permute.xlu2 %v5060_v4  ;;  %v3517_v10 = vmax.f32 %v6814_v52, 0.0 }
 0x26a   : > { %v4750_v26 = vpop.eup %4749  ;;  %v3685_v20 = vadd.f32 1.0, %v4748_v54  ;;  %v3688_v24 = vmul.f32 -0.5, %v4748_v54  ;;  %v3964_v23 = vadd.f32 %v3684_v55, %v3516_v41  ;;  %v3210_v61 = vmul.f32 %v4744_v6, %v3209_v45  ;;  %v2476_v6 = vld [vmem:[%s6262_s20 + $0x90] sm:$0xff]  ;;  %v2477_v45 = vld [vmem:[%s6262_s20 + $0x98] sm:$0xff] }
 0x26b   : > { %v3198_v39 = vmul.f32 0.6931472, %v4750_v26  ;;  %v6837_v33 = vpop.f32.mrf.mxu3  ;;  %v3691_v12 = vand.u32 2147483647, %v4748_v54  ;;  %v2750_v55 = vld [vmem:[%s6289_s29 + $0x98] sm:$0xff] }
 0x26c   : > { %4753 = vlog2.f32 %v3685_v20  ;;  %v3006_v37 = vsub.f32 0.0, %v6837_v33  ;;  %v3689_v14 = vadd.f32 1.0, %v3688_v24 }
 0x26d   : > { %v3204_v58 = vsel %vm3203_vm10, %v3201_v30, %v3198_v39  ;;  %vm3692_vm12 = vcmp.lt.f32.partialorder %v3691_v12, 0.0004427343 }
 0x26e   : > { %v4752_v25 = vpop.eup %4751  ;;  %v3484_v63 = vadd.f32 %v3204_v58, %v3036_v21  ;;  %v3070_v62 = vand.u32 2147483647, %v3006_v37  ;;  %4563 = vmatmul.msk.f32.gmra.mxu3 %vm418_vm0, %v2507_v27  ;;  %v3690_v22 = vmul.f32 %v4748_v54, %v3689_v14  ;;  %v2508_v21 = vmul.f32 %v2476_v6, %v6822_v40  ;;  %v2751_v6 = vld [vmem:[%s6289_s29 + $0xa0] sm:$0xff] }
 0x26f   : > { %v3207_v60 = vmul.f32 0.6931472, %v4752_v25  ;;  %v6848_v15 = vpop.f32.mrf.mxu0  ;;  %4595 = vmatmul.msk.f32.gmra.mxu0 %vm418_vm0, %v2780_v50  ;;  %v2509_v58 = vmul.f32 %v2477_v45, %v6831_v19  ;;  %v2782_v14 = vmul.f32 %v2750_v55, %v6831_v19 }
 0x270   : > { %v3996_v7 = vadd.f32 %v3964_v23, %v3484_v63  ;;  %v3550_v3 = vand.u32 2147483647, %v6848_v15  ;;  %v3102_v35 = vsub.f32 0.0, %v3070_v62 }
 0x271   : > { %v3213_v38 = vsel %vm6844_vm11, %v3210_v61, %v3207_v60  ;;  %v6858_v43 = vpop.f32.mrf.mxu2 }
 0x272   : > { %v4754_v29 = vpop.eup %4753  ;;  %4033 = vperm.xlu0 %4672, %v3996_v7   ;;  %v3582_v13 = vsub.f32 0.0, %v3550_v3  ;;  %v3136_v41 = vmul.f32 1.442695, %v3102_v35  ;;  %v3485_v26 = vadd.f32 %v3213_v38, %v3037_v46  ;;  %v2478_v7 = vld [vmem:[%s6262_s20 + $0xa0] sm:$0xff] }
 0x273   : > { %v3687_v44 = vmul.f32 0.6931472, %v4754_v29  ;;  %v2510_v18 = vmul.f32 %v2478_v7, %v6858_v43 }
 0x274   : > { %v3616_v32 = vmul.f32 1.442695, %v3582_v13  ;;  %4755 = vpow2.f32 %v3136_v41 }
 0x275   : > { %v3693_v28 = vsel %vm3692_vm12, %v3690_v22, %v3687_v44  ;;  %v2479_v22 = vld [vmem:[%s6262_s20 + $0xa8] sm:$0xff] }
 0x276   : > { %v3965_v20 = vadd.f32 %v3693_v28, %v3517_v10  ;;  %4757 = vpow2.f32 %v3616_v32  ;;  %4564 = vmatmul.msk.f32.gmra.mxu3 %vm418_vm0, %v2508_v21  ;;  %v3038_v10 = vmax.f32 %v3006_v37, 0.0  ;;  %v3518_v32 = vmax.f32 %v6848_v15, 0.0 }
 0x277   : > { %v6863_v54 = vpop.f32.mrf.mxu3  ;;  %v6866_v30 = vpop.f32.mrf.mxu0  ;;  %4596 = vmatmul.msk.f32.gmra.mxu0 %vm418_vm0, %v2781_v59 }
 0x278   : > { %v3007_v52 = vsub.f32 0.0, %v6863_v54  ;;  %v3997_v24 = vadd.f32 %v3965_v20, %v3485_v26  ;;  %v3551_v39 = vand.u32 2147483647, %v6866_v30  ;;  %v2783_v26 = vmul.f32 %v2751_v6, %v6858_v43 }
 0x279   : > { %v6879_v61 = vpop.f32.mrf.mxu2 }
 0x27a   : > { %v3071_v27 = vand.u32 2147483647, %v3007_v52  ;;  %4038 = vperm.xlu0 %4672, %v3997_v24   ;;  %v4756_v16 = vpop.eup %4755  ;;  %v3583_v50 = vsub.f32 0.0, %v3551_v39 }
 0x27b   : > { %v3214_v63 = vadd.f32 1.0, %v4756_v16  ;;  %v3217_v57 = vmul.f32 -0.5, %v4756_v16  ;;  %v3220_v28 = vand.u32 2147483647, %v4756_v16 }
 0x27c   : > { %v3103_v25 = vsub.f32 0.0, %v3071_v27  ;;  %v6876_v23 = vpop.eup %4757  ;;  %v3618_v60 = vmul.f32 1.442695, %v3583_v50  ;;  %v2511_v27 = vmul.f32 %v2479_v22, %v6879_v61  ;;  %v2752_v50 = vld [vmem:[%s6289_s29 + $0xa8] sm:$0xff] }
 0x27d   : > { %4759 = vlog2.f32 %v3214_v63  ;;  %v3694_v12 = vadd.f32 1.0, %v6876_v23  ;;  %v3697_v29 = vmul.f32 -0.5, %v6876_v23  ;;  %v3218_v13 = vadd.f32 1.0, %v3217_v57 }
 0x27e   : > { %v3138_v62 = vmul.f32 1.442695, %v3103_v25  ;;  %4761 = vpow2.f32 %v3618_v60  ;;  %4565 = vmatmul.msk.f32.gmra.mxu3 %vm418_vm0, %v2509_v58  ;;  %vm6909_vm13 = vcmp.lt.f32.partialorder %v3220_v28, 0.0004427343  ;;  %v2784_v57 = vmul.f32 %v2752_v50, %v6879_v61 }
 0x27f   : > { %4597 = vmatmul.msk.f32.gmra.mxu0 %vm418_vm0, %v2782_v14  ;;  %v3698_v33 = vadd.f32 1.0, %v3697_v29  ;;  %v3219_v63 = vmul.f32 %v4756_v16, %v3218_v13 }
 0x280   : > { %4763 = vpow2.f32 %v3138_v62 }
 0x281   : > { %v6885_v38 = vpop.f32.mrf.mxu0  ;;  %v6889_v35 = vpop.f32.mrf.mxu3  ;;  %4765 = vlog2.f32 %v3694_v12  ;;  %v3700_v12 = vand.u32 2147483647, %v6876_v23 }
 0x282   : > { %v3552_v3 = vand.u32 2147483647, %v6885_v38  ;;  %v3008_v4 = vsub.f32 0.0, %v6889_v35  ;;  %v6903_v58 = vpop.f32.mrf.mxu2 }
 0x283   : > { %v4760_v46 = vpop.eup %4759  ;;  %vm3701_vm14 = vcmp.lt.f32.partialorder %v3700_v12, 0.0004427343 }
 0x284   : > { %v3584_v44 = vsub.f32 0.0, %v3552_v3  ;;  %v4762_v41 = vpop.eup %4761  ;;  %v3072_v21 = vand.u32 2147483647, %v3008_v4  ;;  %v3216_v45 = vmul.f32 0.6931472, %v4760_v46  ;;  %v3699_v46 = vmul.f32 %v6876_v23, %v3698_v33 }
 0x285   : > { %v3703_v20 = vadd.f32 1.0, %v4762_v41  ;;  %v3706_v37 = vmul.f32 -0.5, %v4762_v41  ;;  %v3709_v3 = vand.u32 2147483647, %v4762_v41 }
 0x286   : > { %v4764_v59 = vpop.eup %4763  ;;  %v3620_v24 = vmul.f32 1.442695, %v3584_v44  ;;  %v3104_v55 = vsub.f32 0.0, %v3072_v21  ;;  %4566 = vmatmul.msk.f32.gmra.mxu3 %vm418_vm0, %v2510_v18  ;;  %v3222_v16 = vsel %vm6909_vm13, %v3219_v63, %v3216_v45 }
 0x287   : > { %v3223_v39 = vadd.f32 1.0, %v4764_v59  ;;  %4767 = vlog2.f32 %v3703_v20  ;;  %v3226_v25 = vmul.f32 -0.5, %v4764_v59  ;;  %v4766_v14 = vpop.eup %4765  ;;  %4598 = vmatmul.msk.f32.gmra.mxu0 %vm418_vm0, %v2783_v26  ;;  %v3707_v18 = vadd.f32 1.0, %v3706_v37 }
 0x288   : > { %v3140_v15 = vmul.f32 1.442695, %v3104_v55  ;;  %v3696_v13 = vmul.f32 0.6931472, %v4766_v14  ;;  %v3229_v26 = vand.u32 2147483647, %v4764_v59  ;;  %v3486_v28 = vadd.f32 %v3222_v16, %v3038_v10 }
 0x289   : > { %4769 = vlog2.f32 %v3223_v39  ;;  %v6907_v60 = vpop.f32.mrf.mxu0  ;;  %v3227_v44 = vadd.f32 1.0, %v3226_v25  ;;  %vm6926_vm15 = vcmp.lt.f32.partialorder %v3709_v3, 0.0004427343  ;;  %v3708_v10 = vmul.f32 %v4762_v41, %v3707_v18  ;;  %v2753_v16 = vld [vmem:[%s6289_s29 + $0xb0] sm:$0xff] }
 0x28a   : > { %4771 = vpow2.f32 %v3620_v24  ;;  %v3553_v7 = vand.u32 2147483647, %v6907_v60  ;;  %v6916_v6 = vpop.f32.mrf.mxu3  ;;  %v3039_v24 = vmax.f32 %v3007_v52, 0.0  ;;  %v3702_v39 = vsel %vm3701_vm14, %v3699_v46, %v3696_v13  ;;  %v6935_v12 = vpop.f32.mrf.mxu2 }
 0x28b   : > { %4773 = vpow2.f32 %v3140_v15  ;;  %v3009_v29 = vsub.f32 0.0, %v6916_v6  ;;  %v3966_v37 = vadd.f32 %v3702_v39, %v3518_v32  ;;  %v3228_v14 = vmul.f32 %v4764_v59, %v3227_v44  ;;  %v2480_v15 = vld [vmem:[%s6262_s20 + $0xb0] sm:$0xff]  ;;  %v2754_v39 = vld [vmem:[%s6289_s29 + $0xb8] sm:$0xff] }
 0x28c   : > { %v3585_v22 = vsub.f32 0.0, %v3553_v7  ;;  %vm3230_vm1 = vcmp.lt.f32.partialorder %v3229_v26, 0.0004427343  ;;  %v2512_v46 = vmul.f32 %v2480_v15, %v6903_v58 }
 0x28d   : > { %v3073_v21 = vand.u32 2147483647, %v3009_v29  ;;  %v4768_v20 = vpop.eup %4767  ;;  %v3998_v62 = vadd.f32 %v3966_v37, %v3486_v28  ;;  %v2481_v28 = vld [vmem:[%s6262_s20 + $0xb8] sm:$0xff]  ;;  %v3040_v37 = vmax.f32 %v3008_v4, 0.0 }
 0x28e   : > { %v3622_v45 = vmul.f32 1.442695, %v3585_v22  ;;  %v3705_v50 = vmul.f32 0.6931472, %v4768_v20  ;;  %4567 = vmatmul.msk.f32.gmra.mxu3 %vm418_vm0, %v2511_v27  ;;  %v3519_v27 = vmax.f32 %v6866_v30, 0.0  ;;  %v2785_v22 = vmul.f32 %v2753_v16, %v6903_v58 }
 0x28f   : > { %v4770_v55 = vpop.eup %4769  ;;  %v3105_v33 = vsub.f32 0.0, %v3073_v21  ;;  %4599 = vmatmul.msk.f32.gmra.mxu0 %vm418_vm0, %v2784_v57  ;;  %4043 = vperm.xlu1 %4673, %v3998_v62   ;;  %v2513_v15 = vmul.f32 %v2481_v28, %v6935_v12 }
 0x290   : > { %v6930_v25 = vpop.eup %4771  ;;  %v3225_v63 = vmul.f32 0.6931472, %v4770_v55  ;;  %4775 = vpow2.f32 %v3622_v45  ;;  %v3711_v7 = vsel %vm6926_vm15, %v3708_v10, %v3705_v50 }
 0x291   : > { %v4774_v54 = vpop.eup %4773  ;;  %v3142_v52 = vmul.f32 1.442695, %v3105_v33  ;;  %v3712_v32 = vadd.f32 1.0, %v6930_v25  ;;  %v3715_v18 = vmul.f32 -0.5, %v6930_v25  ;;  %v3967_v44 = vadd.f32 %v3711_v7, %v3519_v27 }
 0x292   : > { %v3231_v41 = vsel %vm3230_vm1, %v3228_v14, %v3225_v63  ;;  %v3232_v59 = vadd.f32 1.0, %v4774_v54  ;;  %v3235_v57 = vmul.f32 -0.5, %v4774_v54  ;;  %v3238_v55 = vand.u32 2147483647, %v4774_v54 }
 0x293   : > { %v3487_v3 = vadd.f32 %v3231_v41, %v3039_v24  ;;  %4777 = vpow2.f32 %v3142_v52  ;;  %v6945_v13 = vpop.f32.mrf.mxu0  ;;  %v3716_v50 = vadd.f32 1.0, %v3715_v18  ;;  %v3520_v33 = vmax.f32 %v6885_v38, 0.0 }
 0x294   : > { %4779 = vlog2.f32 %v3232_v59  ;;  %v3554_v21 = vand.u32 2147483647, %v6945_v13  ;;  %v3236_v24 = vadd.f32 1.0, %v3235_v57  ;;  %v3718_v62 = vand.u32 2147483647, %v6930_v25 }
 0x295   : > { %4781 = vlog2.f32 %v3712_v32  ;;  %v3999_v20 = vadd.f32 %v3967_v44, %v3487_v3  ;;  %v2786_v38 = vmul.f32 %v2754_v39, %v6935_v12  ;;  %v6960_v35 = vpop.f32.mrf.mxu2  ;;  %vm3239_vm2 = vcmp.lt.f32.partialorder %v3238_v55, 0.0004427343 }
 0x296   : > { %v4776_v26 = vpop.eup %4775  ;;  %v3586_v45 = vsub.f32 0.0, %v3554_v21  ;;  %4568 = vmatmul.msk.f32.gmra.mxu3 %vm418_vm0, %v2512_v46  ;;  %v3237_v16 = vmul.f32 %v4774_v54, %v3236_v24  ;;  %v3717_v27 = vmul.f32 %v6930_v25, %v3716_v50  ;;  %vm3719_vm3 = vcmp.lt.f32.partialorder %v3718_v62, 0.0004427343 }
 0x297   : > { %v3721_v30 = vadd.f32 1.0, %v4776_v26  ;;  %v3724_v10 = vmul.f32 -0.5, %v4776_v26  ;;  %4600 = vmatmul.msk.f32.gmra.mxu0 %vm418_vm0, %v2785_v22  ;;  %4048 = vperm.xlu1 %4673, %v3999_v20   ;;  %v3727_v44 = vand.u32 2147483647, %v4776_v26  ;;  %v3521_v55 = vmax.f32 %v6907_v60, 0.0 }
 0x298   : > { %v3624_v52 = vmul.f32 1.442695, %v3586_v45 }
 0x299   : > { %v4778_v23 = vpop.eup %4777  ;;  %4783 = vlog2.f32 %v3721_v30  ;;  %v6957_v41 = vpop.f32.mrf.mxu3  ;;  %v3725_v3 = vadd.f32 1.0, %v3724_v10  ;;  %vm6973_vm4 = vcmp.lt.f32.partialorder %v3727_v44, 0.0004427343 }
 0x29a   : > { %v4780_v63 = vpop.eup %4779  ;;  %v3241_v14 = vadd.f32 1.0, %v4778_v23  ;;  %v3244_v7 = vmul.f32 -0.5, %v4778_v23  ;;  %v3010_v59 = vsub.f32 0.0, %v6957_v41  ;;  %v3247_v24 = vand.u32 2147483647, %v4778_v23 }
 0x29b   : > { %v4782_v32 = vpop.eup %4781  ;;  %v3234_v4 = vmul.f32 0.6931472, %v4780_v63  ;;  %v6964_v57 = vpop.f32.mrf.mxu0  ;;  %v3726_v50 = vmul.f32 %v4776_v26, %v3725_v3  ;;  %v2482_v63 = vld [vmem:[%s6262_s20 + $0xc0] sm:$0xff] }
 0x29c   : > { %4785 = vlog2.f32 %v3241_v14  ;;  %v3714_v18 = vmul.f32 0.6931472, %v4782_v32  ;;  %v3074_v22 = vand.u32 2147483647, %v3010_v59  ;;  %v3245_v54 = vadd.f32 1.0, %v3244_v7  ;;  %v2755_v32 = vld [vmem:[%s6289_s29 + $0xc0] sm:$0xff] }
 0x29d   : > { %4787 = vpow2.f32 %v3624_v52  ;;  %v3240_v46 = vsel %vm3239_vm2, %v3237_v16, %v3234_v4  ;;  %v3555_v30 = vand.u32 2147483647, %v6964_v57  ;;  %vm3248_vm5 = vcmp.lt.f32.partialorder %v3247_v24, 0.0004427343  ;;  %v2756_v24 = vld [vmem:[%s6289_s29 + $0xc8] sm:$0xff] }
 0x29e   : > { %v3488_v28 = vadd.f32 %v3240_v46, %v3040_v37  ;;  %v3720_v20 = vsel %vm3719_vm3, %v3717_v27, %v3714_v18  ;;  %v3106_v45 = vsub.f32 0.0, %v3074_v22  ;;  %4569 = vmatmul.msk.f32.gmra.mxu3 %vm418_vm0, %v2513_v15  ;;  %v3041_v37 = vmax.f32 %v3009_v29, 0.0 }
 0x29f   : > { %v4784_v21 = vpop.eup %4783  ;;  %v3968_v39 = vadd.f32 %v3720_v20, %v3520_v33  ;;  %v3587_v10 = vsub.f32 0.0, %v3555_v30  ;;  %4601 = vmatmul.msk.f32.gmra.mxu0 %vm418_vm0, %v2786_v38  ;;  %v3246_v33 = vmul.f32 %v4778_v23, %v3245_v54  ;;  %v2514_v6 = vmul.f32 %v2482_v63, %v6960_v35  ;;  %v6992_v23 = vpop.f32.mrf.mxu2  ;;  %v2483_v20 = vld [vmem:[%s6262_s20 + $0xc8] sm:$0xff] }
 0x2a0   : > { %v3723_v25 = vmul.f32 0.6931472, %v4784_v21  ;;  %v3144_v62 = vmul.f32 1.442695, %v3106_v45  ;;  %v2787_v3 = vmul.f32 %v2755_v32, %v6960_v35  ;;  %v2515_v52 = vmul.f32 %v2483_v20, %v6992_v23 }
 0x2a1   : > { %v4000_v7 = vadd.f32 %v3968_v39, %v3488_v28  ;;  %v3626_v38 = vmul.f32 1.442695, %v3587_v10  ;;  %v6984_v4 = vpop.f32.mrf.mxu3 }
 0x2a2   : > { %v4786_v14 = vpop.eup %4785  ;;  %v3729_v60 = vsel %vm6973_vm4, %v3726_v50, %v3723_v25  ;;  %4789 = vpow2.f32 %v3144_v62  ;;  %v3011_v27 = vsub.f32 0.0, %v6984_v4  ;;  %v2788_v62 = vmul.f32 %v2756_v24, %v6992_v23 }
 0x2a3   : > { %v6980_v15 = vpop.eup %4787  ;;  %v3243_v26 = vmul.f32 0.6931472, %v4786_v14  ;;  %4053 = vperm.xlu2 %4674, %v4000_v7   ;;  %4791 = vpow2.f32 %v3626_v38  ;;  %v6990_v46 = vpop.f32.mrf.mxu0  ;;  %v3969_v18 = vadd.f32 %v3729_v60, %v3521_v55 }
 0x2a4   : > { %v3730_v16 = vadd.f32 1.0, %v6980_v15  ;;  %v3075_v22 = vand.u32 2147483647, %v3011_v27  ;;  %v3556_v21 = vand.u32 2147483647, %v6990_v46  ;;  %v3733_v39 = vmul.f32 -0.5, %v6980_v15 }
 0x2a5   : > { %v3249_v29 = vsel %vm3248_vm5, %v3246_v33, %v3243_v26  ;;  %v3736_v38 = vand.u32 2147483647, %v6980_v15 }
 0x2a6   : > { %v3489_v44 = vadd.f32 %v3249_v29, %v3041_v37  ;;  %4793 = vlog2.f32 %v3730_v16  ;;  %4570 = vmatmul.msk.f32.gmra.mxu3 %vm418_vm0, %v2514_v6  ;;  %v3107_v30 = vsub.f32 0.0, %v3075_v22  ;;  %v3588_v28 = vsub.f32 0.0, %v3556_v21  ;;  %v2484_v29 = vld [vmem:[%s6262_s20 + $0xd0] sm:$0xff] }
 0x2a7   : > { %4602 = vmatmul.msk.f32.gmra.mxu0 %vm418_vm0, %v2787_v3  ;;  %v3734_v26 = vadd.f32 1.0, %v3733_v39  ;;  %v2757_v22 = vld [vmem:[%s6289_s29 + $0xd0] sm:$0xff]  ;;  %vm7027_vm6 = vcmp.lt.f32.partialorder %v3736_v38, 0.0004427343 }
 0x2a8   : > { %v4001_v54 = vadd.f32 %v3969_v18, %v3489_v44  ;;  %v4790_v25 = vpop.eup %4789  ;;  %v3146_v50 = vmul.f32 1.442695, %v3107_v30  ;;  %v3628_v37 = vmul.f32 1.442695, %v3588_v28  ;;  %v3042_v30 = vmax.f32 %v3010_v59, 0.0 }
 0x2a9   : > { %v7001_v45 = vpop.eup %4791  ;;  %v3250_v55 = vadd.f32 1.0, %v4790_v25  ;;  %v7004_v10 = vpop.f32.mrf.mxu3  ;;  %v3253_v63 = vmul.f32 -0.5, %v4790_v25  ;;  %v3256_v6 = vand.u32 2147483647, %v4790_v25 }
 0x2aa   : > { %v3739_v14 = vadd.f32 1.0, %v7001_v45  ;;  %v3012_v7 = vsub.f32 0.0, %v7004_v10  ;;  %v3742_v41 = vmul.f32 -0.5, %v7001_v45  ;;  %v2486_v10 = vld [vmem:[%s6262_s20 + $0xe0] sm:$0xff] }
 0x2ab   : > { %4058 = vperm.xlu2 %4674, %v4001_v54   ;;  %4795 = vlog2.f32 %v3250_v55  ;;  %v3254_v16 = vadd.f32 1.0, %v3253_v63  ;;  %v3735_v54 = vmul.f32 %v6980_v15, %v3734_v26  ;;  %vm3257_vm7 = vcmp.lt.f32.partialorder %v3256_v6, 0.0004427343 }
 0x2ac   : > { %v4794_v32 = vpop.eup %4793  ;;  %v7010_v60 = vpop.f32.mrf.mxu0  ;;  %4797 = vpow2.f32 %v3146_v50  ;;  %v3076_v18 = vand.u32 2147483647, %v3012_v7 }
 0x2ad   : > { %4799 = vlog2.f32 %v3739_v14  ;;  %v3732_v3 = vmul.f32 0.6931472, %v4794_v32  ;;  %v3557_v44 = vand.u32 2147483647, %v7010_v60  ;;  %v3255_v50 = vmul.f32 %v4790_v25, %v3254_v16 }
 0x2ae   : > { %v7012_v33 = vpop.f32.mrf.mxu2  ;;  %4571 = vmatmul.msk.f32.gmra.mxu3 %vm418_vm0, %v2515_v52  ;;  %4801 = vpow2.f32 %v3628_v37  ;;  %v3108_v28 = vsub.f32 0.0, %v3076_v18  ;;  %v3522_v16 = vmax.f32 %v6945_v13, 0.0 }
 0x2af   : > { %4603 = vmatmul.msk.f32.gmra.mxu0 %vm418_vm0, %v2788_v62  ;;  %v3589_v20 = vsub.f32 0.0, %v3557_v44  ;;  %v2516_v63 = vmul.f32 %v2484_v29, %v7012_v33  ;;  %v3738_v52 = vsel %vm7027_vm6, %v3735_v54, %v3732_v3  ;;  %v2789_v59 = vmul.f32 %v2757_v22, %v7012_v33  ;;  %v2485_v54 = vld [vmem:[%s6262_s20 + $0xd8] sm:$0xff] }
 0x2b0   : > { %v3148_v32 = vmul.f32 1.442695, %v3108_v28  ;;  %v3970_v18 = vadd.f32 %v3738_v52, %v3522_v16  ;;  %v3743_v44 = vadd.f32 1.0, %v3742_v41  ;;  %v3745_v22 = vand.u32 2147483647, %v7001_v45 }
 0x2b1   : > { %v4796_v21 = vpop.eup %4795  ;;  %v7025_v24 = vpop.f32.mrf.mxu3  ;;  %v3630_v6 = vmul.f32 1.442695, %v3589_v20 }
 0x2b2   : > { %v3252_v55 = vmul.f32 0.6931472, %v4796_v21  ;;  %v4798_v14 = vpop.eup %4797  ;;  %v7812_v26 = vsub.f32 0.0, %v7025_v24  ;;  %vm7060_vm8 = vcmp.lt.f32.partialorder %v3745_v22, 0.0004427343 }
 0x2b3   : > { %v4800_v15 = vpop.eup %4799  ;;  %v3259_v62 = vadd.f32 1.0, %v4798_v14  ;;  %v3262_v29 = vmul.f32 -0.5, %v4798_v14 }
 0x2b4   : > { %v3258_v37 = vsel %vm3257_vm7, %v3255_v50, %v3252_v55  ;;  %v7037_v38 = vpop.f32.mrf.mxu0  ;;  %v7039_v25 = vpop.eup %4801  ;;  %v3741_v28 = vmul.f32 0.6931472, %v4800_v15  ;;  %v3077_v13 = vand.u32 2147483647, %v7812_v26  ;;  %v3265_v55 = vand.u32 2147483647, %v4798_v14 }
 0x2b5   : > { %v3490_v3 = vadd.f32 %v3258_v37, %v3042_v30  ;;  %4803 = vlog2.f32 %v3259_v62  ;;  %v3748_v39 = vadd.f32 1.0, %v7039_v25  ;;  %v2758_v30 = vld [vmem:[%s6289_s29 + $0xd8] sm:$0xff]  ;;  %v3263_v20 = vadd.f32 1.0, %v3262_v29 }
 0x2b6   : > { %4572 = vmatmul.msk.f32.gmra.mxu3 %vm418_vm0, %v2516_v63  ;;  %v7045_v21 = vpop.f32.mrf.mxu2  ;;  %4805 = vpow2.f32 %v3148_v32  ;;  %v3558_v50 = vand.u32 2147483647, %v7037_v38  ;;  %v3109_v52 = vsub.f32 0.0, %v3077_v13  ;;  %v3523_v37 = vmax.f32 %v6964_v57, 0.0 }
 0x2b7   : > { %4604 = vmatmul.msk.f32.gmra.mxu0 %vm418_vm0, %v2789_v59  ;;  %7898 = vst [vmem:[#allocation9_spill] sm:$0xff] %v7045_v21  ;;  %4807 = vpow2.f32 %v3630_v6  ;;  %v4002_v41 = vadd.f32 %v3970_v18, %v3490_v3  ;;  %v2517_v15 = vmul.f32 %v2485_v54, %v7045_v21  ;;  %v3744_v62 = vmul.f32 %v7001_v45, %v3743_v44 }
 0x2b8   : > { %v3590_v32 = vsub.f32 0.0, %v3558_v50  ;;  %v2790_v16 = vmul.f32 %v2758_v30, %v7045_v21  ;;  %4809 = vlog2.f32 %v3748_v39  ;;  %v3150_v26 = vmul.f32 1.442695, %v3109_v52 }
 0x2b9   : > { %v7053_v63 = vpop.f32.mrf.mxu3  ;;  %4063 = vperm.xlu0 %4672, %v4002_v41   ;;  %v3747_v57 = vsel %vm7060_vm8, %v3744_v62, %v3741_v28  ;;  %v3043_v45 = vmax.f32 %v3011_v27, 0.0  ;;  %v3264_v54 = vmul.f32 %v4798_v14, %v3263_v20  ;;  %vm3266_vm9 = vcmp.lt.f32.partialorder %v3265_v55, 0.0004427343 }
 0x2ba   : > { %v7813_v59 = vsub.f32 0.0, %v7053_v63  ;;  %v3751_v13 = vmul.f32 -0.5, %v7039_v25  ;;  %4811 = vpow2.f32 %v3150_v26  ;;  %v3632_v41 = vmul.f32 1.442695, %v3590_v32 }
 0x2bb   : > { %v4804_v29 = vpop.eup %4803  ;;  %v3524_v27 = vmax.f32 %v6990_v46, 0.0  ;;  %v3971_v26 = vadd.f32 %v3747_v57, %v3523_v37  ;;  %v3044_v55 = vmax.f32 %v3012_v7, 0.0 }
 0x2bc   : > { %v3078_v3 = vand.u32 2147483647, %v7813_v59  ;;  %v7066_v18 = vpop.f32.mrf.mxu0  ;;  %v3261_v44 = vmul.f32 0.6931472, %v4804_v29  ;;  %v4806_v22 = vpop.eup %4805  ;;  %v3752_v29 = vadd.f32 1.0, %v3751_v13 }
 0x2bd   : > { %v7074_v30 = vpop.eup %4807  ;;  %v3268_v52 = vadd.f32 1.0, %v4806_v22  ;;  %v3559_v28 = vand.u32 2147483647, %v7066_v18  ;;  %v3271_v14 = vmul.f32 -0.5, %v4806_v22 }
 0x2be   : > { %v3110_v39 = vsub.f32 0.0, %v3078_v3  ;;  %4573 = vmatmul.msk.f32.gmra.mxu3 %vm418_vm0, %v2517_v15  ;;  %v3267_v50 = vsel %vm3266_vm9, %v3264_v54, %v3261_v44  ;;  %v3757_v20 = vadd.f32 1.0, %v7074_v30  ;;  %v4810_v32 = vpop.eup %4809  ;;  %v3274_v3 = vand.u32 2147483647, %v4806_v22 }
 0x2bf   : > { %4605 = vmatmul.msk.f32.gmra.mxu0 %vm418_vm0, %v2790_v16  ;;  %v3491_v4 = vadd.f32 %v3267_v50, %v3043_v45  ;;  %4813 = vlog2.f32 %v3268_v52  ;;  %v3754_v16 = vand.u32 2147483647, %v7039_v25  ;;  %v3591_v37 = vsub.f32 0.0, %v3559_v28  ;;  %v2759_v45 = vld [vmem:[%s6289_s29 + $0xe0] sm:$0xff] }
 0x2c0   : > { %4815 = vlog2.f32 %v3757_v20  ;;  %v3152_v46 = vmul.f32 1.442695, %v3110_v39  ;;  %v4812_v7 = vpop.eup %4811  ;;  %v3272_v44 = vadd.f32 1.0, %v3271_v14  ;;  %v3760_v54 = vmul.f32 -0.5, %v7074_v30 }
 0x2c1   : > { %v7083_v62 = vpop.f32.mrf.mxu3  ;;  %v7086_v6 = vpop.f32.mrf.mxu2  ;;  %4817 = vpow2.f32 %v3632_v41  ;;  %v4003_v57 = vadd.f32 %v3971_v26, %v3491_v4  ;;  %v3750_v52 = vmul.f32 0.6931472, %v4810_v32  ;;  %v7902_v39 = vsub.f32 0.0, %v7025_v24 }
 0x2c2   : > { %7901 = vst [vmem:[#allocation10_spill] sm:$0xff] %v7086_v6  ;;  %4819 = vpow2.f32 %v3152_v46  ;;  %v7815_v50 = vsub.f32 0.0, %v7083_v62  ;;  %v3277_v59 = vadd.f32 1.0, %v4812_v7  ;;  %v3634_v15 = vmul.f32 1.442695, %v3591_v37 }
 0x2c3   : > { %v3045_v20 = vmax.f32 %v7902_v39, 0.0  ;;  %4068 = vperm.xlu1 %4673, %v4003_v57   ;;  %v3280_v41 = vmul.f32 -0.5, %v4812_v7  ;;  %v2518_v4 = vmul.f32 %v2486_v10, %v7086_v6  ;;  %v2791_v14 = vmul.f32 %v2759_v45, %v7086_v6 }
 0x2c4   : > { %v7092_v13 = vpop.f32.mrf.mxu0  ;;  %v3079_v28 = vand.u32 2147483647, %v7815_v50  ;;  %v3753_v46 = vmul.f32 %v7039_v25, %v3752_v29  ;;  %vm7101_vm10 = vcmp.lt.f32.partialorder %v3754_v16, 0.0004427343  ;;  %vm7105_vm11 = vcmp.lt.f32.partialorder %v3274_v3, 0.0004427343 }
 0x2c5   : > { %v4814_v26 = vpop.eup %4813  ;;  %4821 = vlog2.f32 %v3277_v59  ;;  %v3273_v57 = vmul.f32 %v4806_v22, %v3272_v44  ;;  %v3761_v39 = vadd.f32 1.0, %v3760_v54  ;;  %v3763_v29 = vand.u32 2147483647, %v7074_v30 }
 0x2c6   : > { %v4816_v32 = vpop.eup %4815  ;;  %v3270_v37 = vmul.f32 0.6931472, %v4814_v26  ;;  %4823 = vpow2.f32 %v3634_v15  ;;  %4574 = vmatmul.msk.f32.gmra.mxu3 %vm418_vm0, %v2518_v4  ;;  %v3756_v25 = vsel %vm7101_vm10, %v3753_v46, %v3750_v52  ;;  %v3283_v16 = vand.u32 2147483647, %v4812_v7 }
 0x2c7   : > { %4606 = vmatmul.msk.f32.gmra.mxu0 %vm418_vm0, %v2791_v14  ;;  %v7111_v10 = vpop.eup %4817  ;;  %v3111_v3 = vsub.f32 0.0, %v3079_v28  ;;  %v3281_v15 = vadd.f32 1.0, %v3280_v41  ;;  %v3560_v54 = vand.u32 2147483647, %v7092_v13  ;;  %v3759_v14 = vmul.f32 0.6931472, %v4816_v32 }
 0x2c8   : > { %v4820_v59 = vpop.eup %4819  ;;  %v3276_v22 = vsel %vm7105_vm11, %v3273_v57, %v3270_v37  ;;  %v3766_v44 = vadd.f32 1.0, %v7111_v10  ;;  %v3769_v53 = vmul.f32 -0.5, %v7111_v10  ;;  %v3972_v26 = vadd.f32 %v3756_v25, %v3524_v27 }
 0x2c9   : > { %v7116_v45 = vpop.f32.mrf.mxu3  ;;  %v3492_v4 = vadd.f32 %v3276_v22, %v3044_v55  ;;  %v3286_v52 = vadd.f32 1.0, %v4820_v59  ;;  %v3762_v46 = vmul.f32 %v7074_v30, %v3761_v39  ;;  %v3289_v28 = vmul.f32 -0.5, %v4820_v59 }
 0x2ca   : > { %4825 = vlog2.f32 %v3766_v44  ;;  %v7124_v50 = vpop.f32.mrf.mxu2  ;;  %vm7128_vm12 = vcmp.lt.f32.partialorder %v3763_v29, 0.0004427343  ;;  %vm7132_vm13 = vcmp.lt.f32.partialorder %v3283_v16, 0.0004427343  ;;  %v3154_v27 = vmul.f32 1.442695, %v3111_v3 }
 0x2cb   : > { %7907 = vst [vmem:[#allocation11_spill] sm:$0xff] %v7124_v50  ;;  %v4822_v41 = vpop.eup %4821  ;;  %4827 = vlog2.f32 %v3286_v52  ;;  %v3282_v57 = vmul.f32 %v4812_v7, %v3281_v15  ;;  %v3592_v39 = vsub.f32 0.0, %v3560_v54  ;;  %v4004_v25 = vadd.f32 %v3972_v26, %v3492_v4  ;;  %v2487_v16 = vld [vmem:[%s6262_s20 + $0xe8] sm:$0xff] }
 0x2cc   : > { %v7126_v24 = vpop.f32.mrf.mxu0  ;;  %v7136_v30 = vpop.eup %4823  ;;  %v3279_v32 = vmul.f32 0.6931472, %v4822_v41  ;;  %v3765_v22 = vsel %vm7128_vm12, %v3762_v46, %v3759_v14  ;;  %v3770_v44 = vadd.f32 1.0, %v3769_v53  ;;  %v3772_v29 = vand.u32 2147483647, %v7111_v10 }
 0x2cd   : > { %v3775_v48 = vadd.f32 1.0, %v7136_v30  ;;  %v3290_v3 = vadd.f32 1.0, %v3289_v28  ;;  %4829 = vpow2.f32 %v3154_v27  ;;  %v3636_v6 = vmul.f32 1.442695, %v3592_v39  ;;  %4073 = vperm.xlu2 %4674, %v4004_v25   ;;  %v2488_v25 = vld [vmem:[%s6262_s20 + $0xf0] sm:$0xff] }
 0x2ce   : > { %v3285_v52 = vsel %vm7132_vm13, %v3282_v57, %v3279_v32  ;;  %v3292_v15 = vand.u32 2147483647, %v4820_v59  ;;  %v3016_v54 = vsub.f32 0.0, %v7116_v45  ;;  %v7912_v53 = vmax.f32 %v7010_v60, 0.0 }
 0x2cf   : > { %v3493_v7 = vadd.f32 %v3285_v52, %v3045_v20  ;;  %4831 = vlog2.f32 %v3775_v48  ;;  %v2519_v46 = vmul.f32 %v2487_v16, %v7124_v50  ;;  %v2792_v28 = vmul.f32 %v2760_v56, %v7124_v50 }
 0x2d0   : > { %v4826_v14 = vpop.eup %4825  ;;  %v3973_v26 = vadd.f32 %v3765_v22, %v7912_v53  ;;  %4833 = vpow2.f32 %v3636_v6  ;;  %v3080_v20 = vand.u32 2147483647, %v3016_v54  ;;  %v3291_v55 = vmul.f32 %v4820_v59, %v3290_v3 }
 0x2d1   : > { %v7147_v4 = vpop.f32.mrf.mxu3  ;;  %v4828_v41 = vpop.eup %4827  ;;  %v3768_v37 = vmul.f32 0.6931472, %v4826_v14  ;;  %v3561_v27 = vand.u32 2147483647, %v7126_v24  ;;  %4575 = vmatmul.msk.f32.gmra.mxu3 %vm418_vm0, %v2519_v46  ;;  %4607 = vmatmul.msk.f32.gmra.mxu0 %vm418_vm0, %v2792_v28  ;;  %v3526_v32 = vmax.f32 %v7037_v38, 0.0  ;;  %v3771_v56 = vmul.f32 %v7111_v10, %v3770_v44 }
 0x2d2   : > { %v3288_v48 = vmul.f32 0.6931472, %v4828_v41  ;;  %v4005_v60 = vadd.f32 %v3973_v26, %v3493_v7  ;;  %vm7162_vm14 = vcmp.lt.f32.partialorder %v3292_v15, 0.0004427343  ;;  %v3112_v39 = vsub.f32 0.0, %v3080_v20 }
 0x2d3   : > { %v4830_v59 = vpop.eup %4829  ;;  %vm7167_vm15 = vcmp.lt.f32.partialorder %v3772_v29, 0.0004427343  ;;  %v3778_v52 = vmul.f32 -0.5, %v7136_v30  ;;  %v3593_v3 = vsub.f32 0.0, %v3561_v27  ;;  %v7918_v7 = vsub.f32 0.0, %v7053_v63 }
 0x2d4   : > { %v7158_v6 = vpop.f32.mrf.mxu0  ;;  %v3294_v16 = vsel %vm7162_vm14, %v3291_v55, %v3288_v48  ;;  %4078 = vperm.xlu0 %4672, %v4005_v60   ;;  %v3774_v44 = vsel %vm7167_vm15, %v3771_v56, %v3768_v37  ;;  %v3295_v29 = vadd.f32 1.0, %v4830_v59  ;;  %v7820_v14 = vsub.f32 0.0, %v7147_v4  ;;  %v2761_v60 = vld [vmem:[%s6289_s29 + $0xf0] sm:$0xff] }
 0x2d5   : > { %v7174_v38 = vpop.f32.mrf.mxu2  ;;  %v4832_v10 = vpop.eup %4831  ;;  %v3046_v15 = vmax.f32 %v7918_v7, 0.0  ;;  %v3298_v26 = vmul.f32 -0.5, %v4830_v59  ;;  %v3156_v46 = vmul.f32 1.442695, %v3112_v39  ;;  %v3638_v28 = vmul.f32 1.442695, %v3593_v3 }
 0x2d6   : > { %7917 = vst [vmem:[#allocation12_spill] sm:$0xff] %v7174_v38  ;;  %v7181_v53 = vpop.eup %4833  ;;  %v2520_v41 = vmul.f32 %v2488_v25, %v7174_v38  ;;  %4835 = vlog2.f32 %v3295_v29  ;;  %v3562_v37 = vand.u32 2147483647, %v7158_v6  ;;  %v3779_v63 = vadd.f32 1.0, %v3778_v52 }
 0x2d7   : > { %v3494_v20 = vadd.f32 %v3294_v16, %v3046_v15  ;;  %v3784_v48 = vadd.f32 1.0, %v7181_v53  ;;  %v3781_v27 = vand.u32 2147483647, %v7136_v30  ;;  %4837 = vpow2.f32 %v3156_v46 }
 0x2d8   : > { %v3974_v56 = vadd.f32 %v3774_v44, %v3526_v32  ;;  %v3777_v57 = vmul.f32 0.6931472, %v4832_v10  ;;  %v3301_v22 = vand.u32 2147483647, %v4830_v59  ;;  %v3299_v39 = vadd.f32 1.0, %v3298_v26 }
 0x2d9   : > { %v7186_v55 = vpop.f32.mrf.mxu3  ;;  %4839 = vlog2.f32 %v3784_v48  ;;  %v3787_v25 = vmul.f32 -0.5, %v7181_v53  ;;  %v3081_v16 = vand.u32 2147483647, %v7820_v14  ;;  %4576 = vmatmul.msk.f32.gmra.mxu3 %vm418_vm0, %v2520_v41  ;;  %v2793_v52 = vmul.f32 %v2761_v60, %v7174_v38 }
 0x2da   : > { %4841 = vpow2.f32 %v3638_v28  ;;  %v3594_v7 = vsub.f32 0.0, %v3562_v37  ;;  %v4006_v15 = vadd.f32 %v3974_v56, %v3494_v20  ;;  %v7819_v32 = vsub.f32 0.0, %v7186_v55 }
 0x2db   : > { %v3780_v10 = vmul.f32 %v7136_v30, %v3779_v63  ;;  %vm7199_vm1 = vcmp.lt.f32.partialorder %v3781_v27, 0.0004427343  ;;  %v7921_v29 = vsub.f32 0.0, %v7083_v62  ;;  %v3113_v46 = vsub.f32 0.0, %v3081_v16  ;;  %4608 = vmatmul.msk.f32.gmra.mxu0 %vm418_vm0, %v2793_v52 }
 0x2dc   : > { %v7194_v3 = vpop.f32.mrf.mxu0  ;;  %v4836_v28 = vpop.eup %4835  ;;  %vm7205_vm2 = vcmp.lt.f32.partialorder %v3301_v22, 0.0004427343  ;;  %v3640_v48 = vmul.f32 1.442695, %v3594_v7  ;;  %4083 = vperm.xlu1 %4673, %v4006_v15   ;;  %v3082_v30 = vand.u32 2147483647, %v7819_v32  ;;  %v3300_v63 = vmul.f32 %v4830_v59, %v3299_v39 }
 0x2dd   : > { %v3047_v26 = vmax.f32 %v7921_v29, 0.0  ;;  %v4838_v20 = vpop.eup %4837  ;;  %v3783_v37 = vsel %vm7199_vm1, %v3780_v10, %v3777_v57  ;;  %v3297_v62 = vmul.f32 0.6931472, %v4836_v28  ;;  %v3158_v27 = vmul.f32 1.442695, %v3113_v46  ;;  %v2489_v59 = vld [vmem:[%s6262_s20 + $0xf8] sm:$0xff] }
 0x2de   : > { %v3788_v56 = vadd.f32 1.0, %v3787_v25  ;;  %v3304_v22 = vadd.f32 1.0, %v4838_v20  ;;  %4843 = vpow2.f32 %v3640_v48  ;;  %v3563_v16 = vand.u32 2147483647, %v7194_v3  ;;  %v2762_v46 = vld [vmem:[%s6289_s29 + $0xf8] sm:$0xff]  ;;  %s5009_s20 = sshra.s32 %s4307_s8, 4  ;;  %s5010_s20 = int_to_ptr.hbm [resolvable:$true] %s5009_s20 }
 0x2df   : > { %v4840_v60 = vpop.eup %4839  ;;  %v3303_v15 = vsel %vm7205_vm2, %v3300_v63, %v3297_v62  ;;  %v3307_v44 = vmul.f32 -0.5, %v4838_v20  ;;  %4845 = vpow2.f32 %v3158_v27  ;;  %v3114_v57 = vsub.f32 0.0, %v3082_v30  ;;  %s5011_s21 = scalar_lea.hbm %s5010_s20, 32  ;;  %s5015_s29 = scalar_lea.hbm %s7811_s7, 96 }
 0x2e0   : > { %v7217_v7 = vpop.eup %4841  ;;  %v7221_v10 = vpop.f32.mrf.mxu2  ;;  %v3527_v39 = vmax.f32 %v7066_v18, 0.0  ;;  %v3495_v25 = vadd.f32 %v3303_v15, %v3047_v26  ;;  %v3790_v29 = vand.u32 2147483647, %v7181_v53  ;;  %4847 = vlog2.f32 %v3304_v22  ;;  %p5012_p11 = scmp.ne.s32.totalorder %s5010_s20, %s5011_s21  ;;  %p5016_p0 = scmp.lt.s32.totalorder %s5010_s20, %s7811_s7 }
 0x2e1   : > { %v7215_v52 = vpop.f32.mrf.mxu3  ;;  %7924 = vst [vmem:[#allocation13_spill] sm:$0xff] %v7221_v10  ;;  %v3786_v28 = vmul.f32 0.6931472, %v4840_v60  ;;  %v3793_v48 = vadd.f32 1.0, %v7217_v7  ;;  %v3796_v32 = vmul.f32 -0.5, %v7217_v7  ;;  %v2521_v30 = vmul.f32 %v2489_v59, %v7221_v10  ;;  %p5017_p1 = scmp.lt.s32.totalorder %s5015_s29, %s5011_s21 }
 0x2e2   : > { %v3975_v62 = vadd.f32 %v3783_v37, %v3527_v39  ;;  %v3160_v63 = vmul.f32 1.442695, %v3114_v57  ;;  %v3595_v27 = vsub.f32 0.0, %v3563_v16  ;;  %v3789_v14 = vmul.f32 %v7181_v53, %v3788_v56  ;;  %p5013_p12 = pnand %p5012_p11, %p5142_p5 }
 0x2e3   : > { %v3308_v18 = vadd.f32 1.0, %v3307_v44  ;;  %4849 = vlog2.f32 %v3793_v48  ;;  %v2794_v26 = vmul.f32 %v2762_v46, %v7221_v10  ;;  %vm7236_vm3 = vcmp.lt.f32.partialorder %v3790_v29, 0.0004427343  ;;  %4577 = vmatmul.msk.f32.gmra.mxu3 %vm418_vm0, %v2521_v30  ;;  %p5018_p2 = por %p5017_p1, %p5016_p0 }
 0x2e4   : > { %v7229_v41 = vpop.f32.mrf.mxu0  ;;  %v7234_v22 = vpop.eup %4843  ;;  %v3310_v15 = vand.u32 2147483647, %v4838_v20  ;;  %4851 = vpow2.f32 %v3160_v63  ;;  %v4007_v37 = vadd.f32 %v3975_v62, %v3495_v25  ;;  %v3792_v16 = vsel %vm7236_vm3, %v3789_v14, %v3786_v28  ;;  %p5014_p13 = pneg %p5013_p12 }
 0x2e5   : > { %v4846_v57 = vpop.eup %4845  ;;  %v3797_v53 = vadd.f32 1.0, %v3796_v32  ;;  %v3802_v56 = vadd.f32 1.0, %v7234_v22  ;;  %4609 = vmatmul.msk.f32.gmra.mxu0 %vm418_vm0, %v2794_v26  ;;  %v7821_v44 = vsub.f32 0.0, %v7215_v52  ;;  %v3528_v39 = vmax.f32 %v7092_v13, 0.0 }
 0x2e6   : > { %v4848_v59 = vpop.eup %4847  ;;  %v3313_v29 = vadd.f32 1.0, %v4846_v57  ;;  %v3642_v46 = vmul.f32 1.442695, %v3595_v27  ;;  %4088 = vperm.xlu2 %4674, %v4007_v37   ;;  %v3048_v25 = vmax.f32 %v3016_v54, 0.0  ;;  %v3309_v14 = vmul.f32 %v4838_v20, %v3308_v18  ;;  %p5019_p3 = pnand %p5018_p2, %p5014_p13 }
 0x2e7   : > { %v3306_v62 = vmul.f32 0.6931472, %v4848_v59  ;;  %v3316_v32 = vmul.f32 -0.5, %v4846_v57  ;;  %v3976_v28 = vadd.f32 %v3792_v16, %v3528_v39  ;;  %vm3311_vm4 = vcmp.lt.f32.partialorder %v3310_v15, 0.0004427343 }
 0x2e8   : > { %v3799_v63 = vand.u32 2147483647, %v7217_v7  ;;  %4853 = vlog2.f32 %v3313_v29  ;;  %v3798_v13 = vmul.f32 %v7217_v7, %v3797_v53  ;;  %v3083_v27 = vand.u32 2147483647, %v7821_v44 }
 0x2e9   : > { %v7247_v48 = vpop.f32.mrf.mxu3  ;;  %v4850_v30 = vpop.eup %4849  ;;  %v3312_v26 = vsel %vm3311_vm4, %v3309_v14, %v3306_v62  ;;  %4855 = vlog2.f32 %v3802_v56  ;;  %v3564_v20 = vand.u32 2147483647, %v7229_v41  ;;  %v3317_v18 = vadd.f32 1.0, %v3316_v32 }
 0x2ea   : > { %v4852_v45 = vpop.eup %4851  ;;  %v3496_v54 = vadd.f32 %v3312_v26, %v3048_v25  ;;  %v3795_v37 = vmul.f32 0.6931472, %v4850_v30  ;;  %4857 = vpow2.f32 %v3642_v46  ;;  %v3115_v59 = vsub.f32 0.0, %v3083_v27 }
 0x2eb   : > { %v3322_v15 = vadd.f32 1.0, %v4852_v45  ;;  %v3325_v16 = vmul.f32 -0.5, %v4852_v45  ;;  %v3319_v39 = vand.u32 2147483647, %v4846_v57  ;;  %v3805_v29 = vmul.f32 -0.5, %v7234_v22 }
 0x2ec   : > { %v7255_v60 = vpop.f32.mrf.mxu0  ;;  %v3596_v7 = vsub.f32 0.0, %v3564_v20  ;;  %v4008_v53 = vadd.f32 %v3976_v28, %v3496_v54  ;;  %v3529_v56 = vmax.f32 %v7126_v24, 0.0  ;;  %vm7260_vm0 = vcmp.lt.f32.partialorder %v3799_v63, 0.0004427343 }
 0x2ed   : > { %4859 = vlog2.f32 %v3322_v15  ;;  %v3801_v46 = vsel %vm7260_vm0, %v3798_v13, %v3795_v37  ;;  %v3530_v14 = vmax.f32 %v7158_v6, 0.0  ;;  %v3326_v32 = vadd.f32 1.0, %v3325_v16 }
 0x2ee   : > { %v4854_v25 = vpop.eup %4853  ;;  %4093 = vperm.xlu0 %4672, %v4008_v53   ;;  %v3318_v24 = vmul.f32 %v4846_v57, %v3317_v18  ;;  %v3162_v63 = vmul.f32 1.442695, %v3115_v59  ;;  %v3644_v54 = vmul.f32 1.442695, %v3596_v7  ;;  %v7929_v15 = vsub.f32 0.0, %v7147_v4 }
 0x2ef   : > { %v4856_v28 = vpop.eup %4855  ;;  %v3315_v27 = vmul.f32 0.6931472, %v4854_v25  ;;  %vm3320_vm5 = vcmp.lt.f32.partialorder %v3319_v39, 0.0004427343  ;;  %v3806_v13 = vadd.f32 1.0, %v3805_v29  ;;  %v3977_v37 = vadd.f32 %v3801_v46, %v3529_v56 }
 0x2f0   : > { %v7270_v20 = vpop.eup %4857  ;;  %v3049_v44 = vmax.f32 %v7929_v15, 0.0  ;;  %v3808_v6 = vand.u32 2147483647, %v7234_v22  ;;  %v3328_v53 = vand.u32 2147483647, %v4852_v45  ;;  %4861 = vpow2.f32 %v3162_v63 }
 0x2f1   : > { %v7268_v26 = vpop.f32.mrf.mxu3  ;;  %v3321_v16 = vsel %vm3320_vm5, %v3318_v24, %v3315_v27  ;;  %v3804_v25 = vmul.f32 0.6931472, %v4856_v28  ;;  %4863 = vpow2.f32 %v3644_v54  ;;  %v7930_v57 = vsub.f32 0.0, %v7247_v48 }
 0x2f2   : > { %v3497_v30 = vadd.f32 %v3321_v16, %v3049_v44  ;;  %v3327_v7 = vmul.f32 %v4852_v45, %v3326_v32  ;;  %v3811_v4 = vadd.f32 1.0, %v7270_v20  ;;  %v3565_v39 = vand.u32 2147483647, %v7255_v60 }
 0x2f3   : > { %v3084_v18 = vand.u32 2147483647, %v7930_v57  ;;  %v4860_v59 = vpop.eup %4859  ;;  %v7822_v29 = vsub.f32 0.0, %v7268_v26  ;;  %v3807_v44 = vmul.f32 %v7234_v22, %v3806_v13  ;;  %vm3329_vm6 = vcmp.lt.f32.partialorder %v3328_v53, 0.0004427343 }
 0x2f4   : > { %v7275_v62 = vpop.f32.mrf.mxu0  ;;  %v3324_v56 = vmul.f32 0.6931472, %v4860_v59  ;;  %v4009_v27 = vadd.f32 %v3977_v37, %v3497_v30  ;;  %v3597_v28 = vsub.f32 0.0, %v3565_v39  ;;  %vm7286_vm7 = vcmp.lt.f32.partialorder %v3808_v6, 0.0004427343 }
 0x2f5   : > { %v3116_v46 = vsub.f32 0.0, %v3084_v18  ;;  %v3566_v24 = vand.u32 2147483647, %v7275_v62  ;;  %v3085_v63 = vand.u32 2147483647, %v7822_v29  ;;  %v7933_v32 = vsub.f32 0.0, %v7186_v55 }
 0x2f6   : > { %v3330_v15 = vsel %vm3329_vm6, %v3327_v7, %v3324_v56  ;;  %4098 = vperm.xlu1 %4673, %v4009_v27   ;;  %v4862_v37 = vpop.eup %4861  ;;  %v3810_v22 = vsel %vm7286_vm7, %v3807_v44, %v3804_v25  ;;  %4865 = vlog2.f32 %v3811_v4  ;;  %v3646_v59 = vmul.f32 1.442695, %v3597_v28 }
 0x2f7   : > { %v3050_v54 = vmax.f32 %v7933_v32, 0.0  ;;  %v3164_v16 = vmul.f32 1.442695, %v3116_v46  ;;  %v3117_v13 = vsub.f32 0.0, %v3085_v63  ;;  %v3598_v53 = vsub.f32 0.0, %v3566_v24  ;;  %v7296_v57 = vpop.eup %4863 }
 0x2f8   : > { %v3331_v18 = vadd.f32 1.0, %v4862_v37  ;;  %v3334_v55 = vmul.f32 -0.5, %v4862_v37  ;;  %v3820_v7 = vadd.f32 1.0, %v7296_v57  ;;  %v3978_v56 = vadd.f32 %v3810_v22, %v3530_v14 }
 0x2f9   : > { %v7292_v30 = vpop.f32.mrf.mxu3  ;;  %v3498_v6 = vadd.f32 %v3330_v15, %v3050_v54  ;;  %4867 = vpow2.f32 %v3164_v16  ;;  %v3814_v46 = vmul.f32 -0.5, %v7270_v20  ;;  %v3817_v25 = vand.u32 2147483647, %v7270_v20 }
 0x2fa   : > { %4869 = vlog2.f32 %v3331_v18  ;;  %v3166_v4 = vmul.f32 1.442695, %v3117_v13  ;;  %v3531_v27 = vmax.f32 %v7194_v3, 0.0  ;;  %v3648_v24 = vmul.f32 1.442695, %v3598_v53 }
 0x2fb   : > { %4871 = vlog2.f32 %v3820_v7  ;;  %v4010_v44 = vadd.f32 %v3978_v56, %v3498_v6  ;;  %v7934_v28 = vsub.f32 0.0, %v7215_v52  ;;  %v3335_v32 = vadd.f32 1.0, %v3334_v55 }
 0x2fc   : > { %v7299_v39 = vpop.f32.mrf.mxu0  ;;  %4873 = vpow2.f32 %v3646_v59  ;;  %v4866_v63 = vpop.eup %4865  ;;  %v7824_v14 = vsub.f32 0.0, %v7292_v30  ;;  %v3815_v15 = vadd.f32 1.0, %v3814_v46  ;;  %v3337_v16 = vand.u32 2147483647, %v4862_v37 }
 0x2fd   : > { %v3051_v45 = vmax.f32 %v7934_v28, 0.0  ;;  %4875 = vpow2.f32 %v3166_v4  ;;  %v3823_v22 = vmul.f32 -0.5, %v7296_v57  ;;  %4103 = vperm.xlu2 %4674, %v4010_v44   ;;  %v3567_v13 = vand.u32 2147483647, %v7299_v39 }
 0x2fe   : > { %vm7311_vm8 = vcmp.lt.f32.partialorder %v3817_v25, 0.0004427343  ;;  %4877 = vpow2.f32 %v3648_v24  ;;  %v3813_v59 = vmul.f32 0.6931472, %v4866_v63  ;;  %v3532_v55 = vmax.f32 %v7229_v41, 0.0 }
 0x2ff   : > { %v4868_v54 = vpop.eup %4867  ;;  %v7937_v7 = vsub.f32 0.0, %v7247_v48  ;;  %v3086_v46 = vand.u32 2147483647, %v7824_v14  ;;  %v3336_v28 = vmul.f32 %v4862_v37, %v3335_v32  ;;  %v3599_v25 = vsub.f32 0.0, %v3567_v13 }
 0x300   : > { %v3340_v52 = vadd.f32 1.0, %v4868_v54  ;;  %v3343_v6 = vmul.f32 -0.5, %v4868_v54  ;;  %v4870_v18 = vpop.eup %4869  ;;  %v3816_v24 = vmul.f32 %v7270_v20, %v3815_v15  ;;  %vm7323_vm9 = vcmp.lt.f32.partialorder %v3337_v16, 0.0004427343 }
 0x301   : > { %v7309_v3 = vpop.f32.mrf.mxu3  ;;  %v3052_v56 = vmax.f32 %v7937_v7, 0.0  ;;  %v4872_v4 = vpop.eup %4871  ;;  %v3333_v44 = vmul.f32 0.6931472, %v4870_v18  ;;  %v3824_v41 = vadd.f32 1.0, %v3823_v22  ;;  %v3826_v48 = vand.u32 2147483647, %v7296_v57 }
 0x302   : > { %4879 = vlog2.f32 %v3340_v52  ;;  %v4874_v10 = vpop.eup %4873  ;;  %v3344_v18 = vadd.f32 1.0, %v3343_v6  ;;  %v3346_v37 = vand.u32 2147483647, %v4868_v54  ;;  %v3819_v13 = vsel %vm7311_vm8, %v3816_v24, %v3813_v59 }
 0x303   : > { %v4876_v7 = vpop.eup %4875  ;;  %v3339_v14 = vsel %vm7323_vm9, %v3336_v28, %v3333_v44  ;;  %v3829_v32 = vadd.f32 1.0, %v4874_v10  ;;  %v3822_v52 = vmul.f32 0.6931472, %v4872_v4  ;;  %v3118_v20 = vsub.f32 0.0, %v3086_v46 }
 0x304   : > { %v7320_v29 = vpop.f32.mrf.mxu0  ;;  %v3349_v38 = vadd.f32 1.0, %v4876_v7  ;;  %v7332_v15 = vpop.eup %4877  ;;  %v3832_v16 = vmul.f32 -0.5, %v4874_v10  ;;  %v3352_v22 = vmul.f32 -0.5, %v4876_v7  ;;  %v3650_v50 = vmul.f32 1.442695, %v3599_v25 }
 0x305   : > { %4881 = vlog2.f32 %v3829_v32  ;;  %v3499_v0 = vadd.f32 %v3339_v14, %v3051_v45  ;;  %v3825_v21 = vmul.f32 %v7296_v57, %v3824_v41  ;;  %v3023_v6 = vsub.f32 0.0, %v7309_v3 }
 0x306   : > { %4883 = vlog2.f32 %v3349_v38  ;;  %v3979_v53 = vadd.f32 %v3819_v13, %v3531_v27  ;;  %vm7338_vm10 = vcmp.lt.f32.partialorder %v3826_v48, 0.0004427343  ;;  %v3345_v46 = vmul.f32 %v4868_v54, %v3344_v18 }
 0x307   : > { %vm7342_vm11 = vcmp.lt.f32.partialorder %v3346_v37, 0.0004427343  ;;  %v3828_v45 = vsel %vm7338_vm10, %v3825_v21, %v3822_v52  ;;  %v3838_v38 = vadd.f32 1.0, %v7332_v15  ;;  %v3168_v14 = vmul.f32 1.442695, %v3118_v20 }
 0x308   : > { %v4880_v28 = vpop.eup %4879  ;;  %v3833_v3 = vadd.f32 1.0, %v3832_v16  ;;  %v3353_v25 = vadd.f32 1.0, %v3352_v22  ;;  %v3355_v24 = vand.u32 2147483647, %v4876_v7  ;;  %4885 = vpow2.f32 %v3650_v50 }
 0x309   : > { %v7336_v44 = vpop.f32.mrf.mxu3  ;;  %v3342_v57 = vmul.f32 0.6931472, %v4880_v28  ;;  %4887 = vpow2.f32 %v3168_v14  ;;  %v4011_v63 = vadd.f32 %v3979_v53, %v3499_v0  ;;  %v3087_v41 = vand.u32 2147483647, %v3023_v6 }
 0x30a   : > { %v3980_v18 = vadd.f32 %v3828_v45, %v3532_v55  ;;  %v3835_v21 = vand.u32 2147483647, %v4874_v10  ;;  %4889 = vlog2.f32 %v3838_v38  ;;  %v3568_v20 = vand.u32 2147483647, %v7320_v29 }
 0x30b   : > { %v3348_v54 = vsel %vm7342_vm11, %v3345_v46, %v3342_v57  ;;  %v4882_v48 = vpop.eup %4881  ;;  %4108 = vperm.xlu0 %4672, %v4011_v63   ;;  %v3119_v52 = vsub.f32 0.0, %v3087_v41  ;;  %v3354_v16 = vmul.f32 %v4876_v7, %v3353_v25  ;;  %v3834_v28 = vmul.f32 %v4874_v10, %v3833_v3 }
 0x30c   : > { %v7349_v27 = vpop.f32.mrf.mxu0  ;;  %v3500_v37 = vadd.f32 %v3348_v54, %v3052_v56  ;;  %v4884_v32 = vpop.eup %4883  ;;  %v3831_v13 = vmul.f32 0.6931472, %v4882_v48  ;;  %v7944_v59 = vsub.f32 0.0, %v7268_v26  ;;  %vm3356_vm12 = vcmp.lt.f32.partialorder %v3355_v24, 0.0004427343 }
 0x30d   : > { %v3351_v50 = vmul.f32 0.6931472, %v4884_v32  ;;  %vm7360_vm13 = vcmp.lt.f32.partialorder %v3835_v21, 0.0004427343  ;;  %v3841_v4 = vmul.f32 -0.5, %v7332_v15  ;;  %v3600_v45 = vsub.f32 0.0, %v3568_v20 }
 0x30e   : > { %v4012_v22 = vadd.f32 %v3980_v18, %v3500_v37  ;;  %v3053_v46 = vmax.f32 %v7944_v59, 0.0  ;;  %v7358_v55 = vpop.eup %4885  ;;  %v3837_v10 = vsel %vm7360_vm13, %v3834_v28, %v3831_v13  ;;  %v3170_v57 = vmul.f32 1.442695, %v3119_v52 }
 0x30f   : > { %v3357_v53 = vsel %vm3356_vm12, %v3354_v16, %v3351_v50  ;;  %v4888_v7 = vpop.eup %4887  ;;  %v3847_v26 = vadd.f32 1.0, %v7358_v55  ;;  %v3024_v38 = vsub.f32 0.0, %v7336_v44  ;;  %v3533_v14 = vmax.f32 %v7255_v60, 0.0 }
 0x310   : > { %4113 = vperm.xlu1 %4673, %v4012_v22   ;;  %v3501_v3 = vadd.f32 %v3357_v53, %v3053_v46  ;;  %v3534_v25 = vmax.f32 %v7275_v62, 0.0  ;;  %v3358_v24 = vadd.f32 1.0, %v4888_v7  ;;  %v4890_v63 = vpop.eup %4889  ;;  %v3844_v41 = vand.u32 2147483647, %v7332_v15 }
 0x311   : > { %v7356_v0 = vpop.f32.mrf.mxu3  ;;  %v3361_v48 = vmul.f32 -0.5, %v4888_v7  ;;  %4891 = vlog2.f32 %v3847_v26  ;;  %v3981_v37 = vadd.f32 %v3837_v10, %v3533_v14  ;;  %v3842_v21 = vadd.f32 1.0, %v3841_v4 }
 0x312   : > { %4893 = vlog2.f32 %v3358_v24  ;;  %v3652_v32 = vmul.f32 1.442695, %v3600_v45  ;;  %v7947_v44 = vsub.f32 0.0, %v7292_v30  ;;  %v7377_v13 = vmax.f32 %v3023_v6, 0.0 }
 0x313   : > { %4895 = vpow2.f32 %v3170_v57  ;;  %v3088_v62 = vand.u32 2147483647, %v3024_v38  ;;  %v3840_v52 = vmul.f32 0.6931472, %v4890_v63  ;;  %v3569_v20 = vand.u32 2147483647, %v7349_v27 }
 0x314   : > { %v7371_v54 = vpop.f32.mrf.mxu0  ;;  %v3054_v60 = vmax.f32 %v7947_v44, 0.0  ;;  %4897 = vpow2.f32 %v3652_v32  ;;  %v4013_v50 = vadd.f32 %v3981_v37, %v3501_v3  ;;  %vm7380_vm14 = vcmp.lt.f32.partialorder %v3844_v41, 0.0004427343 }
 0x315   : > { %v3362_v22 = vadd.f32 1.0, %v3361_v48  ;;  %v3120_v28 = vsub.f32 0.0, %v3088_v62  ;;  %v7829_v59 = vsub.f32 0.0, %v7356_v0  ;;  %v3843_v30 = vmul.f32 %v7332_v15, %v3842_v21 }
 0x316   : > { %v3364_v6 = vand.u32 2147483647, %v4888_v7  ;;  %v3601_v56 = vsub.f32 0.0, %v3569_v20  ;;  %4118 = vperm.xlu2 %4674, %v4013_v50   ;;  %v3570_v53 = vand.u32 2147483647, %v7371_v54  ;;  %v3850_v45 = vmul.f32 -0.5, %v7358_v55 }
 0x317   : > { %v4892_v4 = vpop.eup %4891  ;;  %v3172_v10 = vmul.f32 1.442695, %v3120_v28  ;;  %v3089_v26 = vand.u32 2147483647, %v7829_v59  ;;  %v3846_v3 = vsel %vm7380_vm14, %v3843_v30, %v3840_v52  ;;  %v3853_v15 = vand.u32 2147483647, %v7358_v55 }
 0x318   : > { %v4894_v14 = vpop.eup %4893  ;;  %v7397_v63 = vmax.f32 %v3024_v38, 0.0  ;;  %v3363_v21 = vmul.f32 %v4888_v7, %v3362_v22  ;;  %vm3365_vm15 = vcmp.lt.f32.partialorder %v3364_v6, 0.0004427343  ;;  %v3654_v20 = vmul.f32 1.442695, %v3601_v56 }
 0x319   : > { %v7385_v46 = vpop.f32.mrf.mxu3  ;;  %v4896_v48 = vpop.eup %4895  ;;  %v3360_v37 = vmul.f32 0.6931472, %v4894_v14  ;;  %4899 = vpow2.f32 %v3172_v10  ;;  %v3121_v32 = vsub.f32 0.0, %v3089_v26  ;;  %v3602_v50 = vsub.f32 0.0, %v3570_v53 }
 0x31a   : > { %v7830_v57 = vsub.f32 0.0, %v7385_v46  ;;  %v4898_v44 = vpop.eup %4897  ;;  %v3367_v62 = vadd.f32 1.0, %v4896_v48  ;;  %v3851_v52 = vadd.f32 1.0, %v3850_v45  ;;  %v3982_v38 = vadd.f32 %v3846_v3, %v3534_v25 }
 0x31b   : > { %v3366_v16 = vsel %vm3365_vm15, %v3363_v21, %v3360_v37  ;;  %v3856_v28 = vadd.f32 1.0, %v4898_v44  ;;  %v3370_v18 = vmul.f32 -0.5, %v4896_v48  ;;  %v3849_v59 = vmul.f32 0.6931472, %v4892_v4 }
 0x31c   : > { %v7399_v41 = vpop.f32.mrf.mxu0  ;;  %v3090_v30 = vand.u32 2147483647, %v7830_v57  ;;  %v3502_v24 = vadd.f32 %v3366_v16, %v3054_v60  ;;  %4901 = vlog2.f32 %v3367_v62  ;;  %v3859_v7 = vmul.f32 -0.5, %v4898_v44 }
 0x31d   : > { %4903 = vlog2.f32 %v3856_v28  ;;  %v3174_v22 = vmul.f32 1.442695, %v3121_v32  ;;  %vm7405_vm1 = vcmp.lt.f32.partialorder %v3853_v15, 0.0004427343  ;;  %v3656_v56 = vmul.f32 1.442695, %v3602_v50 }
 0x31e   : > { %4905 = vpow2.f32 %v3654_v20  ;;  %v4014_v53 = vadd.f32 %v3982_v38, %v3502_v24  ;;  %v3852_v26 = vmul.f32 %v7358_v55, %v3851_v52  ;;  %v3373_v25 = vand.u32 2147483647, %v4896_v48 }
 0x31f   : > { %v4900_v45 = vpop.eup %4899  ;;  %4907 = vpow2.f32 %v3174_v22  ;;  %v3122_v60 = vsub.f32 0.0, %v3090_v30  ;;  %v3371_v14 = vadd.f32 1.0, %v3370_v18  ;;  %v3860_v21 = vadd.f32 1.0, %v3859_v7 }
 0x320   : > { %v3376_v4 = vadd.f32 1.0, %v4900_v45  ;;  %v3379_v3 = vmul.f32 -0.5, %v4900_v45  ;;  %4909 = vpow2.f32 %v3656_v56  ;;  %4123 = vperm.xlu0 %4672, %v4014_v53   ;;  %v3855_v15 = vsel %vm7405_vm1, %v3852_v26, %v3849_v59 }
 0x321   : > { %v7403_v10 = vpop.f32.mrf.mxu3  ;;  %v3537_v32 = vmax.f32 %v7349_v27, 0.0  ;;  %v3176_v24 = vmul.f32 1.442695, %v3122_v60  ;;  %v3862_v20 = vand.u32 2147483647, %v4898_v44  ;;  %v7952_v50 = vsub.f32 0.0, %v7356_v0 }
 0x322   : > { %v4902_v62 = vpop.eup %4901  ;;  %4911 = vlog2.f32 %v3376_v4  ;;  %v3382_v55 = vand.u32 2147483647, %v4900_v45  ;;  %v3380_v28 = vadd.f32 1.0, %v3379_v3  ;;  %v3571_v30 = vand.u32 2147483647, %v7399_v41 }
 0x323   : > { %v7417_v18 = vmax.f32 %v7952_v50, 0.0  ;;  %v4904_v16 = vpop.eup %4903  ;;  %v3369_v52 = vmul.f32 0.6931472, %v4902_v62  ;;  %4913 = vpow2.f32 %v3176_v24  ;;  %v7953_v59 = vmax.f32 %v7299_v39, 0.0 }
 0x324   : > { %v7410_v37 = vpop.f32.mrf.mxu0  ;;  %v4906_v38 = vpop.eup %4905  ;;  %v3372_v22 = vmul.f32 %v4896_v48, %v3371_v14  ;;  %vm7422_vm2 = vcmp.lt.f32.partialorder %v3373_v25, 0.0004427343  ;;  %v3858_v56 = vmul.f32 0.6931472, %v4904_v16  ;;  %v3861_v0 = vmul.f32 %v4898_v44, %v3860_v21 }
 0x325   : > { %v3983_v7 = vadd.f32 %v3855_v15, %v7953_v59  ;;  %v4908_v53 = vpop.eup %4907  ;;  %v3865_v26 = vadd.f32 1.0, %v4906_v38  ;;  %v3868_v60 = vmul.f32 -0.5, %v4906_v38  ;;  %v7831_v4 = vsub.f32 0.0, %v7403_v10 }
 0x326   : > { %v7429_v24 = vpop.eup %4909  ;;  %v3375_v39 = vsel %vm7422_vm2, %v3372_v22, %v3369_v52  ;;  %vm7433_vm3 = vcmp.lt.f32.partialorder %v3862_v20, 0.0004427343  ;;  %v3385_v25 = vadd.f32 1.0, %v4908_v53  ;;  %v3388_v14 = vmul.f32 -0.5, %v4908_v53 }
 0x327   : > { %v3381_v15 = vmul.f32 %v4900_v45, %v3380_v28  ;;  %vm7437_vm4 = vcmp.lt.f32.partialorder %v3382_v55, 0.0004427343  ;;  %4915 = vlog2.f32 %v3865_v26  ;;  %v3603_v21 = vsub.f32 0.0, %v3571_v30 }
 0x328   : > { %v4912_v62 = vpop.eup %4911  ;;  %v3864_v50 = vsel %vm7433_vm3, %v3861_v0, %v3858_v56  ;;  %v3871_v16 = vand.u32 2147483647, %v4906_v38  ;;  %4917 = vlog2.f32 %v3385_v25  ;;  %v3874_v20 = vadd.f32 1.0, %v7429_v24 }
 0x329   : > { %v7427_v3 = vpop.f32.mrf.mxu3  ;;  %v4914_v59 = vpop.eup %4913  ;;  %v3503_v22 = vadd.f32 %v3375_v39, %v7377_v13  ;;  %v3378_v45 = vmul.f32 0.6931472, %v4912_v62  ;;  %v3869_v55 = vadd.f32 1.0, %v3868_v60  ;;  %v3091_v28 = vand.u32 2147483647, %v7831_v4 }
 0x32a   : > { %v3389_v6 = vadd.f32 1.0, %v3388_v14  ;;  %v3391_v30 = vand.u32 2147483647, %v4908_v53  ;;  %4919 = vlog2.f32 %v3874_v20  ;;  %v3394_v26 = vadd.f32 1.0, %v4914_v59 }
 0x32b   : > { %v7960_v56 = vmax.f32 %v7320_v29, 0.0  ;;  %v3384_v48 = vsel %vm7437_vm4, %v3381_v15, %v3378_v45  ;;  %v3397_v25 = vmul.f32 -0.5, %v4914_v59  ;;  %v3572_v57 = vand.u32 2147483647, %v7410_v37 }
 0x32c   : > { %v7444_v52 = vpop.f32.mrf.mxu0  ;;  %v3504_v13 = vadd.f32 %v3384_v48, %v7397_v63  ;;  %vm7455_vm0 = vcmp.lt.f32.partialorder %v3871_v16, 0.0004427343  ;;  %4921 = vlog2.f32 %v3394_v26  ;;  %v3658_v39 = vmul.f32 1.442695, %v3603_v21 }
 0x32d   : > { %v3984_v0 = vadd.f32 %v3864_v50, %v7960_v56  ;;  %v4916_v14 = vpop.eup %4915  ;;  %v3870_v62 = vmul.f32 %v4906_v38, %v3869_v55  ;;  %v3877_v20 = vmul.f32 -0.5, %v7429_v24  ;;  %v4015_v29 = vadd.f32 %v3983_v7, %v3503_v22 }
 0x32e   : > { %v3123_v50 = vsub.f32 0.0, %v3091_v28  ;;  %v4918_v15 = vpop.eup %4917  ;;  %v3867_v44 = vmul.f32 0.6931472, %v4916_v14  ;;  %v3390_v45 = vmul.f32 %v4908_v53, %v3389_v6  ;;  %vm7462_vm5 = vcmp.lt.f32.partialorder %v3391_v30, 0.0004427343 }
 0x32f   : > { %4923 = vpow2.f32 %v3658_v39  ;;  %v3387_v63 = vmul.f32 0.6931472, %v4918_v15  ;;  %v3398_v16 = vadd.f32 1.0, %v3397_v25  ;;  %4128 = vperm.xlu1 %4673, %v4015_v29   ;;  %v3604_v26 = vsub.f32 0.0, %v3572_v57 }
 0x330   : > { %v3178_v21 = vmul.f32 1.442695, %v3123_v50  ;;  %v4920_v38 = vpop.eup %4919  ;;  %v3873_v7 = vsel %vm7455_vm0, %v3870_v62, %v3867_v44  ;;  %v3400_v22 = vand.u32 2147483647, %v4914_v59  ;;  %v4016_v55 = vadd.f32 %v3984_v0, %v3504_v13 }
 0x331   : > { %v7460_v56 = vpop.f32.mrf.mxu3  ;;  %v3028_v28 = vsub.f32 0.0, %v7427_v3  ;;  %v3393_v53 = vsel %vm7462_vm5, %v3390_v45, %v3387_v63  ;;  %v3878_v6 = vadd.f32 1.0, %v3877_v20  ;;  %v3880_v30 = vand.u32 2147483647, %v7429_v24 }
 0x332   : > { %4925 = vpow2.f32 %v3178_v21  ;;  %v4922_v25 = vpop.eup %4921  ;;  %v3985_v57 = vadd.f32 %v3873_v7, %v3537_v32  ;;  %v3505_v60 = vadd.f32 %v3393_v53, %v7417_v18  ;;  %v3660_v39 = vmul.f32 1.442695, %v3604_v26  ;;  %4133 = vperm.xlu2 %4674, %v4016_v55  }
 0x333   : > { %v3092_v0 = vand.u32 2147483647, %v3028_v28  ;;  %v3876_v13 = vmul.f32 0.6931472, %v4920_v38  ;;  %v3396_v14 = vmul.f32 0.6931472, %v4922_v25  ;;  %v3399_v62 = vmul.f32 %v4914_v59, %v3398_v16 }
 0x334   : > { %v7469_v48 = vpop.f32.mrf.mxu0  ;;  %v3573_v4 = vand.u32 2147483647, %v7444_v52  ;;  %vm7480_vm6 = vcmp.lt.f32.partialorder %v3400_v22, 0.0004427343  ;;  %4927 = vpow2.f32 %v3660_v39  ;;  %v4017_v32 = vadd.f32 %v3985_v57, %v3505_v60 }
 0x335   : > { %v4924_v20 = vpop.eup %4923  ;;  %v3124_v27 = vsub.f32 0.0, %v3092_v0  ;;  %v3879_v18 = vmul.f32 %v7429_v24, %v3878_v6  ;;  %v7967_v50 = vsub.f32 0.0, %v7385_v46  ;;  %v3402_v44 = vsel %vm7480_vm6, %v3399_v62, %v3396_v14 }
 0x336   : > { %v3883_v45 = vadd.f32 1.0, %v4924_v20  ;;  %vm7491_vm7 = vcmp.lt.f32.partialorder %v3880_v30, 0.0004427343  ;;  %v3605_v21 = vsub.f32 0.0, %v3573_v4  ;;  %4138 = vperm.xlu0 %4672, %v4017_v32   ;;  %v3029_v26 = vsub.f32 0.0, %v7460_v56 }
 0x337   : > { %v3058_v15 = vmax.f32 %v7967_v50, 0.0  ;;  %v3180_v16 = vmul.f32 1.442695, %v3124_v27  ;;  %v3882_v46 = vsel %vm7491_vm7, %v3879_v18, %v3876_v13  ;;  %v3886_v24 = vmul.f32 -0.5, %v4924_v20 }
 0x338   : > { %v4926_v38 = vpop.eup %4925  ;;  %4929 = vlog2.f32 %v3883_v45  ;;  %v3538_v7 = vmax.f32 %v7371_v54, 0.0  ;;  %v3662_v6 = vmul.f32 1.442695, %v3605_v21  ;;  %v3093_v30 = vand.u32 2147483647, %v3029_v26 }
 0x339   : > { %v7489_v59 = vpop.f32.mrf.mxu3  ;;  %v3506_v22 = vadd.f32 %v3402_v44, %v3058_v15  ;;  %v3403_v55 = vadd.f32 1.0, %v4926_v38  ;;  %4931 = vpow2.f32 %v3180_v16  ;;  %v3406_v53 = vmul.f32 -0.5, %v4926_v38 }
 0x33a   : > { %v7503_v57 = vpop.eup %4927  ;;  %v3986_v60 = vadd.f32 %v3882_v46, %v3538_v7  ;;  %v3887_v39 = vadd.f32 1.0, %v3886_v24  ;;  %v3889_v13 = vand.u32 2147483647, %v4924_v20  ;;  %v3125_v54 = vsub.f32 0.0, %v3093_v30 }
 0x33b   : > { %4933 = vlog2.f32 %v3403_v55  ;;  %v3892_v0 = vadd.f32 1.0, %v7503_v57  ;;  %v3574_v14 = vand.u32 2147483647, %v7469_v48  ;;  %v3407_v29 = vadd.f32 1.0, %v3406_v53 }
 0x33c   : > { %v7501_v25 = vpop.f32.mrf.mxu0  ;;  %4935 = vpow2.f32 %v3662_v6  ;;  %v4018_v62 = vadd.f32 %v3986_v60, %v3506_v22  ;;  %v3409_v27 = vand.u32 2147483647, %v4926_v38  ;;  %v3182_v50 = vmul.f32 1.442695, %v3125_v54 }
 0x33d   : > { %4937 = vlog2.f32 %v3892_v0  ;;  %v3606_v15 = vsub.f32 0.0, %v3574_v14  ;;  %v3888_v44 = vmul.f32 %v4924_v20, %v3887_v39  ;;  %v3895_v45 = vmul.f32 -0.5, %v7503_v57 }
 0x33e   : > { %v4930_v4 = vpop.eup %4929  ;;  %4143 = vperm.xlu1 %4673, %v4018_v62   ;;  %v3030_v16 = vsub.f32 0.0, %v7489_v59  ;;  %vm7511_vm8 = vcmp.lt.f32.partialorder %v3889_v13, 0.0004427343  ;;  %4939 = vpow2.f32 %v3182_v50  ;;  %v3408_v6 = vmul.f32 %v4926_v38, %v3407_v29 }
 0x33f   : > { %v4932_v32 = vpop.eup %4931  ;;  %v3885_v18 = vmul.f32 0.6931472, %v4930_v4  ;;  %v3664_v22 = vmul.f32 1.442695, %v3606_v15  ;;  %v3539_v30 = vmax.f32 %v7399_v41, 0.0  ;;  %v7972_v60 = vsub.f32 0.0, %v7403_v10 }
 0x340   : > { %v3412_v63 = vadd.f32 1.0, %v4932_v32  ;;  %v3415_v7 = vmul.f32 -0.5, %v4932_v32  ;;  %vm3410_vm9 = vcmp.lt.f32.partialorder %v3409_v27, 0.0004427343  ;;  %v3896_v14 = vadd.f32 1.0, %v3895_v45 }
 0x341   : > { %v7509_v21 = vpop.f32.mrf.mxu3  ;;  %v4934_v46 = vpop.eup %4933  ;;  %v3891_v20 = vsel %vm7511_vm8, %v3888_v44, %v3885_v18  ;;  %v3059_v39 = vmax.f32 %v7972_v60, 0.0  ;;  %v3094_v62 = vand.u32 2147483647, %v3030_v16  ;;  %v3898_v29 = vand.u32 2147483647, %v7503_v57 }
 0x342   : > { %v7515_v55 = vpop.eup %4935  ;;  %v3405_v53 = vmul.f32 0.6931472, %v4934_v46  ;;  %4941 = vlog2.f32 %v3412_v63  ;;  %v3987_v18 = vadd.f32 %v3891_v20, %v3539_v30  ;;  %v3416_v41 = vadd.f32 1.0, %v3415_v7 }
 0x343   : > { %v3901_v0 = vadd.f32 1.0, %v7515_v55  ;;  %v4938_v13 = vpop.eup %4937  ;;  %4943 = vpow2.f32 %v3664_v22  ;;  %v3418_v50 = vand.u32 2147483647, %v4932_v32  ;;  %v3126_v10 = vsub.f32 0.0, %v3094_v62 }
 0x344   : > { %v3411_v54 = vsel %vm3410_vm9, %v3408_v6, %v3405_v53  ;;  %v7525_v4 = vpop.f32.mrf.mxu0  ;;  %v3575_v27 = vand.u32 2147483647, %v7501_v25  ;;  %v4940_v15 = vpop.eup %4939  ;;  %v3894_v44 = vmul.f32 0.6931472, %v4938_v13  ;;  %v3031_v45 = vsub.f32 0.0, %v7509_v21 }
 0x345   : > { %v3507_v38 = vadd.f32 %v3411_v54, %v3059_v39  ;;  %4945 = vlog2.f32 %v3901_v0  ;;  %v3897_v24 = vmul.f32 %v7503_v57, %v3896_v14  ;;  %v3060_v22 = vmax.f32 %v3028_v28, 0.0 }
 0x346   : > { %v3421_v20 = vadd.f32 1.0, %v4940_v15  ;;  %v3424_v53 = vmul.f32 -0.5, %v4940_v15  ;;  %v3417_v7 = vmul.f32 %v4932_v32, %v3416_v41  ;;  %v3184_v30 = vmul.f32 1.442695, %v3126_v10 }
 0x347   : > { %v4019_v63 = vadd.f32 %v3987_v18, %v3507_v38  ;;  %v3607_v60 = vsub.f32 0.0, %v3575_v27  ;;  %vm3899_vm10 = vcmp.lt.f32.partialorder %v3898_v29, 0.0004427343  ;;  %vm3419_vm11 = vcmp.lt.f32.partialorder %v3418_v50, 0.0004427343 }
 0x348   : > { %v4942_v46 = vpop.eup %4941  ;;  %4947 = vlog2.f32 %v3421_v20  ;;  %v3095_v0 = vand.u32 2147483647, %v3031_v45  ;;  %v3900_v57 = vsel %vm3899_vm10, %v3897_v24, %v3894_v44  ;;  %v3904_v28 = vmul.f32 -0.5, %v7515_v55 }
 0x349   : > { %v3414_v6 = vmul.f32 0.6931472, %v4942_v46  ;;  %4148 = vperm.xlu2 %4674, %v4019_v63   ;;  %v7533_v39 = vpop.eup %4943  ;;  %v7537_v13 = vpop.f32.mrf.mxu3  ;;  %v3540_v32 = vmax.f32 %v7410_v37, 0.0  ;;  %v3425_v62 = vadd.f32 1.0, %v3424_v53  ;;  %4949 = vpow2.f32 %v3184_v30 }
 0x34a   : > { %v3910_v18 = vadd.f32 1.0, %v7533_v39  ;;  %v3666_v38 = vmul.f32 1.442695, %v3607_v60  ;;  %v3907_v41 = vand.u32 2147483647, %v7515_v55  ;;  %v3127_v10 = vsub.f32 0.0, %v3095_v0 }
 0x34b   : > { %v3420_v3 = vsel %vm3419_vm11, %v3417_v7, %v3414_v6  ;;  %v4946_v54 = vpop.eup %4945  ;;  %v3988_v29 = vadd.f32 %v3900_v57, %v3540_v32  ;;  %v3427_v50 = vand.u32 2147483647, %v4940_v15  ;;  %v3905_v63 = vadd.f32 1.0, %v3904_v28 }
 0x34c   : > { %v3508_v14 = vadd.f32 %v3420_v3, %v3060_v22  ;;  %v3903_v44 = vmul.f32 0.6931472, %v4946_v54  ;;  %4951 = vpow2.f32 %v3666_v38  ;;  %v3576_v46 = vand.u32 2147483647, %v7525_v4 }
 0x34d   : > { %v3426_v37 = vmul.f32 %v4940_v15, %v3425_v62  ;;  %v3186_v22 = vmul.f32 1.442695, %v3127_v10  ;;  %v7833_v53 = vsub.f32 0.0, %v7537_v13  ;;  %4953 = vlog2.f32 %v3910_v18 }
 0x34e   : > { %v7543_v27 = vpop.f32.mrf.mxu0  ;;  %v4948_v24 = vpop.eup %4947  ;;  %v4020_v20 = vadd.f32 %v3988_v29, %v3508_v14  ;;  %v3608_v7 = vsub.f32 0.0, %v3576_v46  ;;  %v3541_v0 = vmax.f32 %v7444_v52, 0.0  ;;  %vm7549_vm12 = vcmp.lt.f32.partialorder %v3427_v50, 0.0004427343 }
 0x34f   : > { %v3423_v6 = vmul.f32 0.6931472, %v4948_v24  ;;  %v3577_v30 = vand.u32 2147483647, %v7543_v27  ;;  %v4950_v60 = vpop.eup %4949  ;;  %4955 = vpow2.f32 %v3186_v22  ;;  %v3096_v15 = vand.u32 2147483647, %v7833_v53 }
 0x350   : > { %4153 = vperm.xlu0 %4672, %v4020_v20   ;;  %v3906_v3 = vmul.f32 %v7515_v55, %v3905_v63  ;;  %v3061_v28 = vmax.f32 %v3029_v26, 0.0  ;;  %v3430_v32 = vadd.f32 1.0, %v4950_v60  ;;  %vm7560_vm13 = vcmp.lt.f32.partialorder %v3907_v41, 0.0004427343 }
 0x351   : > { %v3429_v54 = vsel %vm7549_vm12, %v3426_v37, %v3423_v6  ;;  %v3433_v14 = vmul.f32 -0.5, %v4950_v60  ;;  %v3668_v62 = vmul.f32 1.442695, %v3608_v7  ;;  %v3128_v18 = vsub.f32 0.0, %v3096_v15 }
 0x352   : > { %v4952_v29 = vpop.eup %4951  ;;  %v3909_v55 = vsel %vm7560_vm13, %v3906_v3, %v3903_v44  ;;  %v3913_v56 = vmul.f32 -0.5, %v7533_v39  ;;  %4957 = vlog2.f32 %v3430_v32  ;;  %v3609_v26 = vsub.f32 0.0, %v3577_v30 }
 0x353   : > { %v3509_v50 = vadd.f32 %v3429_v54, %v3061_v28  ;;  %v3542_v10 = vmax.f32 %v7469_v48, 0.0  ;;  %v3543_v41 = vmax.f32 %v7501_v25, 0.0  ;;  %v3919_v63 = vadd.f32 1.0, %v4952_v29  ;;  %v4954_v46 = vpop.eup %4953 }
 0x354   : > { %v7564_v38 = vpop.f32.mrf.mxu3  ;;  %v3062_v24 = vmax.f32 %v3030_v16, 0.0  ;;  %v3436_v37 = vand.u32 2147483647, %v4950_v60  ;;  %4959 = vpow2.f32 %v3668_v62  ;;  %v3188_v22 = vmul.f32 1.442695, %v3128_v18 }
 0x355   : > { %v4956_v20 = vpop.eup %4955  ;;  %v3989_v6 = vadd.f32 %v3909_v55, %v3541_v0  ;;  %v3434_v44 = vadd.f32 1.0, %v3433_v14  ;;  %4961 = vlog2.f32 %v3919_v63  ;;  %v3670_v7 = vmul.f32 1.442695, %v3609_v26 }
 0x356   : > { %v3914_v57 = vadd.f32 1.0, %v3913_v56  ;;  %v3922_v30 = vmul.f32 -0.5, %v4952_v29  ;;  %v3439_v15 = vadd.f32 1.0, %v4956_v20  ;;  %4963 = vpow2.f32 %v3188_v22 }
 0x357   : > { %v3916_v48 = vand.u32 2147483647, %v7533_v39  ;;  %v3442_v3 = vmul.f32 -0.5, %v4956_v20  ;;  %v4021_v28 = vadd.f32 %v3989_v6, %v3509_v50  ;;  %v7832_v54 = vsub.f32 0.0, %v7564_v38 }
 0x358   : > { %v7575_v59 = vpop.f32.mrf.mxu0  ;;  %v4958_v16 = vpop.eup %4957  ;;  %v3912_v32 = vmul.f32 0.6931472, %v4954_v46  ;;  %vm7577_vm14 = vcmp.lt.f32.partialorder %v3436_v37, 0.0004427343  ;;  %v3063_v0 = vmax.f32 %v3031_v45, 0.0  ;;  %4965 = vlog2.f32 %v3439_v15 }
 0x359   : > { %v3432_v14 = vmul.f32 0.6931472, %v4958_v16  ;;  %v3435_v62 = vmul.f32 %v4950_v60, %v3434_v44  ;;  %4967 = vpow2.f32 %v3670_v7  ;;  %4158 = vperm.xlu1 %4673, %v4021_v28   ;;  %v3097_v18 = vand.u32 2147483647, %v7832_v54 }
 0x35a   : > { %v4960_v55 = vpop.eup %4959  ;;  %v3915_v56 = vmul.f32 %v7533_v39, %v3914_v57  ;;  %v3923_v26 = vadd.f32 1.0, %v3922_v30  ;;  %v3925_v50 = vand.u32 2147483647, %v4952_v29  ;;  %v3578_v63 = vand.u32 2147483647, %v7575_v59 }
 0x35b   : > { %v4962_v37 = vpop.eup %4961  ;;  %vm7589_vm15 = vcmp.lt.f32.partialorder %v3916_v48, 0.0004427343  ;;  %v3438_v45 = vsel %vm7577_vm14, %v3435_v62, %v3432_v14  ;;  %v3443_v60 = vadd.f32 1.0, %v3442_v3  ;;  %v3928_v22 = vadd.f32 1.0, %v4960_v55 }
 0x35c   : > { %v7587_v46 = vpop.f32.mrf.mxu3  ;;  %v4964_v6 = vpop.eup %4963  ;;  %v3918_v39 = vsel %vm7589_vm15, %v3915_v56, %v3912_v32  ;;  %v3921_v44 = vmul.f32 0.6931472, %v4962_v37  ;;  %v3445_v7 = vand.u32 2147483647, %v4956_v20  ;;  %v3931_v57 = vmul.f32 -0.5, %v4960_v55 }
 0x35d   : > { %4969 = vlog2.f32 %v3928_v22  ;;  %v3448_v30 = vadd.f32 1.0, %v4964_v6  ;;  %v3129_v15 = vsub.f32 0.0, %v3097_v18  ;;  %v3610_v28 = vsub.f32 0.0, %v3578_v63 }
 0x35e   : > { %v4966_v48 = vpop.eup %4965  ;;  %v3510_v16 = vadd.f32 %v3438_v45, %v3062_v24  ;;  %v3924_v54 = vmul.f32 %v4952_v29, %v3923_v26  ;;  %vm7597_vm1 = vcmp.lt.f32.partialorder %v3925_v50, 0.0004427343  ;;  %v3451_v3 = vmul.f32 -0.5, %v4964_v6 }
 0x35f   : > { %v7601_v52 = vpop.eup %4967  ;;  %v3441_v14 = vmul.f32 0.6931472, %v4966_v48  ;;  %v3444_v62 = vmul.f32 %v4956_v20, %v3443_v60  ;;  %4971 = vlog2.f32 %v3448_v30  ;;  %v3034_v32 = vsub.f32 0.0, %v7587_v46 }
 0x360   : > { %v3990_v56 = vadd.f32 %v3918_v39, %v3542_v10  ;;  %v3927_v18 = vsel %vm7597_vm1, %v3924_v54, %v3921_v44  ;;  %vm3446_vm2 = vcmp.lt.f32.partialorder %v3445_v7, 0.0004427343  ;;  %v3934_v63 = vand.u32 2147483647, %v4960_v55 }
 0x361   : > { %v3447_v24 = vsel %vm3446_vm2, %v3444_v62, %v3441_v14  ;;  %v3932_v29 = vadd.f32 1.0, %v3931_v57  ;;  %v3190_v26 = vmul.f32 1.442695, %v3129_v15  ;;  %v3672_v50 = vmul.f32 1.442695, %v3610_v28 }
 0x362   : > { %v3511_v37 = vadd.f32 %v3447_v24, %v3063_v0  ;;  %v3452_v21 = vadd.f32 1.0, %v3451_v3  ;;  %v3937_v45 = vadd.f32 1.0, %v7601_v52  ;;  %v4022_v22 = vadd.f32 %v3990_v56, %v3510_v16  ;;  %v7607_v48 = vpop.f32.mrf.mxu0 }
 0x363   : > { %v4970_v20 = vpop.eup %4969  ;;  %v3991_v10 = vadd.f32 %v3927_v18, %v3543_v41  ;;  %v3454_v60 = vand.u32 2147483647, %v4964_v6  ;;  %4973 = vpow2.f32 %v3190_v26  ;;  %v3098_v53 = vand.u32 2147483647, %v3034_v32 }
 0x364   : > { %v3930_v54 = vmul.f32 0.6931472, %v4970_v20  ;;  %vm7613_vm3 = vcmp.lt.f32.partialorder %v3934_v63, 0.0004427343  ;;  %4975 = vpow2.f32 %v3672_v50  ;;  %4163 = vperm.xlu2 %4674, %v4022_v22   ;;  %v3933_v7 = vmul.f32 %v4960_v55, %v3932_v29 }
 0x365   : > { %v4972_v44 = vpop.eup %4971  ;;  %v3130_v57 = vsub.f32 0.0, %v3098_v53  ;;  %v3579_v25 = vand.u32 2147483647, %v7607_v48  ;;  %v4023_v41 = vadd.f32 %v3991_v10, %v3511_v37  ;;  %v3453_v15 = vmul.f32 %v4964_v6, %v3452_v21 }
 0x366   : > { %v7617_v0 = vpop.f32.mrf.mxu3  ;;  %v3450_v30 = vmul.f32 0.6931472, %v4972_v44  ;;  %4977 = vlog2.f32 %v3937_v45  ;;  %v7985_v16 = vsub.f32 0.0, %v7537_v13  ;;  %vm3455_vm4 = vcmp.lt.f32.partialorder %v3454_v60, 0.0004427343 }
 0x367   : > { %v3035_v28 = vsub.f32 0.0, %v7617_v0  ;;  %v3192_v14 = vmul.f32 1.442695, %v3130_v57  ;;  %v3611_v62 = vsub.f32 0.0, %v3579_v25  ;;  %4168 = vperm.xlu0 %4672, %v4023_v41   ;;  %v3544_v56 = vmax.f32 %v7525_v4, 0.0 }
 0x368   : > { %v3064_v3 = vmax.f32 %v7985_v16, 0.0  ;;  %v3936_v55 = vsel %vm7613_vm3, %v3933_v7, %v3930_v54  ;;  %v3456_v18 = vsel %vm3455_vm4, %v3453_v15, %v3450_v30  ;;  %v3940_v29 = vmul.f32 -0.5, %v7601_v52 }
 0x369   : > { %v3099_v63 = vand.u32 2147483647, %v3035_v28  ;;  %v4974_v6 = vpop.eup %4973  ;;  %4979 = vpow2.f32 %v3192_v14  ;;  %v3674_v13 = vmul.f32 1.442695, %v3611_v62  ;;  %v3992_v37 = vadd.f32 %v3936_v55, %v3544_v56 }
 0x36a   : > { %v3512_v24 = vadd.f32 %v3456_v18, %v3064_v3  ;;  %v4976_v26 = vpop.eup %4975  ;;  %v3457_v50 = vadd.f32 1.0, %v4974_v6  ;;  %v3460_v21 = vmul.f32 -0.5, %v4974_v6  ;;  %v3941_v20 = vadd.f32 1.0, %v3940_v29  ;;  %v7638_v29 = vpop.permute.xlu1 %4043 }
 0x36b   : > { %v3946_v45 = vadd.f32 1.0, %v4976_v26  ;;  %4981 = vpow2.f32 %v3674_v13  ;;  %v3131_v22 = vsub.f32 0.0, %v3099_v63  ;;  %v3943_v60 = vand.u32 2147483647, %v7601_v52 }
 0x36c   : > { %v4978_v4 = vpop.eup %4977  ;;  %4983 = vlog2.f32 %v3457_v50  ;;  %v4024_v10 = vadd.f32 %v3992_v37, %v3512_v24  ;;  %v3461_v44 = vadd.f32 1.0, %v3460_v21  ;;  %v3949_v7 = vmul.f32 -0.5, %v4976_v26 }
 0x36d   : > { %4985 = vlog2.f32 %v3946_v45  ;;  %v3194_v53 = vmul.f32 1.442695, %v3131_v22  ;;  %v3939_v39 = vmul.f32 0.6931472, %v4978_v4  ;;  %v3463_v57 = vand.u32 2147483647, %v4974_v6 }
 0x36e   : > { %4173 = vperm.xlu1 %4673, %v4024_v10   ;;  %v3942_v30 = vmul.f32 %v7601_v52, %v3941_v20  ;;  %v3545_v3 = vmax.f32 %v7543_v27, 0.0  ;;  %vm7632_vm0 = vcmp.lt.f32.partialorder %v3943_v60, 0.0004427343  ;;  %v3462_v63 = vmul.f32 %v4974_v6, %v3461_v44 }
 0x36f   : > { %v4980_v54 = vpop.eup %4979  ;;  %4987 = vpow2.f32 %v3194_v53  ;;  %v3950_v24 = vadd.f32 1.0, %v3949_v7  ;;  %v7988_v52 = vsub.f32 0.0, %v7564_v38  ;;  %vm3464_vm5 = vcmp.lt.f32.partialorder %v3463_v57, 0.0004427343 }
 0x370   : > { %v3466_v25 = vadd.f32 1.0, %v4980_v54  ;;  %v3469_v15 = vmul.f32 -0.5, %v4980_v54  ;;  %v3945_v55 = vsel %vm7632_vm0, %v3942_v30, %v3939_v39  ;;  %v3952_v27 = vand.u32 2147483647, %v4976_v26 }
 0x371   : > { %v4982_v41 = vpop.eup %4981  ;;  %v3065_v13 = vmax.f32 %v7988_v52, 0.0  ;;  %v3993_v4 = vadd.f32 %v3945_v55, %v3545_v3  ;;  %v3472_v20 = vand.u32 2147483647, %v4980_v54  ;;  %v3951_v60 = vmul.f32 %v4976_v26, %v3950_v24  ;;  %v7651_v3 = vpop.permute.xlu2 %4053 }
 0x372   : > { %v4984_v16 = vpop.eup %4983  ;;  %4989 = vlog2.f32 %v3466_v25  ;;  %v3955_v62 = vadd.f32 1.0, %v4982_v41  ;;  %v3470_v21 = vadd.f32 1.0, %v3469_v15  ;;  %v3958_v10 = vmul.f32 -0.5, %v4982_v41  ;;  %v4049_v52 = vpop.permute.xlu1 %4048 }
 0x373   : > { %v4986_v56 = vpop.eup %4985  ;;  %v3459_v18 = vmul.f32 0.6931472, %v4984_v16  ;;  %vm7642_vm6 = vcmp.lt.f32.partialorder %v3952_v27, 0.0004427343  ;;  %v3546_v15 = vmax.f32 %v7575_v59, 0.0  ;;  %v3066_v26 = vmax.f32 %v3034_v32, 0.0 }
 0x374   : > { %4991 = vlog2.f32 %v3955_v62  ;;  %v3948_v37 = vmul.f32 0.6931472, %v4986_v56  ;;  %v3471_v25 = vmul.f32 %v4980_v54, %v3470_v21  ;;  %vm3473_vm7 = vcmp.lt.f32.partialorder %v3472_v20, 0.0004427343  ;;  %v4034_v56 = vpop.permute.xlu0 %4033 }
 0x375   : > { %v3465_v50 = vsel %vm3464_vm5, %v3462_v63, %v3459_v18  ;;  %v4988_v45 = vpop.eup %4987  ;;  %v3959_v16 = vadd.f32 1.0, %v3958_v10  ;;  %v3961_v62 = vand.u32 2147483647, %v4982_v41  ;;  %v3067_v21 = vmax.f32 %v3035_v28, 0.0 }
 0x376   : > { %v3513_v22 = vadd.f32 %v3465_v50, %v3065_v13  ;;  %v3475_v53 = vadd.f32 1.0, %v4988_v45  ;;  %v3478_v38 = vmul.f32 -0.5, %v4988_v45  ;;  %v3954_v7 = vsel %vm7642_vm6, %v3951_v60, %v3948_v37 }
 0x377   : > { %v3994_v55 = vadd.f32 %v3954_v7, %v3546_v15  ;;  %v3481_v54 = vand.u32 2147483647, %v4988_v45  ;;  %v3960_v13 = vmul.f32 %v4982_v41, %v3959_v16  ;;  %vm3962_vm8 = vcmp.lt.f32.partialorder %v3961_v62, 0.0004427343 }
 0x378   : > { %v4990_v6 = vpop.eup %4989  ;;  %v4025_v44 = vadd.f32 %v3993_v4, %v3513_v22  ;;  %4993 = vlog2.f32 %v3475_v53  ;;  %v3479_v24 = vadd.f32 1.0, %v3478_v38  ;;  %v3547_v37 = vmax.f32 %v7607_v48, 0.0 }
 0x379   : > { %v3468_v57 = vmul.f32 0.6931472, %v4990_v6  ;;  %vm3482_vm9 = vcmp.lt.f32.partialorder %v3481_v54, 0.0004427343  ;;  %v4059_v10 = vpop.permute.xlu2 %4058 }
 0x37a   : > { %v4992_v30 = vpop.eup %4991  ;;  %4178 = vperm.xlu2 %4674, %v4025_v44   ;;  %v3480_v50 = vmul.f32 %v4988_v45, %v3479_v24  ;;  %v4069_v41 = vpop.permute.xlu1 %4068  ;;  %v4028_v44 = vlaneseq }
 0x37b   : > { %v3474_v14 = vsel %vm3473_vm7, %v3471_v25, %v3468_v57  ;;  %v3957_v63 = vmul.f32 0.6931472, %v4992_v30 }
 0x37c   : > { %v3514_v18 = vadd.f32 %v3474_v14, %v3066_v26  ;;  %v4039_v53 = vpop.permute.xlu0 %4038  ;;  %v7660_v0 = vand.u32 127, %v4028_v44 }
 0x37d   : > { %v3963_v46 = vsel %vm3962_vm8, %v3960_v13, %v3957_v63 }
 0x37e   : > { %v4026_v27 = vadd.f32 %v3994_v55, %v3514_v18  ;;  %v4994_v59 = vpop.eup %4993  ;;  %v3995_v22 = vadd.f32 %v3963_v46, %v3547_v37  ;;  %vm4030_vm10 = vcmp.eq.s32.totalorder %v7660_v0, 40 }
 0x37f   : > { %v3477_v32 = vmul.f32 0.6931472, %v4994_v59  ;;  %v4191_v30 = vsel %vm4030_vm10, %v4034_v56, %v6264_v2  ;;  %v4192_v14 = vsel %vm4030_vm10, %v4039_v53, %v6311_v31  ;;  %v4194_v31 = vsel %vm4030_vm10, %v4049_v52, %v6385_v1 }
 0x380   : > { %4183 = vperm.xlu0 %4672, %v4026_v27   ;;  %v4196_v1 = vsel %vm4030_vm10, %v4059_v10, %v6462_v34  ;;  %v4198_v34 = vsel %vm4030_vm10, %v4069_v41, %v6556_v51 }
 0x381   : > { %v3483_v4 = vsel %vm3482_vm9, %v3480_v50, %v3477_v32  ;;  %v4074_v6 = vpop.permute.xlu2 %4073 }
 0x382   : > { %v3515_v20 = vadd.f32 %v3483_v4, %v3067_v21  ;;  %v4084_v38 = vpop.permute.xlu1 %4083  ;;  %v7995_v21 = vld [vmem:[#allocation11_spill] sm:$0xff] }
 0x384   : > { %v4027_v60 = vadd.f32 %v3995_v22, %v3515_v20  ;;  %v4064_v39 = vpop.permute.xlu0 %4063  ;;  %v7996_v20 = vld [vmem:[#allocation7_spill] sm:$0xff] }
 0x386   : > { %4188 = vperm.xlu1 %4673, %v4027_v60   ;;  %v7997_v60 = vld [vmem:[#allocation12_spill] sm:$0xff] }
 0x389   : > { %v7656_v45 = vpop.permute.xlu2 %4088 }
 0x38a   : > { %v7658_v48 = vpop.permute.xlu1 %4098 }
 0x38c   : > { %v4079_v7 = vpop.permute.xlu0 %4078 }
 0x38d   : > { %v4200_v51 = vsel %vm4030_vm10, %v4079_v7, %v6621_v17  ;;  %v4202_v17 = vsel %vm4030_vm10, %v7656_v45, %v6681_v47  ;;  %v7994_v47 = vld [vmem:[#allocation6_spill] sm:$0xff] }
 0x38e   : > { %v4204_v37 = vsel %vm4030_vm10, %v7658_v48, %v7994_v47 }
 0x391   : > { %v7663_v28 = vpop.permute.xlu2 %4103 }
 0x392   : > { %v4114_v25 = vpop.permute.xlu1 %4113  ;;  %v4205_v10 = vsel %vm4030_vm10, %v7663_v28, %v7996_v20 }
 0x393   : > { %v4207_v15 = vsel %vm4030_vm10, %v4114_v25, %v6785_v36  ;;  %v4193_v36 = vsel %vm4030_vm10, %v7638_v29, %v6348_v11  ;;  %v4195_v11 = vsel %vm4030_vm10, %v7651_v3, %v6422_v49  ;;  %v4197_v49 = vsel %vm4030_vm10, %v4064_v39, %v6513_v9 }
 0x394   : > { %v7665_v57 = vpop.permute.xlu0 %4093  ;;  %v4199_v9 = vsel %vm4030_vm10, %v4074_v6, %v6585_v8  ;;  %v4201_v8 = vsel %vm4030_vm10, %v4084_v38, %v6655_v42  ;;  %v7992_v42 = vld [vmem:[#allocation5_spill] sm:$0xff]  ;;  %v7998_v6 = vld [vmem:[#allocation8_spill] sm:$0xff] }
 0x395   : > { %v4203_v46 = vsel %vm4030_vm10, %v7665_v57, %v7992_v42  ;;  %v7999_v38 = vld [vmem:[#allocation13_spill] sm:$0xff] }
 0x399   : > { %v4119_v26 = vpop.permute.xlu2 %4118 }
 0x39a   : > { %v4208_v62 = vsel %vm4030_vm10, %v4119_v26, %v6807_v5 }
 0x39c   : > { %v7673_v16 = vpop.permute.xlu0 %4108 }
 0x39d   : > { %v4206_v39 = vsel %vm4030_vm10, %v7673_v16, %v7998_v6 }
 0x3a0   : > { %4223 = vxpose.xlu2.b32.start [1/16] (narrow) %v4191_v30, 48 }
 0x3a1   : > { %v4129_v55 = vpop.permute.xlu1 %4128  ;;  %v4134_v18 = vpop.permute.xlu2 %4133 }
 0x3a2   : > { %4255 = vxpose.xlu0.b32.start [1/16] (narrow) %v4207_v15, 48  ;;  %v4210_v5 = vsel %vm4030_vm10, %v4129_v55, %v6831_v19 }
 0x3a4   : > { %v4124_v2 = vpop.permute.xlu0 %4123 }
 0x3a5   : > { %v4209_v56 = vsel %vm4030_vm10, %v4124_v2, %v6822_v40  ;;  %v4211_v40 = vsel %vm4030_vm10, %v4134_v18, %v6858_v43 }
 0x3a8   : > { %4224 = vxpose.xlu2.b32.cont [2/16] (narrow) %v4192_v14, 48 }
 0x3a9   : > { %v4149_v3 = vpop.permute.xlu2 %4148 }
 0x3aa   : > { %4256 = vxpose.xlu0.b32.cont [2/16] (narrow) %v4208_v62, 48 }
 0x3ac   : > { %v4139_v29 = vpop.permute.xlu0 %4138 }
 0x3ad   : > { %v4212_v19 = vsel %vm4030_vm10, %v4139_v29, %v6879_v61  ;;  %v4214_v61 = vsel %vm4030_vm10, %v4149_v3, %v6935_v12 }
 0x3b0   : > { %4225 = vxpose.xlu2.b32.cont [3/16] (narrow) %v4193_v36, 48  ;;  %v4144_v63 = vpop.permute.xlu1 %4143 }
 0x3b1   : > { %v4213_v43 = vsel %vm4030_vm10, %v4144_v63, %v6903_v58 }
 0x3b2   : > { %4257 = vxpose.xlu0.b32.cont [3/16] (narrow) %v4209_v56, 48 }
 0x3b8   : > { %4226 = vxpose.xlu2.b32.cont [4/16] (narrow) %v4194_v31, 48 }
 0x3ba   : > { %4258 = vxpose.xlu0.b32.cont [4/16] (narrow) %v4210_v5, 48 }
 0x3be   : > { %v4164_v52 = vpop.permute.xlu2 %4163 }
 0x3c0   : > { %4227 = vxpose.xlu2.b32.cont [5/16] (narrow) %v4195_v11, 48 }
 0x3c2   : > { %4259 = vxpose.xlu0.b32.cont [5/16] (narrow) %v4211_v40, 48  ;;  %v4154_v24 = vpop.permute.xlu0 %4153 }
 0x3c3   : > { %v4215_v58 = vsel %vm4030_vm10, %v4154_v24, %v6960_v35  ;;  %v4217_v35 = vsel %vm4030_vm10, %v4164_v52, %v7012_v33  ;;  %v7993_v33 = vld [vmem:[#allocation10_spill] sm:$0xff] }
 0x3c8   : > { %4228 = vxpose.xlu2.b32.cont [6/16] (narrow) %v4196_v1, 48 }
 0x3ca   : > { %4260 = vxpose.xlu0.b32.cont [6/16] (narrow) %v4212_v19, 48 }
 0x3cb   : > { %v4159_v54 = vpop.permute.xlu1 %4158 }
 0x3cc   : > { %v4216_v12 = vsel %vm4030_vm10, %v4159_v54, %v6992_v23  ;;  %v7991_v23 = vld [vmem:[#allocation9_spill] sm:$0xff] }
 0x3d0   : > { %4229 = vxpose.xlu2.b32.cont [7/16] (narrow) %v4197_v49, 48 }
 0x3d2   : > { %4261 = vxpose.xlu0.b32.cont [7/16] (narrow) %v4213_v43, 48 }
 0x3d4   : > { %v4179_v50 = vpop.permute.xlu2 %4178 }
 0x3d5   : > { %v4220_v4 = vsel %vm4030_vm10, %v4179_v50, %v7995_v21 }
 0x3d8   : > { %4230 = vxpose.xlu2.b32.cont [8/16] (narrow) %v4198_v34, 48 }
 0x3d9   : > { %v4169_v13 = vpop.permute.xlu0 %4168 }
 0x3da   : > { %4262 = vxpose.xlu0.b32.cont [8/16] (narrow) %v4214_v61, 48  ;;  %v4218_v27 = vsel %vm4030_vm10, %v4169_v13, %v7991_v23 }
 0x3e0   : > { %4231 = vxpose.xlu2.b32.cont [9/16] (narrow) %v4199_v9, 48  ;;  %v4174_v59 = vpop.permute.xlu1 %4173 }
 0x3e1   : > { %v4219_v32 = vsel %vm4030_vm10, %v4174_v59, %v7993_v33 }
 0x3e2   : > { %4263 = vxpose.xlu0.b32.cont [9/16] (narrow) %v4215_v58, 48 }
 0x3e8   : > { %4232 = vxpose.xlu2.b32.cont [10/16] (narrow) %v4200_v51, 48 }
 0x3ea   : > { %4264 = vxpose.xlu0.b32.cont [10/16] (narrow) %v4216_v12, 48 }
 0x3f0   : > { %4233 = vxpose.xlu2.b32.cont [11/16] (narrow) %v4201_v8, 48 }
 0x3f2   : > { %4265 = vxpose.xlu0.b32.cont [11/16] (narrow) %v4217_v35, 48  ;;  %v4184_v22 = vpop.permute.xlu0 %4183 }
 0x3f3   : > { %v4221_v53 = vsel %vm4030_vm10, %v4184_v22, %v7997_v60 }
 0x3f8   : > { %4234 = vxpose.xlu2.b32.cont [12/16] (narrow) %v4202_v17, 48  ;;  %v4189_v41 = vpop.permute.xlu1 %4188 }
 0x3f9   : > { %v4222_v44 = vsel %vm4030_vm10, %v4189_v41, %v7999_v38 }
 0x3fa   : > { %4266 = vxpose.xlu0.b32.cont [12/16] (narrow) %v4218_v27, 48 }
 0x400   : > { %4235 = vxpose.xlu2.b32.cont [13/16] (narrow) %v4203_v46, 48 }
 0x402   : > { %4267 = vxpose.xlu0.b32.cont [13/16] (narrow) %v4219_v32, 48 }
 0x408   : > { %4236 = vxpose.xlu2.b32.cont [14/16] (narrow) %v4204_v37, 48 }
 0x40a   : > { %4268 = vxpose.xlu0.b32.cont [14/16] (narrow) %v4220_v4, 48 }
 0x410   : > { %4237 = vxpose.xlu2.b32.cont [15/16] (narrow) %v4205_v10, 48 }
 0x412   : > { %4269 = vxpose.xlu0.b32.cont [15/16] (narrow) %v4221_v53, 48 }
 0x418   : > { %4238 = vxpose.xlu2.b32.end [16/16] (narrow) %v4206_v39, 48 }
 0x41a   : > { %4270 = vxpose.xlu0.b32.end [16/16] (narrow) %v4222_v44, 48 }
 0x439   : > { %v4239_v45 = vpop.trf.xlu2 }
 0x441   : > { %v4240_v7 = vpop.trf.xlu2 }
 0x446   : > { %v4271_v48 = vpop.trf.xlu0 }
 0x449   : > { %v4241_v28 = vpop.trf.xlu2 }
 0x44e   : > { %v4272_v57 = vpop.trf.xlu0 }
 0x451   : > { %v4242_v25 = vpop.trf.xlu2 }
 0x456   : > { %v4273_v30 = vpop.trf.xlu0 }
 0x459   : > { %v4243_v15 = vpop.trf.xlu2 }
 0x45a   : > { %4287 = vst [vmem:[%s320_s13] sm:$0xff] %v4243_v15 }
 0x45e   : > { %v4274_v26 = vpop.trf.xlu0 }
 0x461   : > { %v4244_v16 = vpop.trf.xlu2 }
 0x462   : > { %4289 = vst [vmem:[%s320_s13 + $0x10] sm:$0xff] %v4244_v16 }
 0x466   : > { %v4275_v0 = vpop.trf.xlu0 }
 0x467   : > { %4288 = vst [vmem:[%s320_s13 + $0x8] sm:$0xff] %v4275_v0 }
 0x46e   : > { %v4276_v14 = vpop.trf.xlu0 }
 0x46f   : > { %4290 = vst [vmem:[%s320_s13 + $0x18] sm:$0xff] %v4276_v14 }
 0x470   : > { %5022 = shalt.err (!%p5019_p3)
}
 0x471   : > { %s5061_s22 = smov 256   ;;  %s5062_s13 = smov 768  }
 0x472   : > { %s5063_s15 = smov 16  }
 0x473   : > { %4628 = dma.vmem_to_hbm [thread:$0]  (%p5142_p5), %s4305_s18, 512, %s4307_s8, %s4292_s19, %s5061_s22, %s5062_s13, %s5063_s15  }
 0x474 PF: > { %p4634_p4 = scmp.ge.s32.totalorder %s5057_s27, 2  ;;  %s4321_s16 = sand.u32 1, %s5045_s24  }
 0x475   : > { %s4322_s17 = scalar_lea.sflag [#allocation3], %s4321_s16 }
 0x476   : > { %p4631_p7 = pnand %p4634_p4, %p5146_p6 }
 0x478   : > { %p4632_p8 = pneg %p4631_p7 }
 0x47a   : > { %5040 = dma.done.wait (%p4632_p8), %s4322_s17, 512  }
 0x47b   : > { %5042 = vsyncadd (%p4632_p8), %s4322_s17, 4294966784  ;;  %p17_p9 = scmp.ge.s32.totalorder %s5129_s30, 5   ;;  %s8000_s24 = smov %s5049_s25 }
 0x47c   : > { %s8001_s25 = smov %s5053_s26  ;;  %s8002_s26 = smov %s5140_s10 }
 0x47d   : > { %s8003_s27 = smov %s5129_s30  ;;  %19 = sbr.rel (!%p17_p9) target bundleno = 3 (0x3), region = 92 }
 0x482   :  { %4328 = vsyncpa [#allocation3], 1 }
 0x483   :  { %4330 = vsyncpa [#allocation3 + $0x1], 1 }

</bundles_post_ra>
